<compile_context>
chip_gen: v7x
topology: tpu7x:2x2x1
jax: 0.10.0
libtpu: 0.0.40
codegen_flags: <defaults>
</compile_context>

<pallas_src>
import numpy as np
import jax
import jax.numpy as jnp
from jax.experimental import pallas as pl
from jax.experimental.pallas import tpu as pltpu

LANE = 128  # TPU lane width


# ---------------------------------------------------------------------------
# Pallas kernel: fused fc1 -> relu -> fc2 -> relu -> fc3 (one N-block of fc3)
# Grid = (n_blocks,) over the padded fc3 output columns, "parallel" so on v7x
# the two TensorCores each handle half of the dominant fc3 weight stream.
# ---------------------------------------------------------------------------
def _recon_mlp_kernel(x_ref, w1_ref, b1_ref, w2_ref, b2_ref, w3_ref, b3_ref,
                      o_ref):
    x = x_ref[...]                                                # (B, 128) bf16
    h1 = jnp.dot(x, w1_ref[...],
                 preferred_element_type=jnp.float32) + b1_ref[...]
    h1 = jnp.maximum(h1, 0.0)
    h2 = jnp.dot(h1.astype(jnp.bfloat16), w2_ref[...],
                 preferred_element_type=jnp.float32) + b2_ref[...]
    h2 = jnp.maximum(h2, 0.0)
    o_ref[...] = (jnp.dot(h2.astype(jnp.bfloat16), w3_ref[...],
                          preferred_element_type=jnp.float32) + b3_ref[...])


def recon_mlp(x, w1t, b1, w2t, b2, w3t, b3, *, n_blocks=1):
    """x: (B, d_in) float32. Weights bf16 ((in, out) layout), biases f32 (1, out).

    w3t/b3 must be pre-padded so their output width splits into `n_blocks`
    lane-aligned tiles.  Returns (B, padded_out) float32.
    """
    B, d_in = x.shape
    d1 = w1t.shape[1]
    d2 = w2t.shape[1]
    n_pad = w3t.shape[1]
    assert n_pad % n_blocks == 0
    tn = n_pad // n_blocks
    assert tn % LANE == 0, (tn, LANE)

    x = x.astype(jnp.bfloat16)

    grid_spec = pltpu.PrefetchScalarGridSpec(
        num_scalar_prefetch=0,
        grid=(n_blocks,),
        in_specs=[
            # Constant block index -> fetched once, never re-DMA'd across steps.
            pl.BlockSpec((B, d_in), lambda j: (0, 0)),     # x
            pl.BlockSpec((d_in, d1), lambda j: (0, 0)),    # w1t
            pl.BlockSpec((1, d1), lambda j: (0, 0)),       # b1
            pl.BlockSpec((d1, d2), lambda j: (0, 0)),      # w2t
            pl.BlockSpec((1, d2), lambda j: (0, 0)),       # b2
            # fc3 weight/bias tiled over the padded output columns.
            pl.BlockSpec((d2, tn), lambda j: (0, j)),      # w3t
            pl.BlockSpec((1, tn), lambda j: (0, j)),       # b3
        ],
        out_specs=pl.BlockSpec((B, tn), lambda j: (0, j)),
    )

    return pl.pallas_call(
        _recon_mlp_kernel,
        out_shape=jax.ShapeDtypeStruct((B, n_pad), jnp.float32),
        grid_spec=grid_spec,
        compiler_params=pltpu.CompilerParams(
            dimension_semantics=("parallel",),
            vmem_limit_bytes=16 << 20,
        ),
    )(x, w1t, b1, w2t, b2, w3t, b3)


# ---------------------------------------------------------------------------
# Chip-dependent fc3 split: 2 blocks only where there are 2 TensorCores (v7x).
# ---------------------------------------------------------------------------
def pick_n_blocks():
    try:
        kind = jax.devices()[0].device_kind.lower()
    except Exception:
        return 1
    if "v7" in kind or "7x" in kind:
        return 2
    return 1


# ---------------------------------------------------------------------------
# Parameter construction (deterministic, mirrors __init__ / reset_parameters)
# ---------------------------------------------------------------------------
def xavier_normal(key, out_f, in_f, gain):
    std = gain * np.sqrt(2.0 / (in_f + out_f))
    # torch stores Linear weight as (out, in); we return the transpose (in, out)
    w = std * jax.random.normal(key, (out_f, in_f), dtype=jnp.float32)
    return w.T


def linear_bias(key, out_f, in_f):
    bound = 1.0 / np.sqrt(in_f)
    return jax.random.uniform(key, (1, out_f), dtype=jnp.float32,
                              minval=-bound, maxval=bound)


def _pad_cols(a, n_pad):
    """Zero-pad last axis of a 2-D array up to n_pad columns."""
    pad = n_pad - a.shape[1]
    if pad == 0:
        return a
    return jnp.pad(a, ((0, 0), (0, pad)))


def make_params(input_size=(1, 28, 28), num_classes=2, num_capsules=64,
                seed=0, n_blocks=1):
    gain = np.sqrt(2.0)  # nn.init.calculate_gain('relu')
    d_in = num_capsules * num_classes
    d_out = int(np.prod(input_size)) * 2
    # Pad so the fc3 output splits into n_blocks lane-aligned tiles:
    #   n_blocks=1 -> 1568 -> 1664 (13*128), n_blocks=2 -> 1568 -> 1792 (14*128)
    chunk = LANE * n_blocks
    d_out_pad = int(pl.cdiv(d_out, chunk)) * chunk

    keys = jax.random.split(jax.random.PRNGKey(seed), 6)
    w1t = xavier_normal(keys[0], 512, d_in, gain)
    b1 = linear_bias(keys[1], 512, d_in)
    w2t = xavier_normal(keys[2], 1024, 512, gain)
    b2 = linear_bias(keys[3], 1024, 512)
    w3t = xavier_normal(keys[4], d_out, 1024, gain)
    b3 = linear_bias(keys[5], d_out, 1024)

    # Pad fc3 to a lane-dense width with zero columns; bf16-quantize weights
    # (matmul inputs); biases stay f32 for the f32 epilogue.
    w3t = _pad_cols(w3t, d_out_pad)
    b3 = _pad_cols(b3, d_out_pad)

    w1t = w1t.astype(jnp.bfloat16)
    w2t = w2t.astype(jnp.bfloat16)
    w3t = w3t.astype(jnp.bfloat16)
    return (w1t, b1, w2t, b2, w3t, b3), d_out, d_out_pad


# ---------------------------------------------------------------------------
# Full forward pass (kernel + complex reassembly glue)
# ---------------------------------------------------------------------------
def reconstruction_net_forward(x, params, d_out, input_size=(1, 28, 28),
                               n_blocks=1):
    w1t, b1, w2t, b2, w3t, b3 = params
    y = recon_mlp(x, w1t, b1, w2t, b2, w3t, b3, n_blocks=n_blocks)  # (B, n_pad)
    y = y[:, :d_out]                                            # drop zero pad
    B = x.shape[0]
    # x.view(B, 2, *input_size).squeeze(1)  -> squeeze(1) is a no-op (dim==2)
    y = y.reshape(B, 2, *input_size)                            # (B, 2, 1, 28, 28)
    real = y[:, 0]                                              # (B, 1, 28, 28)
    imag = y[:, 1]                                              # (B, 1, 28, 28)
    return jax.lax.complex(real, imag)                          # complex64


# ---------------------------------------------------------------------------
# Pure-JAX reference (same bf16-quantized weights + bf16 x, f32 activations)
# ---------------------------------------------------------------------------
def reference_forward(x, params, d_out, input_size=(1, 28, 28)):
    w1t, b1, w2t, b2, w3t, b3 = params
    x32 = x.astype(jnp.bfloat16).astype(jnp.float32)  # model kernel's x rounding
    h1 = jnp.maximum(x32 @ w1t.astype(jnp.float32) + b1, 0.0)
    h2 = jnp.maximum(h1 @ w2t.astype(jnp.float32) + b2, 0.0)
    y = (h2 @ w3t.astype(jnp.float32) + b3)[:, :d_out]
    B = x.shape[0]
    y = y.reshape(B, 2, *input_size)
    return jax.lax.complex(y[:, 0], y[:, 1])


if __name__ == "__main__":
    input_size = (1, 28, 28)
    num_classes = 2
    num_capsules = 64
    B = 2

    n_blocks = pick_n_blocks()
    params, d_out, d_out_pad = make_params(input_size, num_classes,
                                           num_capsules, seed=0,
                                           n_blocks=n_blocks)

    key = jax.random.PRNGKey(0)
    x = jax.random.normal(key, (B, num_capsules * num_classes),
                          dtype=jnp.float32)

    out = reconstruction_net_forward(x, params, d_out, input_size,
                                     n_blocks=n_blocks)
    out = jax.block_until_ready(out)

    assert out.shape == (B, *input_size), out.shape
    assert out.dtype == jnp.complex64, out.dtype
    assert bool(jnp.all(jnp.isfinite(out.real))) and bool(
        jnp.all(jnp.isfinite(out.imag)))

    # Loose accuracy check vs. f32-activation reference (bf16 activation
    # rounding inside the kernel is the only source of deviation).
    ref = reference_forward(x, params, d_out, input_size)
    err = jnp.max(jnp.abs(out - ref))
    scale = jnp.max(jnp.abs(ref)) + 1e-6
    assert bool(err <= 3e-2 * scale + 3e-2), (float(err), float(scale))

    print("KERNEL_OK")
</pallas_src>

<mosaic_0001>
module attributes {stable_mosaic.version = 11 : i64} {
  func.func @_recon_mlp_kernel(%arg0: i32, %arg1: memref<2x128xbf16, #tpu.memory_space<vmem>>, %arg2: memref<128x512xbf16, #tpu.memory_space<vmem>>, %arg3: memref<1x512xf32, #tpu.memory_space<vmem>>, %arg4: memref<512x1024xbf16, #tpu.memory_space<vmem>>, %arg5: memref<1x1024xf32, #tpu.memory_space<vmem>>, %arg6: memref<1024x1664xbf16, #tpu.memory_space<vmem>>, %arg7: memref<1x1664xf32, #tpu.memory_space<vmem>>, %arg8: memref<2x1664xf32, #tpu.memory_space<vmem>>) attributes {dimension_semantics = [#tpu.dimension_semantics<parallel>], iteration_bounds = array<i64: 1>, scalar_prefetch = 0 : i64, scratch_operands = 0 : i64, tpu.core_type = #tpu.core_type<tc>, window_params = [{pipeline_mode = #tpu.pipeline_mode<synchronous>, transform_indices = @transform_0, window_bounds = array<i64: 2, 128>}, {pipeline_mode = #tpu.pipeline_mode<synchronous>, transform_indices = @transform_1, window_bounds = array<i64: 128, 512>}, {pipeline_mode = #tpu.pipeline_mode<synchronous>, transform_indices = @transform_2, window_bounds = array<i64: 1, 512>}, {pipeline_mode = #tpu.pipeline_mode<synchronous>, transform_indices = @transform_3, window_bounds = array<i64: 512, 1024>}, {pipeline_mode = #tpu.pipeline_mode<synchronous>, transform_indices = @transform_4, window_bounds = array<i64: 1, 1024>}, {transform_indices = @transform_5, window_bounds = array<i64: 1024, 1664>}, {transform_indices = @transform_6, window_bounds = array<i64: 1, 1664>}, {transform_indices = @transform_7, window_bounds = array<i64: 2, 1664>}]} {
    %c0 = arith.constant 0 : index
    %c0_0 = arith.constant 0 : index
    %0 = vector.load %arg1[%c0, %c0_0] : memref<2x128xbf16, #tpu.memory_space<vmem>>, vector<2x128xbf16>
    %c0_1 = arith.constant 0 : index
    %c0_2 = arith.constant 0 : index
    %1 = vector.load %arg2[%c0_1, %c0_2] : memref<128x512xbf16, #tpu.memory_space<vmem>>, vector<128x512xbf16>
    %cst = arith.constant dense<0.000000e+00> : vector<2x512xf32>
    %2 = tpu.matmul %0, %1, %cst {dimension_numbers = #tpu.dot_dimension_numbers<[1], [0], [0], [1], [0, 0, 1, 1], [], []>} : vector<2x128xbf16>, vector<128x512xbf16>, vector<2x512xf32> -> vector<2x512xf32>
    %c0_3 = arith.constant 0 : index
    %c0_4 = arith.constant 0 : index
    %3 = vector.load %arg3[%c0_3, %c0_4] : memref<1x512xf32, #tpu.memory_space<vmem>>, vector<1x512xf32>
    %4 = vector.broadcast %3 : vector<1x512xf32> to vector<2x512xf32>
    %5 = arith.addf %2, %4 : vector<2x512xf32>
    %cst_5 = arith.constant 0.000000e+00 : f32
    %6 = vector.broadcast %cst_5 : f32 to vector<2x512xf32>
    %7 = arith.maximumf %5, %6 : vector<2x512xf32>
    %8 = arith.truncf %7 : vector<2x512xf32> to vector<2x512xbf16>
    %c0_6 = arith.constant 0 : index
    %c0_7 = arith.constant 0 : index
    %9 = vector.load %arg4[%c0_6, %c0_7] : memref<512x1024xbf16, #tpu.memory_space<vmem>>, vector<512x1024xbf16>
    %cst_8 = arith.constant dense<0.000000e+00> : vector<2x1024xf32>
    %10 = tpu.matmul %8, %9, %cst_8 {dimension_numbers = #tpu.dot_dimension_numbers<[1], [0], [0], [1], [0, 0, 1, 1], [], []>} : vector<2x512xbf16>, vector<512x1024xbf16>, vector<2x1024xf32> -> vector<2x1024xf32>
    %c0_9 = arith.constant 0 : index
    %c0_10 = arith.constant 0 : index
    %11 = vector.load %arg5[%c0_9, %c0_10] : memref<1x1024xf32, #tpu.memory_space<vmem>>, vector<1x1024xf32>
    %12 = vector.broadcast %11 : vector<1x1024xf32> to vector<2x1024xf32>
    %13 = arith.addf %10, %12 : vector<2x1024xf32>
    %cst_11 = arith.constant 0.000000e+00 : f32
    %14 = vector.broadcast %cst_11 : f32 to vector<2x1024xf32>
    %15 = arith.maximumf %13, %14 : vector<2x1024xf32>
    %16 = arith.truncf %15 : vector<2x1024xf32> to vector<2x1024xbf16>
    %c0_12 = arith.constant 0 : index
    %c0_13 = arith.constant 0 : index
    %17 = vector.load %arg6[%c0_12, %c0_13] : memref<1024x1664xbf16, #tpu.memory_space<vmem>>, vector<1024x1664xbf16>
    %cst_14 = arith.constant dense<0.000000e+00> : vector<2x1664xf32>
    %18 = tpu.matmul %16, %17, %cst_14 {dimension_numbers = #tpu.dot_dimension_numbers<[1], [0], [0], [1], [0, 0, 1, 1], [], []>} : vector<2x1024xbf16>, vector<1024x1664xbf16>, vector<2x1664xf32> -> vector<2x1664xf32>
    %c0_15 = arith.constant 0 : index
    %c0_16 = arith.constant 0 : index
    %19 = vector.load %arg7[%c0_15, %c0_16] : memref<1x1664xf32, #tpu.memory_space<vmem>>, vector<1x1664xf32>
    %20 = vector.broadcast %19 : vector<1x1664xf32> to vector<2x1664xf32>
    %21 = arith.addf %18, %20 : vector<2x1664xf32>
    %c0_17 = arith.constant 0 : index
    %c0_18 = arith.constant 0 : index
    %22 = vector.load %arg8[%c0_17, %c0_18] : memref<2x1664xf32, #tpu.memory_space<vmem>>, vector<2x1664xf32>
    tpu.vector_store %arg8[%c0_17, %c0_18], %21 {strides = array<i32>} : memref<2x1664xf32, #tpu.memory_space<vmem>>, vector<2x1664xf32>,
    return
  }
  func.func @transform_0(%arg0: i32) -> (i32, i32) {
    %c0_i32 = arith.constant 0 : i32
    %c0_i32_0 = arith.constant 0 : i32
    %c0_i32_1 = arith.constant 0 : i32
    return %c0_i32, %c0_i32_0 : i32, i32
  }
  func.func @transform_1(%arg0: i32) -> (i32, i32) {
    %c0_i32 = arith.constant 0 : i32
    %c0_i32_0 = arith.constant 0 : i32
    %c0_i32_1 = arith.constant 0 : i32
    return %c0_i32, %c0_i32_0 : i32, i32
  }
  func.func @transform_2(%arg0: i32) -> (i32, i32) {
    %c0_i32 = arith.constant 0 : i32
    %c0_i32_0 = arith.constant 0 : i32
    %c0_i32_1 = arith.constant 0 : i32
    return %c0_i32, %c0_i32_0 : i32, i32
  }
  func.func @transform_3(%arg0: i32) -> (i32, i32) {
    %c0_i32 = arith.constant 0 : i32
    %c0_i32_0 = arith.constant 0 : i32
    %c0_i32_1 = arith.constant 0 : i32
    return %c0_i32, %c0_i32_0 : i32, i32
  }
  func.func @transform_4(%arg0: i32) -> (i32, i32) {
    %c0_i32 = arith.constant 0 : i32
    %c0_i32_0 = arith.constant 0 : i32
    %c0_i32_1 = arith.constant 0 : i32
    return %c0_i32, %c0_i32_0 : i32, i32
  }
  func.func @transform_5(%arg0: i32) -> (i32, i32) {
    %c0_i32 = arith.constant 0 : i32
    %c0_i32_0 = arith.constant 0 : i32
    return %c0_i32, %arg0 : i32, i32
  }
  func.func @transform_6(%arg0: i32) -> (i32, i32) {
    %c0_i32 = arith.constant 0 : i32
    %c0_i32_0 = arith.constant 0 : i32
    return %c0_i32, %arg0 : i32, i32
  }
  func.func @transform_7(%arg0: i32) -> (i32, i32) {
    %c0_i32 = arith.constant 0 : i32
    %c0_i32_0 = arith.constant 0 : i32
    return %c0_i32, %arg0 : i32, i32
  }
}

</mosaic_0001>

<bundles_post_ra>
// kernel: tpu_custom_call.1
= control target key start
LH: loop header
LB: loop body
LE: loop exit
PB: predicated region body
PF: predicated region fallthrough
CT: control target
= control target key end

     0   :  { %12 = vsyncpa [#allocation3], 0  ;;  %s11889_s0 = inlined_call_operand.hbm [shape: bf16[2,128], index: 0, kind: input, shape index: {}]   ;;  %s11890_s1 = inlined_call_operand.hbm [shape: bf16[128,512], index: 1, kind: input, shape index: {}]   ;;  %s11891_s2 = inlined_call_operand.hbm [shape: f32[1,512], index: 2, kind: input, shape index: {}]   ;;  %s11892_s3 = inlined_call_operand.hbm [shape: bf16[512,1024], index: 3, kind: input, shape index: {}]   ;;  %s11893_s4 = inlined_call_operand.hbm [shape: f32[1,1024], index: 4, kind: input, shape index: {}]   ;;  %s11894_s5 = inlined_call_operand.hbm [shape: bf16[1024,1664], index: 5, kind: input, shape index: {}]   ;;  %s11895_s6 = inlined_call_operand.hbm [shape: f32[1,1664], index: 6, kind: input, shape index: {}]   ;;  %s11896_s7 = inlined_call_operand.hbm [shape: f32[2,1664], index: 7, kind: output, shape index: {}]  }
   0x1   :  { %13 = vsyncpa [#allocation6], 0 }
   0x2   :  { %14 = vsyncpa [#allocation9], 0 }
   0x3   :  { %15 = vsyncpa [#allocation12], 0 }
   0x4   :  { %16 = vsyncpa [#allocation4], 0  ;;  %s11556_s24 = smov [#allocation5]   ;;  %s11370_s28 = scalar_lea.hbm %s11890_s1, 4096 }
   0x5   :  { %s32_s25 = sshll.u32 %s11556_s24, 4  ;;  %p11371_p0 = scmp.ne.s32.totalorder %s11890_s1, %s11370_s28  ;;  %s33_s25 = int_to_ptr.vmem [resolvable:$true] %s32_s25 }
   0x6   :  { %p11374_p1 = scmp.lt.u32.totalorder %s11370_s28, %s11890_s1 }
   0x8   :  { %p11376_p2 = pnand %p11374_p1, %p11371_p0 }
   0xa   :  { %11379 = shalt.err (!%p11376_p2)
}
   0xb   :  { %s11380_s10 = scalar_lea.vmem %s33_s25, 4096  ;;  %p11385_p4 = scmp.lt.s32.totalorder %s33_s25, %s33_s25 }
   0xc   :  { %p11381_p3 = scmp.ne.s32.totalorder %s33_s25, %s11380_s10  ;;  %p11386_p5 = scmp.lt.s32.totalorder %s11380_s10, %s11380_s10 }
   0xe   :  { %p11387_p6 = por %p11386_p5, %p11385_p4 }
  0x10   :  { %p11388_p7 = pnand %p11387_p6, %p11381_p3 }
  0x12   :  { %11391 = shalt.err (!%p11388_p7)
}
  0x13   :  { %s11557_s11 = smov 256   ;;  %s11558_s12 = smov 16  }
  0x14   :  { %38 = dma.hbm_to_vmem [thread:$0]  %s11890_s1, 4096, %s33_s25, [#allocation6], %s11557_s11, %s11557_s11, %s11558_s12  }
  0x15   :  { %s11559_s15 = smov [#allocation8]   ;;  %s11392_s19 = scalar_lea.hbm %s11892_s3, 32768 }
  0x16   :  { %s54_s16 = sshll.u32 %s11559_s15, 4  ;;  %p11393_p8 = scmp.ne.s32.totalorder %s11892_s3, %s11392_s19  ;;  %s55_s16 = int_to_ptr.vmem [resolvable:$true] %s54_s16 }
  0x17   :  { %p11396_p9 = scmp.lt.u32.totalorder %s11392_s19, %s11892_s3 }
  0x19   :  { %p11398_p10 = pnand %p11396_p9, %p11393_p8 }
  0x1b   :  { %11401 = shalt.err (!%p11398_p10)
}
  0x1c   :  { %s11402_s24 = scalar_lea.vmem %s55_s16, 32768  ;;  %p11407_p12 = scmp.lt.s32.totalorder %s55_s16, %s55_s16 }
  0x1d   :  { %p11403_p11 = scmp.ne.s32.totalorder %s55_s16, %s11402_s24  ;;  %p11408_p13 = scmp.lt.s32.totalorder %s11402_s24, %s11402_s24 }
  0x1f   :  { %p11409_p0 = por %p11408_p13, %p11407_p12 }
  0x21   :  { %p11410_p1 = pnand %p11409_p0, %p11403_p11 }
  0x23   :  { %11413 = shalt.err (!%p11410_p1)
}
  0x24   :  { %s11560_s1 = smov 512   ;;  %s11561_s25 = smov 32  }
  0x25   :  { %60 = dma.hbm_to_vmem [thread:$0]  %s11892_s3, 32768, %s55_s16, [#allocation9], %s11560_s1, %s11560_s1, %s11561_s25  }
  0x26   :  { %s11562_s28 = smov [#allocation11]   ;;  %s11414_s9 = scalar_lea.hbm %s11894_s5, 106496 }
  0x27   :  { %s76_s29 = sshll.u32 %s11562_s28, 4  ;;  %p11415_p2 = scmp.ne.s32.totalorder %s11894_s5, %s11414_s9  ;;  %s77_s29 = int_to_ptr.vmem [resolvable:$true] %s76_s29 }
  0x28   :  { %p11418_p3 = scmp.lt.u32.totalorder %s11414_s9, %s11894_s5 }
  0x2a   :  { %p11420_p4 = pnand %p11418_p3, %p11415_p2 }
  0x2c   :  { %11423 = shalt.err (!%p11420_p4)
}
  0x2d   :  { %s11424_s14 = scalar_lea.vmem %s77_s29, 106496  ;;  %p11429_p6 = scmp.lt.s32.totalorder %s77_s29, %s77_s29 }
  0x2e   :  { %p11425_p5 = scmp.ne.s32.totalorder %s77_s29, %s11424_s14  ;;  %p11430_p7 = scmp.lt.s32.totalorder %s11424_s14, %s11424_s14 }
  0x30   :  { %p11431_p8 = por %p11430_p7, %p11429_p6 }
  0x32   :  { %p11432_p9 = pnand %p11431_p8, %p11425_p5 }
  0x34   :  { %11435 = shalt.err (!%p11432_p9)
}
  0x35   :  { %s11563_s3 = smov 832   ;;  %s11564_s15 = smov 52  }
  0x36   :  { %82 = dma.hbm_to_vmem [thread:$0]  %s11894_s5, 106496, %s77_s29, [#allocation12], %s11563_s3, %s11563_s3, %s11564_s15  }
  0x37   :  { %s11565_s18 = smov [#allocation2]   ;;  %s11566_s20 = smov [#allocation7]  }
  0x38   :  { %s23_s19 = sshll.u32 %s11565_s18, 4  ;;  %s45_s21 = sshll.u32 %s11566_s20, 4  ;;  %s24_s19 = int_to_ptr.vmem [resolvable:$true] %s23_s19  ;;  %s46_s21 = int_to_ptr.vmem [resolvable:$true] %s45_s21 }
  0x39   :  { %s11436_s24 = scalar_lea.hbm %s11889_s0, 16 }
  0x3a   :  { %p11437_p10 = scmp.ne.s32.totalorder %s11889_s0, %s11436_s24  ;;  %p11440_p11 = scmp.lt.u32.totalorder %s11436_s24, %s11889_s0 }
  0x3c   :  { %p11442_p12 = pnand %p11440_p11, %p11437_p10 }
  0x3e   :  { %11445 = shalt.err (!%p11442_p12)
}
  0x3f   :  { %s11446_s5 = scalar_lea.vmem %s24_s19, 16  ;;  %s11450_s28 = scalar_lea.vmem %s24_s19, 32 }
  0x40   :  { %p11447_p13 = scmp.ne.s32.totalorder %s24_s19, %s11446_s5  ;;  %p11451_p0 = scmp.lt.s32.totalorder %s24_s19, %s24_s19 }
  0x41   :  { %p11452_p1 = scmp.lt.s32.totalorder %s11450_s28, %s11446_s5 }
  0x43   :  { %p11453_p2 = por %p11452_p1, %p11451_p0 }
  0x45   :  { %p11454_p3 = pnand %p11453_p2, %p11447_p13 }
  0x47   :  { %11457 = shalt.err (!%p11454_p3)
}
  0x48   :  { %26 = dma.hbm_to_vmem [thread:$0]  %s11889_s0, 16, %s24_s19, [#allocation3]  }
  0x49   :  { %s11458_s10 = scalar_lea.hbm %s11891_s2, 64 }
  0x4a   :  { %p11459_p4 = scmp.ne.s32.totalorder %s11891_s2, %s11458_s10  ;;  %p11462_p5 = scmp.lt.u32.totalorder %s11458_s10, %s11891_s2 }
  0x4c   :  { %p11464_p6 = pnand %p11462_p5, %p11459_p4 }
  0x4e   :  { %11467 = shalt.err (!%p11464_p6)
}
  0x4f   :  { %s11468_s3 = scalar_lea.vmem %s46_s21, 64  ;;  %p11473_p8 = scmp.lt.s32.totalorder %s46_s21, %s46_s21 }
  0x50   :  { %p11469_p7 = scmp.ne.s32.totalorder %s46_s21, %s11468_s3  ;;  %p11474_p9 = scmp.lt.s32.totalorder %s11468_s3, %s11468_s3 }
  0x52   :  { %p11475_p10 = por %p11474_p9, %p11473_p8 }
  0x54   :  { %p11476_p11 = pnand %p11475_p10, %p11469_p7 }
  0x56   :  { %11479 = shalt.err (!%p11476_p11)
}
  0x57   :  { %48 = dma.hbm_to_vmem [thread:$0]  %s11891_s2, 64, %s46_s21, [#allocation6]  }
  0x58   :  { %s11567_s16 = smov [#allocation10]   ;;  %s11568_s18 = smov [#allocation13]  }
  0x59   :  { %s67_s17 = sshll.u32 %s11567_s16, 4  ;;  %s89_s19 = sshll.u32 %s11568_s18, 4  ;;  %s68_s17 = int_to_ptr.vmem [resolvable:$true] %s67_s17  ;;  %s90_s19 = int_to_ptr.vmem [resolvable:$true] %s89_s19 }
  0x5a   :  { %s11480_s23 = scalar_lea.hbm %s11893_s4, 128 }
  0x5b   :  { %p11481_p12 = scmp.ne.s32.totalorder %s11893_s4, %s11480_s23  ;;  %p11484_p13 = scmp.lt.u32.totalorder %s11480_s23, %s11893_s4 }
  0x5d   :  { %p11486_p0 = pnand %p11484_p13, %p11481_p12 }
  0x5f   :  { %11489 = shalt.err (!%p11486_p0)
}
  0x60   :  { %s11490_s2 = scalar_lea.vmem %s68_s17, 128  ;;  %p11495_p2 = scmp.lt.s32.totalorder %s68_s17, %s68_s17 }
  0x61   :  { %p11491_p1 = scmp.ne.s32.totalorder %s68_s17, %s11490_s2  ;;  %p11496_p3 = scmp.lt.s32.totalorder %s11490_s2, %s11490_s2 }
  0x63   :  { %p11497_p4 = por %p11496_p3, %p11495_p2 }
  0x65   :  { %p11498_p5 = pnand %p11497_p4, %p11491_p1 }
  0x67   :  { %11501 = shalt.err (!%p11498_p5)
}
  0x68   :  { %70 = dma.hbm_to_vmem [thread:$0]  %s11893_s4, 128, %s68_s17, [#allocation9]  }
  0x69   :  { %s11502_s29 = scalar_lea.hbm %s11895_s6, 208 }
  0x6a   :  { %p11503_p6 = scmp.ne.s32.totalorder %s11895_s6, %s11502_s29  ;;  %p11506_p7 = scmp.lt.u32.totalorder %s11502_s29, %s11895_s6 }
  0x6c   :  { %p11508_p8 = pnand %p11506_p7, %p11503_p6 }
  0x6e   :  { %11511 = shalt.err (!%p11508_p8)
}
  0x6f   :  { %s11512_s11 = scalar_lea.vmem %s90_s19, 208  ;;  %s11516_s12 = scalar_lea.vmem %s90_s19, 224 }
  0x70   :  { %p11513_p9 = scmp.ne.s32.totalorder %s90_s19, %s11512_s11  ;;  %p11517_p10 = scmp.lt.s32.totalorder %s90_s19, %s90_s19 }
  0x71   :  { %p11518_p11 = scmp.lt.s32.totalorder %s11516_s12, %s11512_s11 }
  0x73   :  { %p11519_p12 = por %p11518_p11, %p11517_p10 }
  0x75   :  { %p11520_p13 = pnand %p11519_p12, %p11513_p9 }
  0x77   :  { %11523 = shalt.err (!%p11520_p13)
}
  0x78   :  { %92 = dma.hbm_to_vmem [thread:$0]  %s11895_s6, 208, %s90_s19, [#allocation12]  }
  0x79   :  { %11546 = dma.done.wait [#allocation3], 16  }
  0x7a   :  { %11547 = vsyncadd [#allocation3], 4294967280 }
  0x7b   :  { %11548 = dma.done.wait [#allocation6], 4160  }
  0x7c   :  { %11549 = vsyncadd [#allocation6], 4294963136 }
  0x7d   :  { %11550 = dma.done.wait [#allocation9], 32896  }
  0x7e   :  { %11551 = vsyncadd [#allocation9], 4294934400 }
  0x7f   :  { %11552 = dma.done.wait [#allocation12], 106704  }
  0x80   :  { %11553 = vsyncadd [#allocation12], 4294860592  ;;  %v11569_v0 = vmov 0   ;;  %v10105_v1 = vld [vmem:[#allocation5 + $0x4] ss:$16 sps:$4 sm:$0xff]   ;;  %v421_v43 = vld [vmem:[#allocation8 + $0x8] sm:$0xff] }
  0x81   :  { %362 = vmatprep.mubr.bf16.mxu0 %v11569_v0  ;;  %403 = vmatprep.mubr.bf16.mxu1 %v11569_v0  ;;  %v10107_v2 = vld [vmem:[#allocation5] ss:$16 sps:$4 sm:$0xff]   ;;  %v10108_v3 = vld [vmem:[#allocation5 + $0x24] ss:$16 sps:$4 sm:$0xff]   ;;  %v10129_v10 = vld [vmem:[#allocation5 + $0xc] ss:$16 sps:$4 sm:$0xff]  }
  0x82   :  { %330 = vmatprep.subr.bf16.mxu0 %v10105_v1  ;;  %v10110_v4 = vld [vmem:[#allocation5 + $0x20] ss:$16 sps:$4 sm:$0xff]   ;;  %v10111_v5 = vld [vmem:[#allocation5 + $0x44] ss:$16 sps:$4 sm:$0xff]   ;;  %v10131_v11 = vld [vmem:[#allocation5 + $0x8] ss:$16 sps:$4 sm:$0xff]   ;;  %371 = vmatprep.subr.bf16.mxu1 %v10129_v10 }
  0x83   :  { %331 = vmatpush1.bf16.msra.mxu0 %v10107_v2  ;;  %v10113_v6 = vld [vmem:[#allocation5 + $0x40] ss:$16 sps:$4 sm:$0xff]   ;;  %v10114_v7 = vld [vmem:[#allocation5 + $0x64] ss:$16 sps:$4 sm:$0xff]   ;;  %v10132_v12 = vld [vmem:[#allocation5 + $0x2c] ss:$16 sps:$4 sm:$0xff]   ;;  %372 = vmatpush1.bf16.msra.mxu1 %v10131_v11 }
  0x84   :  { %332 = vmatprep.subr.bf16.mxu0 %v10108_v3  ;;  %v10116_v8 = vld [vmem:[#allocation5 + $0x60] ss:$16 sps:$4 sm:$0xff]   ;;  %v10117_v9 = vld [vmem:[#allocation5 + $0x84] ss:$16 sps:$4 sm:$0xff]   ;;  %v10134_v14 = vld [vmem:[#allocation5 + $0x28] ss:$16 sps:$4 sm:$0xff]   ;;  %373 = vmatprep.subr.bf16.mxu1 %v10132_v12 }
  0x85   :  { %v10119_v13 = vld [vmem:[#allocation5 + $0x80] ss:$16 sps:$4 sm:$0xff]   ;;  %v10135_v15 = vld [vmem:[#allocation5 + $0x4c] ss:$16 sps:$4 sm:$0xff]   ;;  %v10120_v16 = vld [vmem:[#allocation5 + $0xa4] ss:$16 sps:$4 sm:$0xff]  }
  0x86   :  { %v10122_v17 = vld [vmem:[#allocation5 + $0xa0] ss:$16 sps:$4 sm:$0xff]   ;;  %v10137_v18 = vld [vmem:[#allocation5 + $0x48] ss:$16 sps:$4 sm:$0xff]   ;;  %v10138_v19 = vld [vmem:[#allocation5 + $0x6c] ss:$16 sps:$4 sm:$0xff]  }
  0x87   :  { %333 = vmatpush1.bf16.msra.mxu0 %v10110_v4  ;;  %374 = vmatpush1.bf16.msra.mxu1 %v10134_v14  ;;  %v10123_v20 = vld [vmem:[#allocation5 + $0xc4] ss:$16 sps:$4 sm:$0xff]   ;;  %v10140_v21 = vld [vmem:[#allocation5 + $0x68] ss:$16 sps:$4 sm:$0xff]   ;;  %v10125_v22 = vld [vmem:[#allocation5 + $0xc0] ss:$16 sps:$4 sm:$0xff]  }
  0x88   :  { %334 = vmatprep.subr.bf16.mxu0 %v10111_v5  ;;  %375 = vmatprep.subr.bf16.mxu1 %v10135_v15  ;;  %v10141_v23 = vld [vmem:[#allocation5 + $0x8c] ss:$16 sps:$4 sm:$0xff]   ;;  %v10126_v24 = vld [vmem:[#allocation5 + $0xe4] ss:$16 sps:$4 sm:$0xff]   ;;  %v10143_v27 = vld [vmem:[#allocation5 + $0x88] ss:$16 sps:$4 sm:$0xff]  }
  0x89   :  { %v420_v25 = vld [vmem:[#allocation8] sm:$0xff]  ;;  %v10128_v28 = vld [vmem:[#allocation5 + $0xe0] ss:$16 sps:$4 sm:$0xff]   ;;  %v10144_v29 = vld [vmem:[#allocation5 + $0xac] ss:$16 sps:$4 sm:$0xff]   ;;  %s11571_s6 = smov [#allocation14]  }
  0x8a   :  { %v424_v26 = vld [vmem:[#allocation8 + $0x20] sm:$0xff]  ;;  %v115_v34 = vld [vmem:[#allocation2] sm:$0x1]  ;;  %v425_v44 = vld [vmem:[#allocation8 + $0x28] sm:$0xff]  ;;  %s8760_s14 = sshll.u32 %s11571_s6, 4  ;;  %s8761_s14 = int_to_ptr.vmem [resolvable:$true] %s8760_s14 }
  0x8b   :  { %335 = vmatpush1.bf16.msra.mxu0 %v10113_v6  ;;  %376 = vmatpush1.bf16.msra.mxu1 %v10137_v18  ;;  %v8805_v30 = vcombine.high %v420_v25, %v424_v26  ;;  %v428_v31 = vld [vmem:[#allocation8 + $0x40] sm:$0xff]  ;;  %v10147_v35 = vld [vmem:[#allocation5 + $0xcc] ss:$16 sps:$4 sm:$0xff]   ;;  %v8804_v36 = vcombine.low %v420_v25, %v424_v26  ;;  %v8807_v49 = vcombine.high %v421_v43, %v425_v44  ;;  %s11524_s3 = scalar_lea.vmem %s8761_s14, 416  ;;  %p11529_p1 = scmp.lt.s32.totalorder %s8761_s14, %s8761_s14 }
  0x8c   :  { %336 = vmatprep.subr.bf16.mxu0 %v10114_v7  ;;  %377 = vmatprep.subr.bf16.mxu1 %v10138_v19  ;;  %v432_v32 = vld [vmem:[#allocation8 + $0x60] sm:$0xff]  ;;  %v10150_v41 = vld [vmem:[#allocation5 + $0xec] ss:$16 sps:$4 sm:$0xff]   ;;  %v8806_v56 = vcombine.low %v421_v43, %v425_v44  ;;  %p11525_p0 = scmp.ne.s32.totalorder %s8761_s14, %s11524_s3  ;;  %p11530_p2 = scmp.lt.s32.totalorder %s11524_s3, %s11524_s3 }
  0x8d   :  { %v10146_v33 = vld [vmem:[#allocation5 + $0xa8] ss:$16 sps:$4 sm:$0xff]   ;;  %v8813_v37 = vcombine.high %v428_v31, %v432_v32  ;;  %v8812_v42 = vcombine.low %v428_v31, %v432_v32  ;;  %v429_v50 = vld [vmem:[#allocation8 + $0x48] sm:$0xff] }
  0x8e   :  { %v436_v38 = vld [vmem:[#allocation8 + $0x80] sm:$0xff]  ;;  %v433_v51 = vld [vmem:[#allocation8 + $0x68] sm:$0xff]  ;;  %p11531_p3 = por %p11530_p2, %p11529_p1 }
  0x8f   :  { %337 = vmatpush1.bf16.msra.mxu0 %v10116_v8  ;;  %378 = vmatpush1.bf16.msra.mxu1 %v10140_v21  ;;  %v440_v39 = vld [vmem:[#allocation8 + $0xa0] sm:$0xff]  ;;  %v437_v57 = vld [vmem:[#allocation8 + $0x88] sm:$0xff]  ;;  %v8815_v59 = vcombine.high %v429_v50, %v433_v51  ;;  %v8814_v0 = vcombine.low %v429_v50, %v433_v51 }
  0x90   :  { %338 = vmatprep.subr.bf16.mxu0 %v10117_v9  ;;  %379 = vmatprep.subr.bf16.mxu1 %v10141_v23  ;;  %v10149_v40 = vld [vmem:[#allocation5 + $0xc8] ss:$16 sps:$4 sm:$0xff]   ;;  %v8821_v45 = vcombine.high %v436_v38, %v440_v39  ;;  %v8820_v52 = vcombine.low %v436_v38, %v440_v39  ;;  %v441_v58 = vld [vmem:[#allocation8 + $0xa8] sm:$0xff]  ;;  %p11532_p4 = pnand %p11531_p3, %p11525_p0 }
  0x91   :  { %v444_v46 = vld [vmem:[#allocation8 + $0xc0] sm:$0xff]  ;;  %v445_v1 = vld [vmem:[#allocation8 + $0xc8] sm:$0xff]  ;;  %v8823_v3 = vcombine.high %v437_v57, %v441_v58  ;;  %v8822_v8 = vcombine.low %v437_v57, %v441_v58 }
  0x92   :  { %v448_v47 = vld [vmem:[#allocation8 + $0xe0] sm:$0xff]  ;;  %v449_v2 = vld [vmem:[#allocation8 + $0xe8] sm:$0xff] }
  0x93   :  { %339 = vmatpush1.bf16.msra.mxu0 %v10119_v13  ;;  %380 = vmatpush1.bf16.msra.mxu1 %v10143_v27  ;;  %v10152_v48 = vld [vmem:[#allocation5 + $0xe8] ss:$16 sps:$4 sm:$0xff]   ;;  %v8829_v53 = vcombine.high %v444_v46, %v448_v47  ;;  %v8828_v60 = vcombine.low %v444_v46, %v448_v47  ;;  %v453_v9 = vld [vmem:[#allocation8 + $0x108] sm:$0xff]  ;;  %v8831_v11 = vcombine.high %v445_v1, %v449_v2 }
  0x94   :  { %340 = vmatprep.subr.bf16.mxu0 %v10120_v16  ;;  %381 = vmatprep.subr.bf16.mxu1 %v10144_v29  ;;  %v452_v54 = vld [vmem:[#allocation8 + $0x100] sm:$0xff]  ;;  %v457_v10 = vld [vmem:[#allocation8 + $0x128] sm:$0xff]  ;;  %v8830_v16 = vcombine.low %v445_v1, %v449_v2 }
  0x95   :  { %v456_v55 = vld [vmem:[#allocation8 + $0x120] sm:$0xff]  ;;  %v465_v18 = vld [vmem:[#allocation8 + $0x168] sm:$0xff]  ;;  %v8839_v19 = vcombine.high %v453_v9, %v457_v10 }
  0x96   :  { %v460_v61 = vld [vmem:[#allocation8 + $0x140] sm:$0xff]  ;;  %v8837_v63 = vcombine.high %v452_v54, %v456_v55  ;;  %v8836_v4 = vcombine.low %v452_v54, %v456_v55  ;;  %v469_v25 = vld [vmem:[#allocation8 + $0x188] sm:$0xff] }
  0x97   :  { %341 = vmatpush1.bf16.msra.mxu0 %v10122_v17  ;;  %382 = vmatpush1.bf16.msra.mxu1 %v10146_v33  ;;  %v464_v62 = vld [vmem:[#allocation8 + $0x160] sm:$0xff]  ;;  %v461_v17 = vld [vmem:[#allocation8 + $0x148] sm:$0xff] }
  0x98   :  { %342 = vmatprep.subr.bf16.mxu0 %v10123_v20  ;;  %383 = vmatprep.subr.bf16.mxu1 %v10147_v35  ;;  %v468_v5 = vld [vmem:[#allocation8 + $0x180] sm:$0xff]  ;;  %v8845_v7 = vcombine.high %v460_v61, %v464_v62  ;;  %v8844_v12 = vcombine.low %v460_v61, %v464_v62  ;;  %v473_v26 = vld [vmem:[#allocation8 + $0x1a8] sm:$0xff]  ;;  %v8847_v27 = vcombine.high %v461_v17, %v465_v18 }
  0x99   :  { %v472_v6 = vld [vmem:[#allocation8 + $0x1a0] sm:$0xff]  ;;  %v8846_v32 = vcombine.low %v461_v17, %v465_v18  ;;  %v477_v33 = vld [vmem:[#allocation8 + $0x1c8] sm:$0xff]  ;;  %v8855_v35 = vcombine.high %v469_v25, %v473_v26 }
  0x9a   :  { %v476_v13 = vld [vmem:[#allocation8 + $0x1c0] sm:$0xff]  ;;  %v8853_v15 = vcombine.high %v468_v5, %v472_v6  ;;  %v8852_v20 = vcombine.low %v468_v5, %v472_v6  ;;  %v497_v50 = vld [vmem:[#allocation8 + $0x268] sm:$0xff] }
  0x9b   :  { %343 = vmatpush1.bf16.msra.mxu0 %v10125_v22  ;;  %384 = vmatpush1.bf16.msra.mxu1 %v10149_v40  ;;  %v480_v14 = vld [vmem:[#allocation8 + $0x1e0] sm:$0xff]  ;;  %v8854_v40 = vcombine.low %v469_v25, %v473_v26  ;;  %v501_v57 = vld [vmem:[#allocation8 + $0x288] sm:$0xff] }
  0x9c   :  { %344 = vmatprep.subr.bf16.mxu0 %v10126_v24  ;;  %385 = vmatprep.subr.bf16.mxu1 %v10150_v41  ;;  %v484_v21 = vld [vmem:[#allocation8 + $0x200] sm:$0xff]  ;;  %v8861_v23 = vcombine.high %v476_v13, %v480_v14  ;;  %v8838_v24 = vcombine.low %v453_v9, %v457_v10  ;;  %v485_v41 = vld [vmem:[#allocation8 + $0x208] sm:$0xff] }
  0x9d   :  { %v488_v22 = vld [vmem:[#allocation8 + $0x220] sm:$0xff]  ;;  %v505_v58 = vld [vmem:[#allocation8 + $0x2a8] sm:$0xff] }
  0x9e   :  { %v492_v29 = vld [vmem:[#allocation8 + $0x240] sm:$0xff]  ;;  %v8869_v31 = vcombine.high %v484_v21, %v488_v22  ;;  %v509_v1 = vld [vmem:[#allocation8 + $0x2c8] sm:$0xff]  ;;  %v8886_v6 = vcombine.low %v501_v57, %v505_v58 }
  0x9f   :  { %345 = vmatpush1.bf16.msra.mxu0 %v10128_v28  ;;  %386 = vmatpush1.bf16.msra.mxu1 %v10152_v48  ;;  %v8860_v28 = vcombine.low %v476_v13, %v480_v14  ;;  %v504_v38 = vld [vmem:[#allocation8 + $0x2a0] sm:$0xff]  ;;  %v513_v2 = vld [vmem:[#allocation8 + $0x2e8] sm:$0xff] }
  0xa0   :  { %1998 = vmatprep.subr.bf16.mxu0 %v8805_v30  ;;  %2080 = vmatprep.subr.bf16.mxu1 %v8807_v49  ;;  %v496_v30 = vld [vmem:[#allocation8 + $0x260] sm:$0xff]  ;;  %v493_v49 = vld [vmem:[#allocation8 + $0x248] sm:$0xff]  ;;  %v8895_v9 = vcombine.high %v509_v1, %v513_v2 }
  0xa1   :  { %v8877_v39 = vcombine.high %v492_v29, %v496_v30  ;;  %v8876_v44 = vcombine.low %v492_v29, %v496_v30  ;;  %v512_v46 = vld [vmem:[#allocation8 + $0x2e0] sm:$0xff]  ;;  %v529_v13 = vld [vmem:[#allocation8 + $0x368] sm:$0xff] }
  0xa2   :  { %363 = vmatmul.mubr.bf16.vlgmr.msra.gmra.mrb[0].mxu0 %v115_v34  ;;  %404 = vmatmul.mubr.bf16.vlgmr.msra.gmra.mrb[0].mxu1 %v115_v34  ;;  %v481_v34 = vld [vmem:[#allocation8 + $0x1e8] sm:$0xff]  ;;  %v520_v54 = vld [vmem:[#allocation8 + $0x320] sm:$0xff] }
  0xa3   :  { %1999 = vmatpush1.bf16.msra.mxu0 %v8804_v36  ;;  %2081 = vmatpush1.bf16.msra.mxu1 %v8806_v56  ;;  %v8868_v36 = vcombine.low %v484_v21, %v488_v22  ;;  %v8863_v43 = vcombine.high %v477_v33, %v481_v34  ;;  %v8862_v48 = vcombine.low %v477_v33, %v481_v34  ;;  %v524_v61 = vld [vmem:[#allocation8 + $0x340] sm:$0xff]  ;;  %v537_v22 = vld [vmem:[#allocation8 + $0x3a8] sm:$0xff] }
  0xa4   :  { %2000 = vmatprep.subr.bf16.mxu0 %v8813_v37  ;;  %2082 = vmatprep.subr.bf16.mxu1 %v8815_v59  ;;  %v500_v37 = vld [vmem:[#allocation8 + $0x280] sm:$0xff]  ;;  %v8879_v59 = vcombine.high %v493_v49, %v497_v50  ;;  %v545_v30 = vld [vmem:[#allocation8 + $0x3e8] sm:$0xff] }
  0xa5   :  { %v8885_v47 = vcombine.high %v500_v37, %v504_v38  ;;  %v528_v62 = vld [vmem:[#allocation8 + $0x360] sm:$0xff] }
  0xa6   :  { %v8909_v5 = vcombine.high %v524_v61, %v528_v62  ;;  %v8908_v10 = vcombine.low %v524_v61, %v528_v62  ;;  %v532_v18 = vld [vmem:[#allocation8 + $0x380] sm:$0xff] }
  0xa7   :  { %2001 = vmatpush1.bf16.msra.mxu0 %v8812_v42  ;;  %2083 = vmatpush1.bf16.msra.mxu1 %v8814_v0  ;;  %v489_v42 = vld [vmem:[#allocation8 + $0x228] sm:$0xff]  ;;  %v8878_v0 = vcombine.low %v493_v49, %v497_v50  ;;  %v540_v26 = vld [vmem:[#allocation8 + $0x3c0] sm:$0xff] }
  0xa8   :  { %2002 = vmatprep.subr.bf16.mxu0 %v8821_v45  ;;  %2084 = vmatprep.subr.bf16.mxu1 %v8823_v3  ;;  %v508_v45 = vld [vmem:[#allocation8 + $0x2c0] sm:$0xff]  ;;  %v8871_v51 = vcombine.high %v485_v41, %v489_v42  ;;  %v8870_v56 = vcombine.low %v485_v41, %v489_v42  ;;  %v8887_v3 = vcombine.high %v501_v57, %v505_v58  ;;  %v150_v42 = vlaneseq  ;;  %v557_v58 = vld [vmem:[#allocation8 + $0x448] sm:$0xff] }
  0xa9   :  { %v8893_v55 = vcombine.high %v508_v45, %v512_v46  ;;  %v548_v34 = vld [vmem:[#allocation8 + $0x400] sm:$0xff] }
  0xaa   :  { %v560_v57 = vld [vmem:[#allocation8 + $0x460] sm:$0xff] }
  0xab   :  { %2003 = vmatpush1.bf16.msra.mxu0 %v8820_v52  ;;  %2085 = vmatpush1.bf16.msra.mxu1 %v8822_v8  ;;  %v8884_v52 = vcombine.low %v500_v37, %v504_v38  ;;  %v521_v8 = vld [vmem:[#allocation8 + $0x328] sm:$0xff] }
  0xac   :  { %2004 = vmatprep.subr.bf16.mxu0 %v8829_v53  ;;  %2086 = vmatprep.subr.bf16.mxu1 %v8831_v11  ;;  %v516_v53 = vld [vmem:[#allocation8 + $0x300] sm:$0xff]  ;;  %v8894_v11 = vcombine.low %v509_v1, %v513_v2  ;;  %v553_v38 = vld [vmem:[#allocation8 + $0x428] sm:$0xff] }
  0xad   :  { %v564_v2 = vld [vmem:[#allocation8 + $0x480] sm:$0xff] }
  0xaf   :  { %2005 = vmatpush1.bf16.msra.mxu0 %v8828_v60  ;;  %2087 = vmatpush1.bf16.msra.mxu1 %v8830_v16  ;;  %v8892_v60 = vcombine.low %v508_v45, %v512_v46 }
  0xb0   :  { %2006 = vmatprep.subr.bf16.mxu0 %v8837_v63  ;;  %2088 = vmatprep.subr.bf16.mxu1 %v8839_v19  ;;  %v8901_v63 = vcombine.high %v516_v53, %v520_v54  ;;  %v536_v19 = vld [vmem:[#allocation8 + $0x3a0] sm:$0xff] }
  0xb1   :  { %v8917_v21 = vcombine.high %v532_v18, %v536_v19 }
  0xb3   :  { %2007 = vmatpush1.bf16.msra.mxu0 %v8836_v4  ;;  %2089 = vmatpush1.bf16.msra.mxu1 %v8838_v24  ;;  %v8900_v4 = vcombine.low %v516_v53, %v520_v54 }
  0xb4   :  { %2008 = vmatprep.subr.bf16.mxu0 %v8845_v7  ;;  %2090 = vmatprep.subr.bf16.mxu1 %v8847_v27  ;;  %v517_v7 = vld [vmem:[#allocation8 + $0x308] sm:$0xff]  ;;  %v544_v27 = vld [vmem:[#allocation8 + $0x3e0] sm:$0xff] }
  0xb5   :  { %v8903_v14 = vcombine.high %v517_v7, %v521_v8  ;;  %v8925_v29 = vcombine.high %v540_v26, %v544_v27 }
  0xb7   :  { %2009 = vmatpush1.bf16.msra.mxu0 %v8844_v12  ;;  %2091 = vmatpush1.bf16.msra.mxu1 %v8846_v32  ;;  %v525_v12 = vld [vmem:[#allocation8 + $0x348] sm:$0xff] }
  0xb8   :  { %2010 = vmatprep.subr.bf16.mxu0 %v8853_v15  ;;  %2092 = vmatprep.subr.bf16.mxu1 %v8855_v35  ;;  %v8902_v15 = vcombine.low %v517_v7, %v521_v8  ;;  %v8911_v16 = vcombine.high %v525_v12, %v529_v13  ;;  %v8910_v17 = vcombine.low %v525_v12, %v529_v13  ;;  %v552_v35 = vld [vmem:[#allocation8 + $0x420] sm:$0xff] }
  0xb9   :  { %v8933_v37 = vcombine.high %v548_v34, %v552_v35  ;;  %v576_v13 = vld [vmem:[#allocation8 + $0x4e0] sm:$0xff] }
  0xbb   :  { %2011 = vmatpush1.bf16.msra.mxu0 %v8852_v20  ;;  %2093 = vmatpush1.bf16.msra.mxu1 %v8854_v40  ;;  %v533_v20 = vld [vmem:[#allocation8 + $0x388] sm:$0xff] }
  0xbc   :  { %2012 = vmatprep.subr.bf16.mxu0 %v8861_v23  ;;  %2094 = vmatprep.subr.bf16.mxu1 %v8863_v43  ;;  %v8916_v23 = vcombine.low %v532_v18, %v536_v19  ;;  %v8918_v24 = vcombine.low %v533_v20, %v537_v22  ;;  %v8919_v25 = vcombine.high %v533_v20, %v537_v22  ;;  %v11696_v43 = vshrl.u32 %v150_v42, 7  ;;  %v596_v42 = vld [vmem:[#allocation8 + $0x580] sm:$0xff] }
  0xbe   :  { %v11701_v45 = vsub.s32 0, %v11696_v43  ;;  %v11704_v46 = vsub.s32 1, %v11696_v43  ;;  %v11711_v61 = vsub.s32 3, %v11696_v43 }
  0xbf   :  { %2013 = vmatpush1.bf16.msra.mxu0 %v8860_v28  ;;  %2095 = vmatpush1.bf16.msra.mxu1 %v8862_v48  ;;  %v541_v28 = vld [vmem:[#allocation8 + $0x3c8] sm:$0xff] }
  0xc0   :  { %2014 = vmatprep.subr.bf16.mxu0 %v8869_v31  ;;  %2096 = vmatprep.subr.bf16.mxu1 %v8871_v51  ;;  %v8924_v31 = vcombine.low %v540_v26, %v544_v27  ;;  %v8926_v32 = vcombine.low %v541_v28, %v545_v30  ;;  %v8927_v33 = vcombine.high %v541_v28, %v545_v30  ;;  %v581_v26 = vld [vmem:[#allocation8 + $0x508] sm:$0xff] }
  0xc1   :  { %v585_v28 = vld [vmem:[#allocation8 + $0x528] sm:$0xff] }
  0xc3   :  { %2015 = vmatpush1.bf16.msra.mxu0 %v8868_v36  ;;  %2097 = vmatpush1.bf16.msra.mxu1 %v8870_v56  ;;  %v549_v36 = vld [vmem:[#allocation8 + $0x408] sm:$0xff]  ;;  %v556_v56 = vld [vmem:[#allocation8 + $0x440] sm:$0xff] }
  0xc4   :  { %2016 = vmatprep.subr.bf16.mxu0 %v8877_v39  ;;  %2098 = vmatprep.subr.bf16.mxu1 %v8879_v59  ;;  %v8932_v39 = vcombine.low %v548_v34, %v552_v35  ;;  %v8934_v40 = vcombine.low %v549_v36, %v553_v38  ;;  %v8935_v41 = vcombine.high %v549_v36, %v553_v38  ;;  %v588_v34 = vld [vmem:[#allocation8 + $0x540] sm:$0xff]  ;;  %v589_v36 = vld [vmem:[#allocation8 + $0x548] sm:$0xff] }
  0xc5   :  { %v8940_v7 = vcombine.low %v556_v56, %v560_v57  ;;  %v592_v35 = vld [vmem:[#allocation8 + $0x560] sm:$0xff] }
  0xc7   :  { %2017 = vmatpush1.bf16.msra.mxu0 %v8876_v44  ;;  %2099 = vmatpush1.bf16.msra.mxu1 %v8878_v0  ;;  %v11698_v44 = vld [vmem:[#allocation7] sm:$0xf]  ;;  %v8941_v0 = vcombine.high %v556_v56, %v560_v57  ;;  %v605_v56 = vld [vmem:[#allocation8 + $0x5c8] sm:$0xff] }
  0xc8   :  { %2018 = vmatprep.subr.bf16.mxu0 %v8885_v47  ;;  %2100 = vmatprep.subr.bf16.mxu1 %v8887_v3  ;;  %v153_v47 = vrot.slane %v11698_v44, %v11701_v45  ;;  %v157_v48 = vrot.slane %v11698_v44, %v11704_v46  ;;  %v568_v3 = vld [vmem:[#allocation8 + $0x4a0] sm:$0xff]  ;;  %v609_v57 = vld [vmem:[#allocation8 + $0x5e8] sm:$0xff] }
  0xc9   :  { %v8948_v19 = vcombine.low %v564_v2, %v568_v3 }
  0xcb   :  { %2019 = vmatpush1.bf16.msra.mxu0 %v8884_v52  ;;  %2101 = vmatpush1.bf16.msra.mxu1 %v8886_v6  ;;  %v165_v6 = vrot.slane %v11698_v44, %v11711_v61 }
  0xcc   :  { %2020 = vmatprep.subr.bf16.mxu0 %v8893_v55  ;;  %2102 = vmatprep.subr.bf16.mxu1 %v8895_v9  ;;  %v572_v9 = vld [vmem:[#allocation8 + $0x4c0] sm:$0xff] }
  0xcd   :  { %v8957_v22 = vcombine.high %v572_v9, %v576_v13  ;;  %v8956_v30 = vcombine.low %v572_v9, %v576_v13  ;;  %v620_v9 = vld [vmem:[#allocation8 + $0x640] sm:$0xff]  ;;  %v625_v13 = vld [vmem:[#allocation8 + $0x668] sm:$0xff] }
  0xcf   :  { %2021 = vmatpush1.bf16.msra.mxu0 %v8892_v60  ;;  %2103 = vmatpush1.bf16.msra.mxu1 %v8894_v11  ;;  %v561_v60 = vld [vmem:[#allocation8 + $0x468] sm:$0xff] }
  0xd0   :  { %2022 = vmatprep.subr.bf16.mxu0 %v8901_v63  ;;  %2104 = vmatprep.subr.bf16.mxu1 %v8903_v14  ;;  %v8943_v1 = vcombine.high %v557_v58, %v561_v60  ;;  %v8942_v8 = vcombine.low %v557_v58, %v561_v60  ;;  %v573_v14 = vld [vmem:[#allocation8 + $0x4c8] sm:$0xff] }
  0xd3   :  { %2023 = vmatpush1.bf16.msra.mxu0 %v8900_v4  ;;  %2105 = vmatpush1.bf16.msra.mxu1 %v8902_v15  ;;  %v565_v4 = vld [vmem:[#allocation8 + $0x488] sm:$0xff] }
  0xd4   :  { %2024 = vmatprep.subr.bf16.mxu0 %v8909_v5  ;;  %2106 = vmatprep.subr.bf16.mxu1 %v8911_v16  ;;  %v569_v5 = vld [vmem:[#allocation8 + $0x4a8] sm:$0xff] }
  0xd5   :  { %v8951_v11 = vcombine.high %v565_v4, %v569_v5  ;;  %v577_v15 = vld [vmem:[#allocation8 + $0x4e8] sm:$0xff]  ;;  %v8950_v20 = vcombine.low %v565_v4, %v569_v5 }
  0xd6   :  { %v617_v4 = vld [vmem:[#allocation8 + $0x628] sm:$0xff] }
  0xd7   :  { %2025 = vmatpush1.bf16.msra.mxu0 %v8908_v10  ;;  %2107 = vmatpush1.bf16.msra.mxu1 %v8910_v17  ;;  %v8949_v10 = vcombine.high %v564_v2, %v568_v3  ;;  %v616_v2 = vld [vmem:[#allocation8 + $0x620] sm:$0xff]  ;;  %v613_v3 = vld [vmem:[#allocation8 + $0x608] sm:$0xff] }
  0xd8   :  { %2026 = vmatprep.subr.bf16.mxu0 %v8917_v21  ;;  %2108 = vmatprep.subr.bf16.mxu1 %v8919_v25  ;;  %v584_v25 = vld [vmem:[#allocation8 + $0x520] sm:$0xff] }
  0xdb   :  { %2027 = vmatpush1.bf16.msra.mxu0 %v8916_v23  ;;  %2109 = vmatpush1.bf16.msra.mxu1 %v8918_v24  ;;  %v8959_v23 = vcombine.high %v573_v14, %v577_v15  ;;  %v580_v24 = vld [vmem:[#allocation8 + $0x500] sm:$0xff] }
  0xdc   :  { %2028 = vmatprep.subr.bf16.mxu0 %v8925_v29  ;;  %2110 = vmatprep.subr.bf16.mxu1 %v8927_v33  ;;  %v8967_v33 = vcombine.high %v581_v26, %v585_v28  ;;  %v8964_v38 = vcombine.low %v580_v24, %v584_v25 }
  0xdf   :  { %2029 = vmatpush1.bf16.msra.mxu0 %v8924_v31  ;;  %2111 = vmatpush1.bf16.msra.mxu1 %v8926_v32  ;;  %v8958_v31 = vcombine.low %v573_v14, %v577_v15  ;;  %v8965_v32 = vcombine.high %v580_v24, %v584_v25  ;;  %v8998_v15 = vcombine.low %v613_v3, %v617_v4 }
  0xe0   :  { %2039 = vmatprep.subr.bf16.mxu0 %v8933_v37  ;;  %2121 = vmatprep.subr.bf16.mxu1 %v8935_v41  ;;  %v593_v37 = vld [vmem:[#allocation8 + $0x568] sm:$0xff] }
  0xe1   :  { %v8975_v41 = vcombine.high %v589_v36, %v593_v37 }
 0x175   :  { %v364_v49 = vpop.f32.mrb[0].mxu0  ;;  %v11723_v12 = vpop.f32.mrb[0].mxu1 }
 0x176   :  { %v365_v50 = vadd.f32 %v364_v49, %v153_v47  ;;  %v366_v51 = vpop.f32.mrb[1].mxu0  ;;  %v407_v16 = vpop.f32.mrb[1].mxu1  ;;  %v600_v47 = vld [vmem:[#allocation8 + $0x5a0] sm:$0xff]  ;;  %v601_v49 = vld [vmem:[#allocation8 + $0x5a8] sm:$0xff] }
 0x177   :  { %v367_v52 = vadd.f32 %v366_v51, %v157_v48  ;;  %v368_v53 = vpop.f32.mrb[2].mxu0  ;;  %v408_v17 = vadd.f32 %v407_v16, %v165_v6  ;;  %v409_v18 = vpop.f32.mrb[2].mxu1  ;;  %v597_v48 = vld [vmem:[#allocation8 + $0x588] sm:$0xff]  ;;  %v8974_v51 = vcombine.low %v589_v36, %v593_v37  ;;  %v8980_v58 = vcombine.low %v596_v42, %v600_v47  ;;  %v648_v36 = vld [vmem:[#allocation8 + $0x720] sm:$0xff] }
 0x178   :  { %v412_v54 = vmax.f32 %v365_v50, 0.0  ;;  %v369_v55 = vpop.f32.mrb[3].mxu0  ;;  %v410_v21 = vpop.f32.mrb[3].mxu1  ;;  %v8972_v50 = vcombine.low %v588_v34, %v592_v35  ;;  %v8983_v53 = vcombine.high %v597_v48, %v601_v49  ;;  %v8990_v6 = vcombine.low %v605_v56, %v609_v57  ;;  %v628_v18 = vld [vmem:[#allocation8 + $0x680] sm:$0xff]  ;;  %v645_v37 = vld [vmem:[#allocation8 + $0x708] sm:$0xff] }
 0x179   :  { %v413_v59 = vmax.f32 %v367_v52, 0.0  ;;  %v415_v27 = vmax.f32 %v408_v17, 0.0  ;;  %v8981_v52 = vcombine.high %v596_v42, %v600_v47  ;;  %v608_v55 = vld [vmem:[#allocation8 + $0x5e0] sm:$0xff]  ;;  %v633_v21 = vld [vmem:[#allocation8 + $0x6a8] sm:$0xff] }
 0x17a   :  { %v11715_v63 = vpack.c.bf16 %v412_v54, %v412_v54  ;;  %v604_v54 = vld [vmem:[#allocation8 + $0x5c0] sm:$0xff] }
 0x17b   :  { %v11713_v62 = vpack.c.bf16 %v413_v59, %v413_v59  ;;  %v11725_v29 = vpack.c.bf16 %v415_v27, %v415_v27  ;;  %v8982_v59 = vcombine.low %v597_v48, %v601_v49  ;;  %v8989_v60 = vcombine.high %v604_v54, %v608_v55  ;;  %v640_v27 = vld [vmem:[#allocation8 + $0x6e0] sm:$0xff]  ;;  %v653_v49 = vld [vmem:[#allocation8 + $0x748] sm:$0xff] }
 0x17c   :  { %v8988_v5 = vcombine.low %v604_v54, %v608_v55  ;;  %v652_v47 = vld [vmem:[#allocation8 + $0x740] sm:$0xff] }
 0x17d   :  { %2030 = vmatprep.mubr.bf16.mxu0 %v11713_v62  ;;  %2112 = vmatprep.mubr.bf16.mxu1 %v11713_v62  ;;  %v656_v48 = vld [vmem:[#allocation8 + $0x760] sm:$0xff] }
 0x17e   :  { %2031 = vmatmul.mubr.bf16.vlgmr.msra.gmra.mrb[4].mxu0 %v11715_v63  ;;  %2113 = vmatmul.mubr.bf16.vlgmr.msra.gmra.mrb[4].mxu1 %v11715_v63  ;;  %v9037_v54 = vcombine.high %v652_v47, %v656_v48 }
 0x17f   :  { %2040 = vmatpush1.bf16.msra.mxu0 %v8932_v39  ;;  %2122 = vmatpush1.bf16.msra.mxu1 %v8934_v40  ;;  %v8966_v39 = vcombine.low %v581_v26, %v585_v28  ;;  %v8973_v40 = vcombine.high %v588_v34, %v592_v35  ;;  %v636_v26 = vld [vmem:[#allocation8 + $0x6c0] sm:$0xff]  ;;  %v637_v28 = vld [vmem:[#allocation8 + $0x6c8] sm:$0xff] }
 0x180   :  { %2041 = vmatprep.subr.bf16.mxu0 %v8941_v0  ;;  %2123 = vmatprep.subr.bf16.mxu1 %v8943_v1  ;;  %v8991_v0 = vcombine.high %v605_v56, %v609_v57  ;;  %v612_v1 = vld [vmem:[#allocation8 + $0x600] sm:$0xff] }
 0x181   :  { %2071 = vmatprep.mubr.bf16.mxu0 %v11725_v29  ;;  %2153 = vmatprep.mubr.bf16.mxu1 %v11725_v29  ;;  %v8996_v14 = vcombine.low %v612_v1, %v616_v2  ;;  %v644_v35 = vld [vmem:[#allocation8 + $0x700] sm:$0xff] }
 0x182   :  { %v660_v56 = vld [vmem:[#allocation8 + $0x780] sm:$0xff] }
 0x183   :  { %2042 = vmatpush1.bf16.msra.mxu0 %v8940_v7  ;;  %2124 = vmatpush1.bf16.msra.mxu1 %v8942_v8  ;;  %v8997_v7 = vcombine.high %v612_v1, %v616_v2  ;;  %v8999_v8 = vcombine.high %v613_v3, %v617_v4  ;;  %v664_v57 = vld [vmem:[#allocation8 + $0x7a0] sm:$0xff] }
 0x184   :  { %2043 = vmatprep.subr.bf16.mxu0 %v8949_v10  ;;  %2125 = vmatprep.subr.bf16.mxu1 %v8951_v11  ;;  %v624_v10 = vld [vmem:[#allocation8 + $0x660] sm:$0xff]  ;;  %v621_v11 = vld [vmem:[#allocation8 + $0x648] sm:$0xff]  ;;  %v9045_v2 = vcombine.high %v660_v56, %v664_v57 }
 0x185   :  { %v9005_v16 = vcombine.high %v620_v9, %v624_v10  ;;  %v9007_v17 = vcombine.high %v621_v11, %v625_v13  ;;  %v668_v4 = vld [vmem:[#allocation8 + $0x7c0] sm:$0xff] }
 0x187   :  { %2044 = vmatpush1.bf16.msra.mxu0 %v8948_v19  ;;  %2126 = vmatpush1.bf16.msra.mxu1 %v8950_v20  ;;  %v632_v19 = vld [vmem:[#allocation8 + $0x6a0] sm:$0xff]  ;;  %v629_v20 = vld [vmem:[#allocation8 + $0x688] sm:$0xff] }
 0x188   :  { %2045 = vmatprep.subr.bf16.mxu0 %v8957_v22  ;;  %2127 = vmatprep.subr.bf16.mxu1 %v8959_v23  ;;  %v9004_v22 = vcombine.low %v620_v9, %v624_v10  ;;  %v9006_v23 = vcombine.low %v621_v11, %v625_v13  ;;  %v9013_v24 = vcombine.high %v628_v18, %v632_v19 }
 0x189   :  { %v9015_v25 = vcombine.high %v629_v20, %v633_v21 }
 0x18b   :  { %2046 = vmatpush1.bf16.msra.mxu0 %v8956_v30  ;;  %2128 = vmatpush1.bf16.msra.mxu1 %v8958_v31  ;;  %v641_v30 = vld [vmem:[#allocation8 + $0x6e8] sm:$0xff]  ;;  %v9012_v31 = vcombine.low %v628_v18, %v632_v19 }
 0x18c   :  { %2047 = vmatprep.subr.bf16.mxu0 %v8965_v32  ;;  %2129 = vmatprep.subr.bf16.mxu1 %v8967_v33  ;;  %v9014_v32 = vcombine.low %v629_v20, %v633_v21  ;;  %v9021_v33 = vcombine.high %v636_v26, %v640_v27  ;;  %v9023_v34 = vcombine.high %v637_v28, %v641_v30 }
 0x18f   :  { %2048 = vmatpush1.bf16.msra.mxu0 %v8964_v38  ;;  %2130 = vmatpush1.bf16.msra.mxu1 %v8966_v39  ;;  %v649_v38 = vld [vmem:[#allocation8 + $0x728] sm:$0xff]  ;;  %v9020_v39 = vcombine.low %v636_v26, %v640_v27  ;;  %v438_v26 = vld [vmem:[#allocation8 + $0x90] sm:$0xff] }
 0x190   :  { %2049 = vmatprep.subr.bf16.mxu0 %v8973_v40  ;;  %2131 = vmatprep.subr.bf16.mxu1 %v8975_v41  ;;  %v9022_v40 = vcombine.low %v637_v28, %v641_v30  ;;  %v9029_v41 = vcombine.high %v644_v35, %v648_v36  ;;  %v9031_v42 = vcombine.high %v645_v37, %v649_v38  ;;  %v442_v27 = vld [vmem:[#allocation8 + $0xb0] sm:$0xff] }
 0x193   :  { %2050 = vmatpush1.bf16.msra.mxu0 %v8972_v50  ;;  %2132 = vmatpush1.bf16.msra.mxu1 %v8974_v51  ;;  %v657_v50 = vld [vmem:[#allocation8 + $0x768] sm:$0xff]  ;;  %v9028_v51 = vcombine.low %v644_v35, %v648_v36 }
 0x194   :  { %2051 = vmatprep.subr.bf16.mxu0 %v8981_v52  ;;  %2133 = vmatprep.subr.bf16.mxu1 %v8983_v53  ;;  %v9030_v52 = vcombine.low %v645_v37, %v649_v38  ;;  %v11730_v53 = vsub.s32 2, %v11696_v43  ;;  %v9039_v55 = vcombine.high %v653_v49, %v657_v50  ;;  %v8825_v37 = vcombine.high %v438_v26, %v442_v27  ;;  %v446_v38 = vld [vmem:[#allocation8 + $0xd0] sm:$0xff] }
 0x196   :  { %v161_v1 = vrot.slane %v11698_v44, %v11730_v53  ;;  %v426_v44 = vld [vmem:[#allocation8 + $0x30] sm:$0xff] }
 0x197   :  { %2052 = vmatpush1.bf16.msra.mxu0 %v8980_v58  ;;  %2134 = vmatpush1.bf16.msra.mxu1 %v8982_v59  ;;  %v661_v58 = vld [vmem:[#allocation8 + $0x788] sm:$0xff] }
 0x198   :  { %2053 = vmatprep.subr.bf16.mxu0 %v8989_v60  ;;  %2135 = vmatprep.subr.bf16.mxu1 %v8991_v0  ;;  %v665_v59 = vld [vmem:[#allocation8 + $0x7a8] sm:$0xff]  ;;  %v9036_v60 = vcombine.low %v652_v47, %v656_v48  ;;  %v9038_v0 = vcombine.low %v653_v49, %v657_v50  ;;  %v406_v10 = vadd.f32 %v11723_v12, %v161_v1  ;;  %v431_v12 = vld [vmem:[#allocation8 + $0x58] sm:$0xff]  ;;  %v454_v50 = vld [vmem:[#allocation8 + $0x110] sm:$0xff] }
 0x199   :  { %v9047_v3 = vcombine.high %v661_v58, %v665_v59  ;;  %v9046_v9 = vcombine.low %v661_v58, %v665_v59  ;;  %v8824_v47 = vcombine.low %v438_v26, %v442_v27  ;;  %v462_v58 = vld [vmem:[#allocation8 + $0x150] sm:$0xff]  ;;  %v467_v1 = vld [vmem:[#allocation8 + $0x178] sm:$0xff] }
 0x19a   :  { %v414_v19 = vmax.f32 %v406_v10, 0.0  ;;  %v466_v59 = vld [vmem:[#allocation8 + $0x170] sm:$0xff] }
 0x19b   :  { %2054 = vmatpush1.bf16.msra.mxu0 %v8988_v5  ;;  %2136 = vmatpush1.bf16.msra.mxu1 %v8990_v6  ;;  %v672_v5 = vld [vmem:[#allocation8 + $0x7e0] sm:$0xff]  ;;  %v669_v6 = vld [vmem:[#allocation8 + $0x7c8] sm:$0xff]  ;;  %v8848_v10 = vcombine.low %v462_v58, %v466_v59 }
 0x19c   :  { %2055 = vmatprep.subr.bf16.mxu0 %v8997_v7  ;;  %2137 = vmatprep.subr.bf16.mxu1 %v8999_v8  ;;  %v673_v7 = vld [vmem:[#allocation8 + $0x7e8] sm:$0xff]  ;;  %v9044_v8 = vcombine.low %v660_v56, %v664_v57  ;;  %v9053_v11 = vcombine.high %v668_v4, %v672_v5  ;;  %v11735_v28 = vpack.c.bf16 %v414_v19, %v414_v19 }
 0x19d   :  { %v9055_v13 = vcombine.high %v669_v6, %v673_v7  ;;  %v9054_v18 = vcombine.low %v669_v6, %v673_v7  ;;  %v474_v6 = vld [vmem:[#allocation8 + $0x1b0] sm:$0xff]  ;;  %v471_v7 = vld [vmem:[#allocation8 + $0x198] sm:$0xff] }
 0x19f   :  { %2056 = vmatpush1.bf16.msra.mxu0 %v8996_v14  ;;  %2138 = vmatpush1.bf16.msra.mxu1 %v8998_v15  ;;  %v422_v14 = vld [vmem:[#allocation8 + $0x10] sm:$0xff]  ;;  %v423_v15 = vld [vmem:[#allocation8 + $0x18] sm:$0xff] }
 0x1a0   :  { %2057 = vmatprep.subr.bf16.mxu0 %v9005_v16  ;;  %2139 = vmatprep.subr.bf16.mxu1 %v9007_v17  ;;  %v427_v16 = vld [vmem:[#allocation8 + $0x38] sm:$0xff]  ;;  %v9052_v17 = vcombine.low %v668_v4, %v672_v5  ;;  %v8809_v20 = vcombine.high %v422_v14, %v426_v44  ;;  %v8849_v4 = vcombine.high %v462_v58, %v466_v59  ;;  %v470_v5 = vld [vmem:[#allocation8 + $0x190] sm:$0xff] }
 0x1a1   :  { %v8811_v21 = vcombine.high %v423_v15, %v427_v16  ;;  %v8810_v30 = vcombine.low %v423_v15, %v427_v16  ;;  %v479_v15 = vld [vmem:[#allocation8 + $0x1d8] sm:$0xff]  ;;  %v518_v58 = vld [vmem:[#allocation8 + $0x310] sm:$0xff] }
 0x1a2   :  { %v522_v59 = vld [vmem:[#allocation8 + $0x330] sm:$0xff] }
 0x1a3   :  { %2058 = vmatpush1.bf16.msra.mxu0 %v9004_v22  ;;  %2140 = vmatpush1.bf16.msra.mxu1 %v9006_v23  ;;  %v430_v22 = vld [vmem:[#allocation8 + $0x50] sm:$0xff] }
 0x1a4   :  { %2059 = vmatprep.subr.bf16.mxu0 %v9013_v24  ;;  %2141 = vmatprep.subr.bf16.mxu1 %v9015_v25  ;;  %v434_v23 = vld [vmem:[#allocation8 + $0x70] sm:$0xff]  ;;  %v435_v24 = vld [vmem:[#allocation8 + $0x78] sm:$0xff]  ;;  %v8808_v25 = vcombine.low %v422_v14, %v426_v44 }
 0x1a5   :  { %v8816_v35 = vcombine.low %v430_v22, %v434_v23  ;;  %v8818_v36 = vcombine.low %v431_v12, %v435_v24  ;;  %v478_v14 = vld [vmem:[#allocation8 + $0x1d0] sm:$0xff] }
 0x1a6   :  { %v482_v44 = vld [vmem:[#allocation8 + $0x1f0] sm:$0xff] }
 0x1a7   :  { %2060 = vmatpush1.bf16.msra.mxu0 %v9012_v31  ;;  %2142 = vmatpush1.bf16.msra.mxu1 %v9014_v32  ;;  %v439_v31 = vld [vmem:[#allocation8 + $0x98] sm:$0xff] }
 0x1a8   :  { %2061 = vmatprep.subr.bf16.mxu0 %v9021_v33  ;;  %2143 = vmatprep.subr.bf16.mxu1 %v9023_v34  ;;  %v443_v32 = vld [vmem:[#allocation8 + $0xb8] sm:$0xff]  ;;  %v8817_v33 = vcombine.high %v430_v22, %v434_v23  ;;  %v8819_v34 = vcombine.high %v431_v12, %v435_v24  ;;  %v490_v22 = vld [vmem:[#allocation8 + $0x230] sm:$0xff] }
 0x1a9   :  { %v8826_v48 = vcombine.low %v439_v31, %v443_v32  ;;  %v487_v23 = vld [vmem:[#allocation8 + $0x218] sm:$0xff] }
 0x1aa   :  { %v491_v24 = vld [vmem:[#allocation8 + $0x238] sm:$0xff] }
 0x1ab   :  { %2062 = vmatpush1.bf16.msra.mxu0 %v9020_v39  ;;  %2144 = vmatpush1.bf16.msra.mxu1 %v9022_v40  ;;  %v450_v39 = vld [vmem:[#allocation8 + $0xf0] sm:$0xff]  ;;  %v8827_v40 = vcombine.high %v439_v31, %v443_v32  ;;  %v495_v32 = vld [vmem:[#allocation8 + $0x258] sm:$0xff] }
 0x1ac   :  { %2063 = vmatprep.subr.bf16.mxu0 %v9029_v41  ;;  %2145 = vmatprep.subr.bf16.mxu1 %v9031_v42  ;;  %v447_v41 = vld [vmem:[#allocation8 + $0xd8] sm:$0xff]  ;;  %v8833_v49 = vcombine.high %v446_v38, %v450_v39  ;;  %v498_v31 = vld [vmem:[#allocation8 + $0x270] sm:$0xff] }
 0x1ad   :  { %v451_v42 = vld [vmem:[#allocation8 + $0xf8] sm:$0xff] }
 0x1ae   :  { %v8834_v56 = vcombine.low %v447_v41, %v451_v42 }
 0x1af   :  { %2064 = vmatpush1.bf16.msra.mxu0 %v9028_v51  ;;  %2146 = vmatpush1.bf16.msra.mxu1 %v9030_v52  ;;  %v458_v51 = vld [vmem:[#allocation8 + $0x130] sm:$0xff]  ;;  %v455_v52 = vld [vmem:[#allocation8 + $0x118] sm:$0xff] }
 0x1b0   :  { %2065 = vmatprep.subr.bf16.mxu0 %v9037_v54  ;;  %2147 = vmatprep.subr.bf16.mxu1 %v9039_v55  ;;  %v459_v54 = vld [vmem:[#allocation8 + $0x138] sm:$0xff]  ;;  %v8832_v55 = vcombine.low %v446_v38, %v450_v39  ;;  %v8841_v57 = vcombine.high %v454_v50, %v458_v51  ;;  %v502_v38 = vld [vmem:[#allocation8 + $0x290] sm:$0xff] }
 0x1b1   :  { %v506_v39 = vld [vmem:[#allocation8 + $0x2b0] sm:$0xff] }
 0x1b3   :  { %2066 = vmatpush1.bf16.msra.mxu0 %v9036_v60  ;;  %2148 = vmatpush1.bf16.msra.mxu1 %v9038_v0  ;;  %v463_v60 = vld [vmem:[#allocation8 + $0x158] sm:$0xff]  ;;  %v8843_v0 = vcombine.high %v455_v52, %v459_v54 }
 0x1b4   :  { %2067 = vmatprep.subr.bf16.mxu0 %v9045_v2  ;;  %2149 = vmatprep.subr.bf16.mxu1 %v9047_v3  ;;  %v8840_v2 = vcombine.low %v454_v50, %v458_v51  ;;  %v8842_v3 = vcombine.low %v455_v52, %v459_v54  ;;  %v510_v50 = vld [vmem:[#allocation8 + $0x2d0] sm:$0xff]  ;;  %v511_v52 = vld [vmem:[#allocation8 + $0x2d8] sm:$0xff] }
 0x1b5   :  { %v514_v51 = vld [vmem:[#allocation8 + $0x2f0] sm:$0xff]  ;;  %v515_v54 = vld [vmem:[#allocation8 + $0x2f8] sm:$0xff] }
 0x1b7   :  { %2068 = vmatpush1.bf16.msra.mxu0 %v9044_v8  ;;  %2150 = vmatpush1.bf16.msra.mxu1 %v9046_v9  ;;  %v8851_v8 = vcombine.high %v463_v60, %v467_v1  ;;  %v475_v9 = vld [vmem:[#allocation8 + $0x1b8] sm:$0xff] }
 0x1b8   :  { %2069 = vmatprep.subr.bf16.mxu0 %v9053_v11  ;;  %2151 = vmatprep.subr.bf16.mxu1 %v9055_v13  ;;  %v8850_v11 = vcombine.low %v463_v60, %v467_v1  ;;  %v8857_v13 = vcombine.high %v470_v5, %v474_v6  ;;  %v8859_v16 = vcombine.high %v471_v7, %v475_v9  ;;  %v519_v60 = vld [vmem:[#allocation8 + $0x318] sm:$0xff] }
 0x1b9   :  { %v8858_v19 = vcombine.low %v471_v7, %v475_v9  ;;  %v523_v1 = vld [vmem:[#allocation8 + $0x338] sm:$0xff] }
 0x1ba   :  { %v527_v7 = vld [vmem:[#allocation8 + $0x358] sm:$0xff] }
 0x1bb   :  { %2070 = vmatpush1.bf16.msra.mxu0 %v9052_v17  ;;  %2152 = vmatpush1.bf16.msra.mxu1 %v9054_v18  ;;  %v483_v17 = vld [vmem:[#allocation8 + $0x1f8] sm:$0xff]  ;;  %v8856_v18 = vcombine.low %v470_v5, %v474_v6  ;;  %v526_v5 = vld [vmem:[#allocation8 + $0x350] sm:$0xff] }
 0x1bc   :  { %2162 = vmatprep.subr.bf16.mxu0 %v8809_v20  ;;  %2244 = vmatprep.subr.bf16.mxu1 %v8811_v21  ;;  %v8865_v20 = vcombine.high %v478_v14, %v482_v44  ;;  %v486_v21 = vld [vmem:[#allocation8 + $0x210] sm:$0xff]  ;;  %v8867_v12 = vcombine.high %v479_v15, %v483_v17  ;;  %v8866_v26 = vcombine.low %v479_v15, %v483_v17  ;;  %v531_v9 = vld [vmem:[#allocation8 + $0x378] sm:$0xff] }
 0x1bd   :  { %v8873_v27 = vcombine.high %v486_v21, %v490_v22  ;;  %v530_v6 = vld [vmem:[#allocation8 + $0x370] sm:$0xff]  ;;  %v535_v15 = vld [vmem:[#allocation8 + $0x398] sm:$0xff] }
 0x1be   :  { %2072 = vmatmul.mubr.bf16.vlgmr.msra.gmra.mrb[4].mxu0 %v11735_v28  ;;  %2154 = vmatmul.mubr.bf16.vlgmr.msra.gmra.mrb[4].mxu1 %v11735_v28  ;;  %v539_v17 = vld [vmem:[#allocation8 + $0x3b8] sm:$0xff] }
 0x1bf   :  { %2163 = vmatpush1.bf16.msra.mxu0 %v8808_v25  ;;  %2194 = vmatprep.mubr.bf16.mxu0 %v11713_v62  ;;  %v8864_v25 = vcombine.low %v478_v14, %v482_v44  ;;  %v534_v14 = vld [vmem:[#allocation8 + $0x390] sm:$0xff] }
 0x1c0   :  { %2245 = vmatpush1.bf16.msra.mxu1 %v8810_v30  ;;  %2276 = vmatprep.mubr.bf16.mxu1 %v11713_v62  ;;  %v8835_v62 = vcombine.high %v447_v41, %v451_v42  ;;  %v494_v30 = vld [vmem:[#allocation8 + $0x250] sm:$0xff]  ;;  %v507_v42 = vld [vmem:[#allocation8 + $0x2b8] sm:$0xff] }
 0x1c1   :  { %2164 = vmatprep.subr.bf16.mxu0 %v8817_v33  ;;  %2246 = vmatprep.subr.bf16.mxu1 %v8819_v34  ;;  %v8875_v33 = vcombine.high %v487_v23, %v491_v24  ;;  %v499_v34 = vld [vmem:[#allocation8 + $0x278] sm:$0xff]  ;;  %v538_v44 = vld [vmem:[#allocation8 + $0x3b0] sm:$0xff] }
 0x1c2   :  { %v8883_v41 = vcombine.high %v495_v32, %v499_v34 }
 0x1c3   :  { %2165 = vmatpush1.bf16.msra.mxu0 %v8816_v35  ;;  %v8872_v35 = vcombine.low %v486_v21, %v490_v22  ;;  %v542_v21 = vld [vmem:[#allocation8 + $0x3d0] sm:$0xff] }
 0x1c4   :  { %2247 = vmatpush1.bf16.msra.mxu1 %v8818_v36  ;;  %2166 = vmatprep.subr.bf16.mxu0 %v8825_v37  ;;  %v8874_v36 = vcombine.low %v487_v23, %v491_v24  ;;  %v8881_v37 = vcombine.high %v494_v30, %v498_v31  ;;  %v546_v22 = vld [vmem:[#allocation8 + $0x3f0] sm:$0xff]  ;;  %v543_v23 = vld [vmem:[#allocation8 + $0x3d8] sm:$0xff] }
 0x1c5   :  { %2248 = vmatprep.subr.bf16.mxu1 %v8827_v40  ;;  %v503_v40 = vld [vmem:[#allocation8 + $0x298] sm:$0xff] }
 0x1c6   :  { %v547_v24 = vld [vmem:[#allocation8 + $0x3f8] sm:$0xff] }
 0x1c7   :  { %2167 = vmatpush1.bf16.msra.mxu0 %v8824_v47  ;;  %v8880_v47 = vcombine.low %v494_v30, %v498_v31  ;;  %v8922_v30 = vcombine.low %v535_v15, %v539_v17  ;;  %v8929_v31 = vcombine.high %v542_v21, %v546_v22 }
 0x1c8   :  { %2249 = vmatpush1.bf16.msra.mxu1 %v8826_v48  ;;  %2168 = vmatprep.subr.bf16.mxu0 %v8833_v49  ;;  %v8882_v48 = vcombine.low %v495_v32, %v499_v34  ;;  %v8889_v49 = vcombine.high %v502_v38, %v506_v39  ;;  %v551_v32 = vld [vmem:[#allocation8 + $0x418] sm:$0xff]  ;;  %v8931_v34 = vcombine.high %v543_v23, %v547_v24 }
 0x1c9   :  { %2250 = vmatprep.subr.bf16.mxu1 %v8835_v62  ;;  %v8891_v62 = vcombine.high %v503_v40, %v507_v42 }
 0x1cb   :  { %2169 = vmatpush1.bf16.msra.mxu0 %v8832_v55  ;;  %v8888_v55 = vcombine.low %v502_v38, %v506_v39  ;;  %v558_v38 = vld [vmem:[#allocation8 + $0x450] sm:$0xff] }
 0x1cc   :  { %2251 = vmatpush1.bf16.msra.mxu1 %v8834_v56  ;;  %2170 = vmatprep.subr.bf16.mxu0 %v8841_v57  ;;  %v8890_v56 = vcombine.low %v503_v40, %v507_v42  ;;  %v8897_v57 = vcombine.high %v510_v50, %v514_v51  ;;  %v562_v39 = vld [vmem:[#allocation8 + $0x470] sm:$0xff]  ;;  %v563_v42 = vld [vmem:[#allocation8 + $0x478] sm:$0xff] }
 0x1cd   :  { %2252 = vmatprep.subr.bf16.mxu1 %v8843_v0  ;;  %v8899_v0 = vcombine.high %v511_v52, %v515_v54 }
 0x1cf   :  { %2171 = vmatpush1.bf16.msra.mxu0 %v8840_v2  ;;  %v8896_v2 = vcombine.low %v510_v50, %v514_v51  ;;  %v567_v51 = vld [vmem:[#allocation8 + $0x498] sm:$0xff] }
 0x1d0   :  { %2253 = vmatpush1.bf16.msra.mxu1 %v8842_v3  ;;  %2172 = vmatprep.subr.bf16.mxu0 %v8849_v4  ;;  %v8898_v3 = vcombine.low %v511_v52, %v515_v54  ;;  %v8905_v4 = vcombine.high %v518_v58, %v522_v59  ;;  %v571_v52 = vld [vmem:[#allocation8 + $0x4b8] sm:$0xff] }
 0x1d1   :  { %2254 = vmatprep.subr.bf16.mxu1 %v8851_v8  ;;  %v8907_v8 = vcombine.high %v519_v60, %v523_v1 }
 0x1d3   :  { %2173 = vmatpush1.bf16.msra.mxu0 %v8848_v10  ;;  %v8904_v10 = vcombine.low %v518_v58, %v522_v59 }
 0x1d4   :  { %2255 = vmatpush1.bf16.msra.mxu1 %v8850_v11  ;;  %2174 = vmatprep.subr.bf16.mxu0 %v8857_v13  ;;  %v8906_v11 = vcombine.low %v519_v60, %v523_v1  ;;  %v8913_v13 = vcombine.high %v526_v5, %v530_v6  ;;  %v575_v60 = vld [vmem:[#allocation8 + $0x4d8] sm:$0xff]  ;;  %v8955_v1 = vcombine.high %v567_v51, %v571_v52 }
 0x1d5   :  { %2256 = vmatprep.subr.bf16.mxu1 %v8859_v16  ;;  %v8915_v16 = vcombine.high %v527_v7, %v531_v9 }
 0x1d7   :  { %2175 = vmatpush1.bf16.msra.mxu0 %v8856_v18  ;;  %v8912_v18 = vcombine.low %v526_v5, %v530_v6  ;;  %v583_v6 = vld [vmem:[#allocation8 + $0x518] sm:$0xff] }
 0x1d8   :  { %2257 = vmatpush1.bf16.msra.mxu1 %v8858_v19  ;;  %2176 = vmatprep.subr.bf16.mxu0 %v8865_v20  ;;  %v8914_v19 = vcombine.low %v527_v7, %v531_v9  ;;  %v8921_v20 = vcombine.high %v534_v14, %v538_v44  ;;  %v587_v7 = vld [vmem:[#allocation8 + $0x538] sm:$0xff] }
 0x1d9   :  { %2258 = vmatprep.subr.bf16.mxu1 %v8867_v12  ;;  %v8923_v12 = vcombine.high %v535_v15, %v539_v17  ;;  %v8971_v15 = vcombine.high %v583_v6, %v587_v7  ;;  %v598_v17 = vld [vmem:[#allocation8 + $0x590] sm:$0xff] }
 0x1db   :  { %2177 = vmatpush1.bf16.msra.mxu0 %v8864_v25  ;;  %v8920_v25 = vcombine.low %v534_v14, %v538_v44  ;;  %v591_v14 = vld [vmem:[#allocation8 + $0x558] sm:$0xff] }
 0x1dc   :  { %2259 = vmatpush1.bf16.msra.mxu1 %v8866_v26  ;;  %2178 = vmatprep.subr.bf16.mxu0 %v8873_v27  ;;  %v550_v26 = vld [vmem:[#allocation8 + $0x410] sm:$0xff]  ;;  %v595_v44 = vld [vmem:[#allocation8 + $0x578] sm:$0xff] }
 0x1dd   :  { %2260 = vmatprep.subr.bf16.mxu1 %v8875_v33  ;;  %v554_v27 = vld [vmem:[#allocation8 + $0x430] sm:$0xff]  ;;  %v555_v33 = vld [vmem:[#allocation8 + $0x438] sm:$0xff] }
 0x1de   :  { %v8939_v40 = vcombine.high %v551_v32, %v555_v33  ;;  %v8938_v50 = vcombine.low %v551_v32, %v555_v33  ;;  %v611_v32 = vld [vmem:[#allocation8 + $0x5f8] sm:$0xff] }
 0x1df   :  { %2179 = vmatpush1.bf16.msra.mxu0 %v8872_v35  ;;  %v8928_v35 = vcombine.low %v542_v21, %v546_v22  ;;  %v599_v21 = vld [vmem:[#allocation8 + $0x598] sm:$0xff] }
 0x1e0   :  { %2261 = vmatpush1.bf16.msra.mxu1 %v8874_v36  ;;  %2180 = vmatprep.subr.bf16.mxu0 %v8881_v37  ;;  %v8930_v36 = vcombine.low %v543_v23, %v547_v24  ;;  %v8937_v37 = vcombine.high %v550_v26, %v554_v27  ;;  %v603_v22 = vld [vmem:[#allocation8 + $0x5b8] sm:$0xff]  ;;  %v8979_v23 = vcombine.high %v591_v14, %v595_v44 }
 0x1e1   :  { %2262 = vmatprep.subr.bf16.mxu1 %v8883_v41  ;;  %v559_v41 = vld [vmem:[#allocation8 + $0x458] sm:$0xff]  ;;  %v8978_v24 = vcombine.low %v591_v14, %v595_v44 }
 0x1e2   :  { %v8947_v54 = vcombine.high %v559_v41, %v563_v42  ;;  %v8946_v58 = vcombine.low %v559_v41, %v563_v42 }
 0x1e3   :  { %2181 = vmatpush1.bf16.msra.mxu0 %v8880_v47  ;;  %v8936_v47 = vcombine.low %v550_v26, %v554_v27  ;;  %v8987_v26 = vcombine.high %v599_v21, %v603_v22  ;;  %v606_v27 = vld [vmem:[#allocation8 + $0x5d0] sm:$0xff] }
 0x1e4   :  { %2263 = vmatpush1.bf16.msra.mxu1 %v8882_v48  ;;  %2182 = vmatprep.subr.bf16.mxu0 %v8889_v49  ;;  %v566_v48 = vld [vmem:[#allocation8 + $0x490] sm:$0xff] }
 0x1e5   :  { %2264 = vmatprep.subr.bf16.mxu1 %v8891_v62  ;;  %v570_v49 = vld [vmem:[#allocation8 + $0x4b0] sm:$0xff]  ;;  %v8945_v62 = vcombine.high %v558_v38, %v562_v39 }
 0x1e6   :  { %v8953_v59 = vcombine.high %v566_v48, %v570_v49 }
 0x1e7   :  { %2183 = vmatpush1.bf16.msra.mxu0 %v8888_v55  ;;  %v8944_v55 = vcombine.low %v558_v38, %v562_v39  ;;  %v618_v38 = vld [vmem:[#allocation8 + $0x630] sm:$0xff]  ;;  %v615_v39 = vld [vmem:[#allocation8 + $0x618] sm:$0xff] }
 0x1e8   :  { %2265 = vmatpush1.bf16.msra.mxu1 %v8890_v56  ;;  %2184 = vmatprep.subr.bf16.mxu0 %v8897_v57  ;;  %v574_v56 = vld [vmem:[#allocation8 + $0x4d0] sm:$0xff] }
 0x1e9   :  { %2266 = vmatprep.subr.bf16.mxu1 %v8899_v0  ;;  %v578_v57 = vld [vmem:[#allocation8 + $0x4f0] sm:$0xff]  ;;  %v579_v0 = vld [vmem:[#allocation8 + $0x4f8] sm:$0xff] }
 0x1ea   :  { %v8961_v5 = vcombine.high %v574_v56, %v578_v57  ;;  %v8960_v9 = vcombine.low %v574_v56, %v578_v57  ;;  %v630_v56 = vld [vmem:[#allocation8 + $0x690] sm:$0xff] }
 0x1eb   :  { %2185 = vmatpush1.bf16.msra.mxu0 %v8896_v2  ;;  %v8952_v2 = vcombine.low %v566_v48, %v570_v49  ;;  %v622_v49 = vld [vmem:[#allocation8 + $0x650] sm:$0xff] }
 0x1ec   :  { %2267 = vmatpush1.bf16.msra.mxu1 %v8898_v3  ;;  %2186 = vmatprep.subr.bf16.mxu0 %v8905_v4  ;;  %v582_v3 = vld [vmem:[#allocation8 + $0x510] sm:$0xff]  ;;  %v8954_v4 = vcombine.low %v567_v51, %v571_v52  ;;  %v623_v51 = vld [vmem:[#allocation8 + $0x658] sm:$0xff] }
 0x1ed   :  { %2268 = vmatprep.subr.bf16.mxu1 %v8907_v8  ;;  %v8963_v8 = vcombine.high %v575_v60, %v579_v0  ;;  %v627_v52 = vld [vmem:[#allocation8 + $0x678] sm:$0xff]  ;;  %v634_v57 = vld [vmem:[#allocation8 + $0x6b0] sm:$0xff] }
 0x1ef   :  { %2187 = vmatpush1.bf16.msra.mxu0 %v8904_v10  ;;  %v590_v10 = vld [vmem:[#allocation8 + $0x550] sm:$0xff] }
 0x1f0   :  { %2269 = vmatpush1.bf16.msra.mxu1 %v8906_v11  ;;  %2188 = vmatprep.subr.bf16.mxu0 %v8913_v13  ;;  %v594_v11 = vld [vmem:[#allocation8 + $0x570] sm:$0xff] }
 0x1f1   :  { %2270 = vmatprep.subr.bf16.mxu1 %v8915_v16 }
 0x1f3   :  { %2189 = vmatpush1.bf16.msra.mxu0 %v8912_v18  ;;  %v602_v18 = vld [vmem:[#allocation8 + $0x5b0] sm:$0xff] }
 0x1f4   :  { %2271 = vmatpush1.bf16.msra.mxu1 %v8914_v19  ;;  %2190 = vmatprep.subr.bf16.mxu0 %v8921_v20  ;;  %v8970_v19 = vcombine.low %v583_v6, %v587_v7  ;;  %v8977_v20 = vcombine.high %v590_v10, %v594_v11  ;;  %v8984_v33 = vcombine.low %v598_v17, %v602_v18 }
 0x1f5   :  { %2272 = vmatprep.subr.bf16.mxu1 %v8923_v12  ;;  %v8976_v12 = vcombine.low %v590_v10, %v594_v11  ;;  %v9016_v7 = vcombine.low %v630_v56, %v634_v57 }
 0x1f7   :  { %2191 = vmatpush1.bf16.msra.mxu0 %v8920_v25  ;;  %v8985_v25 = vcombine.high %v598_v17, %v602_v18 }
 0x1f8   :  { %2273 = vmatpush1.bf16.msra.mxu1 %v8922_v30  ;;  %2192 = vmatprep.subr.bf16.mxu0 %v8929_v31  ;;  %v610_v30 = vld [vmem:[#allocation8 + $0x5f0] sm:$0xff]  ;;  %v607_v31 = vld [vmem:[#allocation8 + $0x5d8] sm:$0xff] }
 0x1f9   :  { %2274 = vmatprep.subr.bf16.mxu1 %v8931_v34  ;;  %v8986_v34 = vcombine.low %v599_v21, %v603_v22  ;;  %v8992_v41 = vcombine.low %v606_v27, %v610_v30  ;;  %v8994_v42 = vcombine.low %v607_v31, %v611_v32 }
 0x1fb   :  { %2193 = vmatpush1.bf16.msra.mxu0 %v8928_v35  ;;  %v8993_v35 = vcombine.high %v606_v27, %v610_v30  ;;  %v667_v27 = vld [vmem:[#allocation8 + $0x7b8] sm:$0xff] }
 0x1fc   :  { %2275 = vmatpush1.bf16.msra.mxu1 %v8930_v36  ;;  %2203 = vmatprep.subr.bf16.mxu0 %v8937_v37  ;;  %v8995_v36 = vcombine.high %v607_v31, %v611_v32  ;;  %v614_v37 = vld [vmem:[#allocation8 + $0x610] sm:$0xff] }
 0x1fd   :  { %2285 = vmatprep.subr.bf16.mxu1 %v8939_v40  ;;  %v619_v40 = vld [vmem:[#allocation8 + $0x638] sm:$0xff]  ;;  %v670_v32 = vld [vmem:[#allocation8 + $0x7d0] sm:$0xff] }
 0x1fe   :  { %2195 = vmatmul.mubr.bf16.vlgmr.msra.gmra.mrb[8].mxu0 %v11715_v63  ;;  %v9003_v48 = vcombine.high %v615_v39, %v619_v40 }
 0x1ff   :  { %2277 = vmatmul.mubr.bf16.vlgmr.msra.gmra.mrb[8].mxu1 %v11715_v63  ;;  %2204 = vmatpush1.bf16.msra.mxu0 %v8936_v47  ;;  %v586_v63 = vld [vmem:[#allocation8 + $0x530] sm:$0xff]  ;;  %v9001_v47 = vcombine.high %v614_v37, %v618_v38 }
 0x200   :  { %2235 = vmatprep.mubr.bf16.mxu0 %v11725_v29  ;;  %2286 = vmatpush1.bf16.msra.mxu1 %v8938_v50  ;;  %v8969_v13 = vcombine.high %v582_v3, %v586_v63  ;;  %v8968_v16 = vcombine.low %v582_v3, %v586_v63  ;;  %v626_v50 = vld [vmem:[#allocation8 + $0x670] sm:$0xff]  ;;  %v9010_v3 = vcombine.low %v623_v51, %v627_v52 }
 0x201   :  { %2317 = vmatprep.mubr.bf16.mxu1 %v11725_v29  ;;  %2205 = vmatprep.subr.bf16.mxu0 %v8945_v62  ;;  %v8962_v29 = vcombine.low %v575_v60, %v579_v0  ;;  %v9000_v62 = vcombine.low %v614_v37, %v618_v38  ;;  %v635_v60 = vld [vmem:[#allocation8 + $0x6b8] sm:$0xff]  ;;  %v9008_v0 = vcombine.low %v622_v49, %v626_v50 }
 0x202   :  { %2287 = vmatprep.subr.bf16.mxu1 %v8947_v54  ;;  %v9002_v54 = vcombine.low %v615_v39, %v619_v40  ;;  %v9017_v63 = vcombine.high %v630_v56, %v634_v57  ;;  %v675_v37 = vld [vmem:[#allocation8 + $0x7f8] sm:$0xff] }
 0x203   :  { %2206 = vmatpush1.bf16.msra.mxu0 %v8944_v55  ;;  %v9009_v55 = vcombine.high %v622_v49, %v626_v50  ;;  %v10155_v49 = vld [vmem:[#allocation11 + $0x4] ss:$52 sps:$4 sm:$0xff]   ;;  %v10158_v50 = vld [vmem:[#allocation11 + $0xc] ss:$52 sps:$4 sm:$0xff]   ;;  %v10167_v57 = vld [vmem:[#allocation11 + $0xd4] ss:$52 sps:$4 sm:$0xff]  }
 0x204   :  { %2288 = vmatpush1.bf16.msra.mxu1 %v8946_v58  ;;  %2207 = vmatprep.subr.bf16.mxu0 %v8953_v59  ;;  %v9011_v58 = vcombine.high %v623_v51, %v627_v52  ;;  %v631_v59 = vld [vmem:[#allocation8 + $0x698] sm:$0xff]  ;;  %v10156_v52 = vld [vmem:[#allocation11 + $0x8] ss:$52 sps:$4 sm:$0xff]  }
 0x205   :  { %2289 = vmatprep.subr.bf16.mxu1 %v8955_v1  ;;  %v638_v1 = vld [vmem:[#allocation8 + $0x6d0] sm:$0xff]  ;;  %v9019_v6 = vcombine.high %v631_v59, %v635_v60  ;;  %v9018_v10 = vcombine.low %v631_v59, %v635_v60  ;;  %v10153_v51 = vld [vmem:[#allocation11] ss:$52 sps:$4 sm:$0xff]   ;;  %v10162_v56 = vld [vmem:[#allocation11 + $0x70] ss:$52 sps:$4 sm:$0xff]  }
 0x206   :  { %v10165_v59 = vld [vmem:[#allocation11 + $0xd0] ss:$52 sps:$4 sm:$0xff]   ;;  %v10168_v60 = vld [vmem:[#allocation11 + $0xd8] ss:$52 sps:$4 sm:$0xff]  }
 0x207   :  { %2208 = vmatpush1.bf16.msra.mxu0 %v8952_v2  ;;  %v642_v2 = vld [vmem:[#allocation8 + $0x6f0] sm:$0xff] }
 0x208   :  { %2290 = vmatpush1.bf16.msra.mxu1 %v8954_v4  ;;  %2209 = vmatprep.subr.bf16.mxu0 %v8961_v5  ;;  %v639_v4 = vld [vmem:[#allocation8 + $0x6d8] sm:$0xff]  ;;  %v9025_v11 = vcombine.high %v638_v1, %v642_v2  ;;  %v9024_v44 = vcombine.low %v638_v1, %v642_v2  ;;  %v10176_v1 = vld [vmem:[#allocation11 + $0x144] ss:$52 sps:$4 sm:$0xff]  }
 0x209   :  { %2291 = vmatprep.subr.bf16.mxu1 %v8963_v8  ;;  %v643_v5 = vld [vmem:[#allocation8 + $0x6f8] sm:$0xff]  ;;  %v646_v8 = vld [vmem:[#allocation8 + $0x710] sm:$0xff] }
 0x20a   :  { %v9027_v14 = vcombine.high %v639_v4, %v643_v5  ;;  %v9026_v17 = vcombine.low %v639_v4, %v643_v5  ;;  %v10171_v2 = vld [vmem:[#allocation11 + $0x138] ss:$52 sps:$4 sm:$0xff]   ;;  %v10177_v4 = vld [vmem:[#allocation11 + $0x1a0] ss:$52 sps:$4 sm:$0xff]   ;;  %v10180_v5 = vld [vmem:[#allocation11 + $0x1a8] ss:$52 sps:$4 sm:$0xff]  }
 0x20b   :  { %2210 = vmatpush1.bf16.msra.mxu0 %v8960_v9  ;;  %v650_v9 = vld [vmem:[#allocation8 + $0x730] sm:$0xff] }
 0x20c   :  { %2292 = vmatpush1.bf16.msra.mxu1 %v8962_v29  ;;  %2211 = vmatprep.subr.bf16.mxu0 %v8969_v13  ;;  %v647_v29 = vld [vmem:[#allocation8 + $0x718] sm:$0xff]  ;;  %v9033_v18 = vcombine.high %v646_v8, %v650_v9  ;;  %v9032_v22 = vcombine.low %v646_v8, %v650_v9  ;;  %v10183_v8 = vld [vmem:[#allocation11 + $0x208] ss:$52 sps:$4 sm:$0xff]  }
 0x20d   :  { %2293 = vmatprep.subr.bf16.mxu1 %v8971_v15  ;;  %v651_v13 = vld [vmem:[#allocation8 + $0x738] sm:$0xff]  ;;  %v654_v15 = vld [vmem:[#allocation8 + $0x750] sm:$0xff] }
 0x20e   :  { %v9035_v21 = vcombine.high %v647_v29, %v651_v13  ;;  %v10186_v9 = vld [vmem:[#allocation11 + $0x210] ss:$52 sps:$4 sm:$0xff]  }
 0x20f   :  { %2212 = vmatpush1.bf16.msra.mxu0 %v8968_v16  ;;  %v658_v16 = vld [vmem:[#allocation8 + $0x770] sm:$0xff] }
 0x210   :  { %2294 = vmatpush1.bf16.msra.mxu1 %v8970_v19  ;;  %2213 = vmatprep.subr.bf16.mxu0 %v8977_v20  ;;  %v655_v19 = vld [vmem:[#allocation8 + $0x758] sm:$0xff]  ;;  %v9040_v31 = vcombine.low %v654_v15, %v658_v16 }
 0x211   :  { %2295 = vmatprep.subr.bf16.mxu1 %v8979_v23  ;;  %v659_v20 = vld [vmem:[#allocation8 + $0x778] sm:$0xff]  ;;  %v662_v23 = vld [vmem:[#allocation8 + $0x790] sm:$0xff] }
 0x212   :  { %v9043_v30 = vcombine.high %v655_v19, %v659_v20 }
 0x213   :  { %2214 = vmatpush1.bf16.msra.mxu0 %v8976_v12  ;;  %v666_v12 = vld [vmem:[#allocation8 + $0x7b0] sm:$0xff] }
 0x214   :  { %2296 = vmatpush1.bf16.msra.mxu1 %v8978_v24  ;;  %2215 = vmatprep.subr.bf16.mxu0 %v8985_v25  ;;  %v9034_v24 = vcombine.low %v647_v29, %v651_v13  ;;  %v9041_v25 = vcombine.high %v654_v15, %v658_v16  ;;  %v9048_v39 = vcombine.low %v662_v23, %v666_v12  ;;  %v10189_v29 = vld [vmem:[#allocation11 + $0x270] ss:$52 sps:$4 sm:$0xff]   ;;  %v10192_v13 = vld [vmem:[#allocation11 + $0x278] ss:$52 sps:$4 sm:$0xff]   ;;  %v10198_v16 = vld [vmem:[#allocation11 + $0x2e0] ss:$52 sps:$4 sm:$0xff]  }
 0x215   :  { %2297 = vmatprep.subr.bf16.mxu1 %v8987_v26  ;;  %v663_v26 = vld [vmem:[#allocation8 + $0x798] sm:$0xff]  ;;  %v10195_v15 = vld [vmem:[#allocation11 + $0x2d8] ss:$52 sps:$4 sm:$0xff]  }
 0x216   :  { %v9051_v38 = vcombine.high %v663_v26, %v667_v27  ;;  %v9050_v40 = vcombine.low %v663_v26, %v667_v27  ;;  %v10213_v26 = vld [vmem:[#allocation11 + $0x410] ss:$52 sps:$4 sm:$0xff]   ;;  %v10216_v27 = vld [vmem:[#allocation11 + $0x418] ss:$52 sps:$4 sm:$0xff]  }
 0x217   :  { %2216 = vmatpush1.bf16.msra.mxu0 %v8984_v33  ;;  %v674_v33 = vld [vmem:[#allocation8 + $0x7f0] sm:$0xff] }
 0x218   :  { %2298 = vmatpush1.bf16.msra.mxu1 %v8986_v34  ;;  %2217 = vmatprep.subr.bf16.mxu0 %v8993_v35  ;;  %v9042_v34 = vcombine.low %v655_v19, %v659_v20  ;;  %v9049_v35 = vcombine.high %v662_v23, %v666_v12  ;;  %v10201_v19 = vld [vmem:[#allocation11 + $0x340] ss:$52 sps:$4 sm:$0xff]   ;;  %v10204_v20 = vld [vmem:[#allocation11 + $0x348] ss:$52 sps:$4 sm:$0xff]   ;;  %v10210_v12 = vld [vmem:[#allocation11 + $0x3b0] ss:$52 sps:$4 sm:$0xff]  }
 0x219   :  { %2299 = vmatprep.subr.bf16.mxu1 %v8995_v36  ;;  %v671_v36 = vld [vmem:[#allocation8 + $0x7d8] sm:$0xff]  ;;  %v10207_v23 = vld [vmem:[#allocation11 + $0x3a8] ss:$52 sps:$4 sm:$0xff]  }
 0x21b   :  { %2218 = vmatpush1.bf16.msra.mxu0 %v8992_v41  ;;  %v9057_v41 = vcombine.high %v670_v32, %v674_v33 }
 0x21c   :  { %2300 = vmatpush1.bf16.msra.mxu1 %v8994_v42  ;;  %2219 = vmatprep.subr.bf16.mxu0 %v9001_v47  ;;  %v9059_v42 = vcombine.high %v671_v36, %v675_v37  ;;  %v9056_v47 = vcombine.low %v670_v32, %v674_v33  ;;  %v10219_v32 = vld [vmem:[#allocation11 + $0x478] ss:$52 sps:$4 sm:$0xff]   ;;  %v10222_v33 = vld [vmem:[#allocation11 + $0x480] ss:$52 sps:$4 sm:$0xff]  }
 0x21d   :  { %2301 = vmatprep.subr.bf16.mxu1 %v9003_v48  ;;  %v9058_v48 = vcombine.low %v671_v36, %v675_v37  ;;  %v10225_v36 = vld [vmem:[#allocation11 + $0x4e0] ss:$52 sps:$4 sm:$0xff]   ;;  %v10228_v37 = vld [vmem:[#allocation11 + $0x4e8] ss:$52 sps:$4 sm:$0xff]  }
 0x21f   :  { %2220 = vmatpush1.bf16.msra.mxu0 %v9000_v62  ;;  %v10161_v62 = vld [vmem:[#allocation11 + $0x6c] ss:$52 sps:$4 sm:$0xff]  }
 0x220   :  { %2302 = vmatpush1.bf16.msra.mxu1 %v9002_v54  ;;  %2221 = vmatprep.subr.bf16.mxu0 %v9009_v55  ;;  %v10164_v54 = vld [vmem:[#allocation11 + $0x74] ss:$52 sps:$4 sm:$0xff]  }
 0x221   :  { %2303 = vmatprep.subr.bf16.mxu1 %v9011_v58  ;;  %v10159_v55 = vld [vmem:[#allocation11 + $0x68] ss:$52 sps:$4 sm:$0xff]  }
 0x222   :  { %v10170_v58 = vld [vmem:[#allocation11 + $0xdc] ss:$52 sps:$4 sm:$0xff]  }
 0x223   :  { %2222 = vmatpush1.bf16.msra.mxu0 %v9008_v0  ;;  %v10173_v0 = vld [vmem:[#allocation11 + $0x13c] ss:$52 sps:$4 sm:$0xff]  }
 0x224   :  { %2304 = vmatpush1.bf16.msra.mxu1 %v9010_v3  ;;  %2223 = vmatprep.subr.bf16.mxu0 %v9017_v63  ;;  %v10179_v3 = vld [vmem:[#allocation11 + $0x1a4] ss:$52 sps:$4 sm:$0xff]   ;;  %v10182_v63 = vld [vmem:[#allocation11 + $0x1ac] ss:$52 sps:$4 sm:$0xff]  }
 0x225   :  { %2305 = vmatprep.subr.bf16.mxu1 %v9019_v6  ;;  %v10185_v6 = vld [vmem:[#allocation11 + $0x20c] ss:$52 sps:$4 sm:$0xff]  }
 0x227   :  { %2224 = vmatpush1.bf16.msra.mxu0 %v9016_v7  ;;  %v10188_v7 = vld [vmem:[#allocation11 + $0x214] ss:$52 sps:$4 sm:$0xff]  }
 0x228   :  { %2306 = vmatpush1.bf16.msra.mxu1 %v9018_v10  ;;  %2225 = vmatprep.subr.bf16.mxu0 %v9025_v11  ;;  %v10191_v10 = vld [vmem:[#allocation11 + $0x274] ss:$52 sps:$4 sm:$0xff]   ;;  %v10194_v11 = vld [vmem:[#allocation11 + $0x27c] ss:$52 sps:$4 sm:$0xff]  }
 0x229   :  { %2307 = vmatprep.subr.bf16.mxu1 %v9027_v14  ;;  %v10197_v14 = vld [vmem:[#allocation11 + $0x2dc] ss:$52 sps:$4 sm:$0xff]  }
 0x22b   :  { %2226 = vmatpush1.bf16.msra.mxu0 %v9024_v44  ;;  %v10200_v44 = vld [vmem:[#allocation11 + $0x2e4] ss:$52 sps:$4 sm:$0xff]  }
 0x22c   :  { %2308 = vmatpush1.bf16.msra.mxu1 %v9026_v17  ;;  %2227 = vmatprep.subr.bf16.mxu0 %v9033_v18  ;;  %v10203_v17 = vld [vmem:[#allocation11 + $0x344] ss:$52 sps:$4 sm:$0xff]   ;;  %v10206_v18 = vld [vmem:[#allocation11 + $0x34c] ss:$52 sps:$4 sm:$0xff]  }
 0x22d   :  { %2309 = vmatprep.subr.bf16.mxu1 %v9035_v21  ;;  %v10209_v21 = vld [vmem:[#allocation11 + $0x3ac] ss:$52 sps:$4 sm:$0xff]  }
 0x22f   :  { %2228 = vmatpush1.bf16.msra.mxu0 %v9032_v22  ;;  %v10212_v22 = vld [vmem:[#allocation11 + $0x3b4] ss:$52 sps:$4 sm:$0xff]  }
 0x230   :  { %2310 = vmatpush1.bf16.msra.mxu1 %v9034_v24  ;;  %2229 = vmatprep.subr.bf16.mxu0 %v9041_v25  ;;  %v10215_v24 = vld [vmem:[#allocation11 + $0x414] ss:$52 sps:$4 sm:$0xff]   ;;  %v10218_v25 = vld [vmem:[#allocation11 + $0x41c] ss:$52 sps:$4 sm:$0xff]  }
 0x231   :  { %2311 = vmatprep.subr.bf16.mxu1 %v9043_v30  ;;  %v10221_v30 = vld [vmem:[#allocation11 + $0x47c] ss:$52 sps:$4 sm:$0xff]  }
 0x233   :  { %2230 = vmatpush1.bf16.msra.mxu0 %v9040_v31  ;;  %v10224_v31 = vld [vmem:[#allocation11 + $0x484] ss:$52 sps:$4 sm:$0xff]  }
 0x234   :  { %2312 = vmatpush1.bf16.msra.mxu1 %v9042_v34  ;;  %2231 = vmatprep.subr.bf16.mxu0 %v9049_v35  ;;  %v10227_v34 = vld [vmem:[#allocation11 + $0x4e4] ss:$52 sps:$4 sm:$0xff]   ;;  %v10230_v35 = vld [vmem:[#allocation11 + $0x4ec] ss:$52 sps:$4 sm:$0xff]  }
 0x235   :  { %2313 = vmatprep.subr.bf16.mxu1 %v9051_v38  ;;  %v10233_v38 = vld [vmem:[#allocation11 + $0x54c] ss:$52 sps:$4 sm:$0xff]  }
 0x237   :  { %2232 = vmatpush1.bf16.msra.mxu0 %v9048_v39  ;;  %v10236_v39 = vld [vmem:[#allocation11 + $0x554] ss:$52 sps:$4 sm:$0xff]  }
 0x238   :  { %2314 = vmatpush1.bf16.msra.mxu1 %v9050_v40  ;;  %2233 = vmatprep.subr.bf16.mxu0 %v9057_v41  ;;  %v10231_v40 = vld [vmem:[#allocation11 + $0x548] ss:$52 sps:$4 sm:$0xff]   ;;  %v10234_v41 = vld [vmem:[#allocation11 + $0x550] ss:$52 sps:$4 sm:$0xff]  }
 0x239   :  { %2315 = vmatprep.subr.bf16.mxu1 %v9059_v42  ;;  %v10239_v42 = vld [vmem:[#allocation11 + $0x5b4] ss:$52 sps:$4 sm:$0xff]  }
 0x23b   :  { %2234 = vmatpush1.bf16.msra.mxu0 %v9056_v47  ;;  %v10242_v47 = vld [vmem:[#allocation11 + $0x5bc] ss:$52 sps:$4 sm:$0xff]  }
 0x23c   :  { %2316 = vmatpush1.bf16.msra.mxu1 %v9058_v48  ;;  %7531 = vmatprep.subr.bf16.mxu0 %v10155_v49  ;;  %v10237_v48 = vld [vmem:[#allocation11 + $0x5b0] ss:$52 sps:$4 sm:$0xff]   ;;  %v10240_v49 = vld [vmem:[#allocation11 + $0x5b8] ss:$52 sps:$4 sm:$0xff]  }
 0x23d   :  { %7695 = vmatprep.subr.bf16.mxu1 %v10158_v50  ;;  %v10245_v50 = vld [vmem:[#allocation11 + $0x61c] ss:$52 sps:$4 sm:$0xff]  }
 0x23e   :  { %2236 = vmatmul.mubr.bf16.vlgmr.msra.gmra.mrb[8].mxu0 %v11735_v28 }
 0x23f   :  { %2318 = vmatmul.mubr.bf16.vlgmr.msra.gmra.mrb[8].mxu1 %v11735_v28  ;;  %7532 = vmatpush1.bf16.msra.mxu0 %v10153_v51  ;;  %v10174_v28 = vld [vmem:[#allocation11 + $0x140] ss:$52 sps:$4 sm:$0xff]   ;;  %v10248_v51 = vld [vmem:[#allocation11 + $0x624] ss:$52 sps:$4 sm:$0xff]  }
 0x240   :  { %7696 = vmatpush1.bf16.msra.mxu1 %v10156_v52  ;;  %7533 = vmatprep.subr.bf16.mxu0 %v10161_v62  ;;  %v10243_v52 = vld [vmem:[#allocation11 + $0x618] ss:$52 sps:$4 sm:$0xff]   ;;  %v10246_v62 = vld [vmem:[#allocation11 + $0x620] ss:$52 sps:$4 sm:$0xff]  }
 0x241   :  { %7697 = vmatprep.subr.bf16.mxu1 %v10164_v54  ;;  %v10251_v54 = vld [vmem:[#allocation11 + $0x684] ss:$52 sps:$4 sm:$0xff]  }
 0x243   :  { %7534 = vmatpush1.bf16.msra.mxu0 %v10159_v55  ;;  %v10254_v55 = vld [vmem:[#allocation11 + $0x68c] ss:$52 sps:$4 sm:$0xff]  }
 0x244   :  { %7698 = vmatpush1.bf16.msra.mxu1 %v10162_v56  ;;  %7535 = vmatprep.subr.bf16.mxu0 %v10167_v57  ;;  %v11747_v56 = vld [vmem:[#allocation10] sm:$0xff] }
 0x245   :  { %7699 = vmatprep.subr.bf16.mxu1 %v10170_v58  ;;  %v681_v57 = vrot.slane %v11747_v56, %v11701_v45  ;;  %v685_v58 = vrot.slane %v11747_v56, %v11704_v46 }
 0x247   :  { %7536 = vmatpush1.bf16.msra.mxu0 %v10165_v59  ;;  %v693_v59 = vrot.slane %v11747_v56, %v11711_v61 }
 0x248   :  { %7700 = vmatpush1.bf16.msra.mxu1 %v10168_v60  ;;  %7537 = vmatprep.subr.bf16.mxu0 %v10173_v0 }
 0x249   :  { %7701 = vmatprep.subr.bf16.mxu1 %v10176_v1 }
 0x24b   :  { %7538 = vmatpush1.bf16.msra.mxu0 %v10171_v2 }
 0x24c   :  { %7702 = vmatpush1.bf16.msra.mxu1 %v10174_v28  ;;  %7539 = vmatprep.subr.bf16.mxu0 %v10179_v3 }
 0x24d   :  { %7703 = vmatprep.subr.bf16.mxu1 %v10182_v63 }
 0x24f   :  { %7540 = vmatpush1.bf16.msra.mxu0 %v10177_v4 }
 0x250   :  { %7704 = vmatpush1.bf16.msra.mxu1 %v10180_v5  ;;  %7541 = vmatprep.subr.bf16.mxu0 %v10185_v6 }
 0x251   :  { %7705 = vmatprep.subr.bf16.mxu1 %v10188_v7 }
 0x253   :  { %7542 = vmatpush1.bf16.msra.mxu0 %v10183_v8 }
 0x254   :  { %7706 = vmatpush1.bf16.msra.mxu1 %v10186_v9  ;;  %7543 = vmatprep.subr.bf16.mxu0 %v10191_v10 }
 0x255   :  { %7707 = vmatprep.subr.bf16.mxu1 %v10194_v11 }
 0x257   :  { %7544 = vmatpush1.bf16.msra.mxu0 %v10189_v29  ;;  %v10249_v29 = vld [vmem:[#allocation11 + $0x680] ss:$52 sps:$4 sm:$0xff]  }
 0x258   :  { %7708 = vmatpush1.bf16.msra.mxu1 %v10192_v13  ;;  %7545 = vmatprep.subr.bf16.mxu0 %v10197_v14  ;;  %v10252_v13 = vld [vmem:[#allocation11 + $0x688] ss:$52 sps:$4 sm:$0xff]  }
 0x259   :  { %7709 = vmatprep.subr.bf16.mxu1 %v10200_v44  ;;  %v10257_v44 = vld [vmem:[#allocation11 + $0x6ec] ss:$52 sps:$4 sm:$0xff]  }
 0x25b   :  { %7546 = vmatpush1.bf16.msra.mxu0 %v10195_v15  ;;  %v10260_v15 = vld [vmem:[#allocation11 + $0x6f4] ss:$52 sps:$4 sm:$0xff]  }
 0x25c   :  { %7710 = vmatpush1.bf16.msra.mxu1 %v10198_v16  ;;  %7547 = vmatprep.subr.bf16.mxu0 %v10203_v17  ;;  %v10255_v17 = vld [vmem:[#allocation11 + $0x6e8] ss:$52 sps:$4 sm:$0xff]  }
 0x25d   :  { %7711 = vmatprep.subr.bf16.mxu1 %v10206_v18  ;;  %v10258_v18 = vld [vmem:[#allocation11 + $0x6f0] ss:$52 sps:$4 sm:$0xff]  }
 0x25f   :  { %7548 = vmatpush1.bf16.msra.mxu0 %v10201_v19  ;;  %v10263_v19 = vld [vmem:[#allocation11 + $0x754] ss:$52 sps:$4 sm:$0xff]  }
 0x260   :  { %7712 = vmatpush1.bf16.msra.mxu1 %v10204_v20  ;;  %7549 = vmatprep.subr.bf16.mxu0 %v10209_v21  ;;  %v10266_v20 = vld [vmem:[#allocation11 + $0x75c] ss:$52 sps:$4 sm:$0xff]  }
 0x261   :  { %7713 = vmatprep.subr.bf16.mxu1 %v10212_v22  ;;  %v10261_v21 = vld [vmem:[#allocation11 + $0x750] ss:$52 sps:$4 sm:$0xff]   ;;  %v10264_v22 = vld [vmem:[#allocation11 + $0x758] ss:$52 sps:$4 sm:$0xff]  }
 0x263   :  { %7550 = vmatpush1.bf16.msra.mxu0 %v10207_v23  ;;  %v10269_v23 = vld [vmem:[#allocation11 + $0x7bc] ss:$52 sps:$4 sm:$0xff]  }
 0x264   :  { %7714 = vmatpush1.bf16.msra.mxu1 %v10210_v12  ;;  %7551 = vmatprep.subr.bf16.mxu0 %v10215_v24  ;;  %v10272_v12 = vld [vmem:[#allocation11 + $0x7c4] ss:$52 sps:$4 sm:$0xff]  }
 0x265   :  { %7715 = vmatprep.subr.bf16.mxu1 %v10218_v25  ;;  %v10267_v24 = vld [vmem:[#allocation11 + $0x7b8] ss:$52 sps:$4 sm:$0xff]   ;;  %v10270_v25 = vld [vmem:[#allocation11 + $0x7c0] ss:$52 sps:$4 sm:$0xff]  }
 0x267   :  { %7552 = vmatpush1.bf16.msra.mxu0 %v10213_v26  ;;  %v10275_v26 = vld [vmem:[#allocation11 + $0x824] ss:$52 sps:$4 sm:$0xff]  }
 0x268   :  { %7716 = vmatpush1.bf16.msra.mxu1 %v10216_v27  ;;  %7553 = vmatprep.subr.bf16.mxu0 %v10221_v30  ;;  %v10278_v27 = vld [vmem:[#allocation11 + $0x82c] ss:$52 sps:$4 sm:$0xff]  }
 0x269   :  { %7717 = vmatprep.subr.bf16.mxu1 %v10224_v31  ;;  %v10273_v30 = vld [vmem:[#allocation11 + $0x820] ss:$52 sps:$4 sm:$0xff]   ;;  %v10276_v31 = vld [vmem:[#allocation11 + $0x828] ss:$52 sps:$4 sm:$0xff]  }
 0x26b   :  { %7554 = vmatpush1.bf16.msra.mxu0 %v10219_v32  ;;  %v10281_v32 = vld [vmem:[#allocation11 + $0x88c] ss:$52 sps:$4 sm:$0xff]  }
 0x26c   :  { %7718 = vmatpush1.bf16.msra.mxu1 %v10222_v33  ;;  %7555 = vmatprep.subr.bf16.mxu0 %v10227_v34  ;;  %v10284_v33 = vld [vmem:[#allocation11 + $0x894] ss:$52 sps:$4 sm:$0xff]  }
 0x26d   :  { %7719 = vmatprep.subr.bf16.mxu1 %v10230_v35  ;;  %v10279_v34 = vld [vmem:[#allocation11 + $0x888] ss:$52 sps:$4 sm:$0xff]   ;;  %v10282_v35 = vld [vmem:[#allocation11 + $0x890] ss:$52 sps:$4 sm:$0xff]  }
 0x26f   :  { %7556 = vmatpush1.bf16.msra.mxu0 %v10225_v36  ;;  %v10287_v36 = vld [vmem:[#allocation11 + $0x8f4] ss:$52 sps:$4 sm:$0xff]  }
 0x270   :  { %7720 = vmatpush1.bf16.msra.mxu1 %v10228_v37  ;;  %7557 = vmatprep.subr.bf16.mxu0 %v10233_v38  ;;  %v10290_v37 = vld [vmem:[#allocation11 + $0x8fc] ss:$52 sps:$4 sm:$0xff]  }
 0x271   :  { %7721 = vmatprep.subr.bf16.mxu1 %v10236_v39  ;;  %v10285_v38 = vld [vmem:[#allocation11 + $0x8f0] ss:$52 sps:$4 sm:$0xff]   ;;  %v10288_v39 = vld [vmem:[#allocation11 + $0x8f8] ss:$52 sps:$4 sm:$0xff]  }
 0x273   :  { %7558 = vmatpush1.bf16.msra.mxu0 %v10231_v40  ;;  %v10293_v40 = vld [vmem:[#allocation11 + $0x95c] ss:$52 sps:$4 sm:$0xff]  }
 0x274   :  { %7722 = vmatpush1.bf16.msra.mxu1 %v10234_v41  ;;  %7559 = vmatprep.subr.bf16.mxu0 %v10239_v42  ;;  %v10296_v41 = vld [vmem:[#allocation11 + $0x964] ss:$52 sps:$4 sm:$0xff]  }
 0x275   :  { %7723 = vmatprep.subr.bf16.mxu1 %v10242_v47  ;;  %v10291_v42 = vld [vmem:[#allocation11 + $0x958] ss:$52 sps:$4 sm:$0xff]   ;;  %v10294_v47 = vld [vmem:[#allocation11 + $0x960] ss:$52 sps:$4 sm:$0xff]  }
 0x277   :  { %7560 = vmatpush1.bf16.msra.mxu0 %v10237_v48  ;;  %v10299_v48 = vld [vmem:[#allocation11 + $0x9c4] ss:$52 sps:$4 sm:$0xff]  }
 0x278   :  { %7724 = vmatpush1.bf16.msra.mxu1 %v10240_v49  ;;  %7561 = vmatprep.subr.bf16.mxu0 %v10245_v50  ;;  %v10302_v49 = vld [vmem:[#allocation11 + $0x9cc] ss:$52 sps:$4 sm:$0xff]  }
 0x279   :  { %7725 = vmatprep.subr.bf16.mxu1 %v10248_v51  ;;  %v10297_v50 = vld [vmem:[#allocation11 + $0x9c0] ss:$52 sps:$4 sm:$0xff]   ;;  %v10300_v51 = vld [vmem:[#allocation11 + $0x9c8] ss:$52 sps:$4 sm:$0xff]  }
 0x27b   :  { %7562 = vmatpush1.bf16.msra.mxu0 %v10243_v52  ;;  %v10305_v52 = vld [vmem:[#allocation11 + $0xa2c] ss:$52 sps:$4 sm:$0xff]  }
 0x27c   :  { %7726 = vmatpush1.bf16.msra.mxu1 %v10246_v62  ;;  %7572 = vmatprep.subr.bf16.mxu0 %v10251_v54  ;;  %v10308_v62 = vld [vmem:[#allocation11 + $0xa34] ss:$52 sps:$4 sm:$0xff]  }
 0x27d   :  { %7736 = vmatprep.subr.bf16.mxu1 %v10254_v55  ;;  %v10303_v54 = vld [vmem:[#allocation11 + $0xa28] ss:$52 sps:$4 sm:$0xff]   ;;  %v10306_v55 = vld [vmem:[#allocation11 + $0xa30] ss:$52 sps:$4 sm:$0xff]  }
 0x291   :  { %v2073_v60 = vpop.f32.mrb[4].mxu0  ;;  %v11755_v0 = vpop.f32.mrb[4].mxu1 }
 0x292   :  { %v9981_v1 = vadd.f32 %v2073_v60, %v681_v57  ;;  %v2075_v2 = vpop.f32.mrb[5].mxu0  ;;  %v2157_v28 = vpop.f32.mrb[5].mxu1  ;;  %v10311_v57 = vld [vmem:[#allocation11 + $0xa94] ss:$52 sps:$4 sm:$0xff]   ;;  %v10312_v60 = vld [vmem:[#allocation11 + $0xa98] ss:$52 sps:$4 sm:$0xff]  }
 0x293   :  { %v9982_v3 = vadd.f32 %v2075_v2, %v685_v58  ;;  %v9984_v63 = vadd.f32 %v2157_v28, %v693_v59  ;;  %v2077_v4 = vpop.f32.mrb[6].mxu0  ;;  %v2159_v5 = vpop.f32.mrb[6].mxu1  ;;  %v10314_v58 = vld [vmem:[#allocation11 + $0xa9c] ss:$52 sps:$4 sm:$0xff]   ;;  %v10320_v2 = vld [vmem:[#allocation11 + $0xb04] ss:$52 sps:$4 sm:$0xff]  }
 0x294   :  { %v2326_v6 = vmax.f32 %v9981_v1, 0.0  ;;  %v2078_v7 = vpop.f32.mrb[7].mxu0  ;;  %v2160_v8 = vpop.f32.mrb[7].mxu1  ;;  %v10309_v59 = vld [vmem:[#allocation11 + $0xa90] ss:$52 sps:$4 sm:$0xff]  }
 0x295   :  { %v2327_v9 = vmax.f32 %v9982_v3, 0.0  ;;  %v2329_v10 = vmax.f32 %v9984_v63, 0.0  ;;  %v10317_v1 = vld [vmem:[#allocation11 + $0xafc] ss:$52 sps:$4 sm:$0xff]   ;;  %v10315_v28 = vld [vmem:[#allocation11 + $0xaf8] ss:$52 sps:$4 sm:$0xff]  }
 0x296   :  { %v11759_v14 = vpack.c.bf16 %v2326_v6, %v2326_v6  ;;  %v10318_v3 = vld [vmem:[#allocation11 + $0xb00] ss:$52 sps:$4 sm:$0xff]   ;;  %v10323_v63 = vld [vmem:[#allocation11 + $0xb64] ss:$52 sps:$4 sm:$0xff]   ;;  %v10324_v6 = vld [vmem:[#allocation11 + $0xb68] ss:$52 sps:$4 sm:$0xff]  }
 0x297   :  { %v11757_v11 = vpack.c.bf16 %v2327_v9, %v2327_v9  ;;  %v11763_v16 = vpack.c.bf16 %v2329_v10, %v2329_v10  ;;  %v10326_v4 = vld [vmem:[#allocation11 + $0xb6c] ss:$52 sps:$4 sm:$0xff]   ;;  %v10332_v8 = vld [vmem:[#allocation11 + $0xbd4] ss:$52 sps:$4 sm:$0xff]   ;;  %v10330_v10 = vld [vmem:[#allocation11 + $0xbd0] ss:$52 sps:$4 sm:$0xff]  }
 0x298   :  { %v10321_v5 = vld [vmem:[#allocation11 + $0xb60] ss:$52 sps:$4 sm:$0xff]   ;;  %v10327_v9 = vld [vmem:[#allocation11 + $0xbc8] ss:$52 sps:$4 sm:$0xff]  }
 0x299   :  { %7563 = vmatprep.mubr.bf16.mxu0 %v11757_v11  ;;  %7727 = vmatprep.mubr.bf16.mxu1 %v11757_v11  ;;  %v10329_v7 = vld [vmem:[#allocation11 + $0xbcc] ss:$52 sps:$4 sm:$0xff]  }
 0x29a   :  { %7564 = vmatmul.mubr.bf16.vlgmr.msra.gmra.mrb[12].mxu0 %v11759_v14  ;;  %7728 = vmatmul.mubr.bf16.vlgmr.msra.gmra.mrb[12].mxu1 %v11759_v14 }
 0x29b   :  { %7573 = vmatpush1.bf16.msra.mxu0 %v10249_v29  ;;  %7737 = vmatpush1.bf16.msra.mxu1 %v10252_v13  ;;  %v689_v29 = vrot.slane %v11747_v56, %v11730_v53  ;;  %v10335_v13 = vld [vmem:[#allocation11 + $0xc34] ss:$52 sps:$4 sm:$0xff]  }
 0x29c   :  { %7604 = vmatprep.mubr.bf16.mxu0 %v11763_v16  ;;  %7768 = vmatprep.mubr.bf16.mxu1 %v11763_v16 }
 0x29d   :  { %7574 = vmatprep.subr.bf16.mxu0 %v10257_v44  ;;  %7738 = vmatprep.subr.bf16.mxu1 %v10260_v15  ;;  %v10338_v44 = vld [vmem:[#allocation11 + $0xc3c] ss:$52 sps:$4 sm:$0xff]  }
 0x29e   :  { %v10333_v15 = vld [vmem:[#allocation11 + $0xc30] ss:$52 sps:$4 sm:$0xff]  }
 0x29f   :  { %7575 = vmatpush1.bf16.msra.mxu0 %v10255_v17  ;;  %7739 = vmatpush1.bf16.msra.mxu1 %v10258_v18  ;;  %v10336_v17 = vld [vmem:[#allocation11 + $0xc38] ss:$52 sps:$4 sm:$0xff]   ;;  %v9983_v18 = vadd.f32 %v11755_v0, %v689_v29 }
 0x2a0   :  { %7576 = vmatprep.subr.bf16.mxu0 %v10263_v19  ;;  %7740 = vmatprep.subr.bf16.mxu1 %v10266_v20  ;;  %v10341_v19 = vld [vmem:[#allocation11 + $0xc9c] ss:$52 sps:$4 sm:$0xff]   ;;  %v10344_v20 = vld [vmem:[#allocation11 + $0xca4] ss:$52 sps:$4 sm:$0xff]   ;;  %v10353_v0 = vld [vmem:[#allocation11 + $0xd6c] ss:$52 sps:$4 sm:$0xff]  }
 0x2a1   :  { %v10408_v29 = vld [vmem:[#allocation11 + $0x1118] ss:$52 sps:$4 sm:$0xff]  }
 0x2a3   :  { %7577 = vmatpush1.bf16.msra.mxu0 %v10261_v21  ;;  %7741 = vmatpush1.bf16.msra.mxu1 %v10264_v22  ;;  %v10339_v21 = vld [vmem:[#allocation11 + $0xc98] ss:$52 sps:$4 sm:$0xff]   ;;  %v10342_v22 = vld [vmem:[#allocation11 + $0xca0] ss:$52 sps:$4 sm:$0xff]  }
 0x2a4   :  { %7578 = vmatprep.subr.bf16.mxu0 %v10269_v23  ;;  %7742 = vmatprep.subr.bf16.mxu1 %v10272_v12  ;;  %v2328_v23 = vmax.f32 %v9983_v18, 0.0  ;;  %v10347_v12 = vld [vmem:[#allocation11 + $0xd04] ss:$52 sps:$4 sm:$0xff]  }
 0x2a5   :  { %v10419_v18 = vld [vmem:[#allocation11 + $0x11e4] ss:$52 sps:$4 sm:$0xff]  }
 0x2a7   :  { %7579 = vmatpush1.bf16.msra.mxu0 %v10267_v24  ;;  %7743 = vmatpush1.bf16.msra.mxu1 %v10270_v25  ;;  %v10350_v24 = vld [vmem:[#allocation11 + $0xd0c] ss:$52 sps:$4 sm:$0xff]  }
 0x2a8   :  { %7580 = vmatprep.subr.bf16.mxu0 %v10275_v26  ;;  %7744 = vmatprep.subr.bf16.mxu1 %v10278_v27  ;;  %v10345_v25 = vld [vmem:[#allocation11 + $0xd00] ss:$52 sps:$4 sm:$0xff]   ;;  %v10348_v26 = vld [vmem:[#allocation11 + $0xd08] ss:$52 sps:$4 sm:$0xff]   ;;  %v11772_v27 = vpack.c.bf16 %v2328_v23, %v2328_v23 }
 0x2a9   :  { %v10428_v23 = vld [vmem:[#allocation11 + $0x1254] ss:$52 sps:$4 sm:$0xff]  }
 0x2ab   :  { %7581 = vmatpush1.bf16.msra.mxu0 %v10273_v30  ;;  %7745 = vmatpush1.bf16.msra.mxu1 %v10276_v31  ;;  %v10356_v30 = vld [vmem:[#allocation11 + $0xd74] ss:$52 sps:$4 sm:$0xff]  }
 0x2ac   :  { %7582 = vmatprep.subr.bf16.mxu0 %v10281_v32  ;;  %7746 = vmatprep.subr.bf16.mxu1 %v10284_v33  ;;  %v10351_v31 = vld [vmem:[#allocation11 + $0xd68] ss:$52 sps:$4 sm:$0xff]   ;;  %v10354_v32 = vld [vmem:[#allocation11 + $0xd70] ss:$52 sps:$4 sm:$0xff]  }
 0x2ad   :  { %v10359_v33 = vld [vmem:[#allocation11 + $0xdd4] ss:$52 sps:$4 sm:$0xff]  }
 0x2af   :  { %7583 = vmatpush1.bf16.msra.mxu0 %v10279_v34  ;;  %7747 = vmatpush1.bf16.msra.mxu1 %v10282_v35  ;;  %v10362_v34 = vld [vmem:[#allocation11 + $0xddc] ss:$52 sps:$4 sm:$0xff]  }
 0x2b0   :  { %7584 = vmatprep.subr.bf16.mxu0 %v10287_v36  ;;  %7748 = vmatprep.subr.bf16.mxu1 %v10290_v37  ;;  %v10357_v35 = vld [vmem:[#allocation11 + $0xdd0] ss:$52 sps:$4 sm:$0xff]   ;;  %v10360_v36 = vld [vmem:[#allocation11 + $0xdd8] ss:$52 sps:$4 sm:$0xff]  }
 0x2b1   :  { %v10365_v37 = vld [vmem:[#allocation11 + $0xe3c] ss:$52 sps:$4 sm:$0xff]  }
 0x2b3   :  { %7585 = vmatpush1.bf16.msra.mxu0 %v10285_v38  ;;  %7749 = vmatpush1.bf16.msra.mxu1 %v10288_v39  ;;  %v10368_v38 = vld [vmem:[#allocation11 + $0xe44] ss:$52 sps:$4 sm:$0xff]  }
 0x2b4   :  { %7586 = vmatprep.subr.bf16.mxu0 %v10293_v40  ;;  %7750 = vmatprep.subr.bf16.mxu1 %v10296_v41  ;;  %v10363_v39 = vld [vmem:[#allocation11 + $0xe38] ss:$52 sps:$4 sm:$0xff]   ;;  %v10366_v40 = vld [vmem:[#allocation11 + $0xe40] ss:$52 sps:$4 sm:$0xff]  }
 0x2b5   :  { %v10371_v41 = vld [vmem:[#allocation11 + $0xea4] ss:$52 sps:$4 sm:$0xff]  }
 0x2b7   :  { %7587 = vmatpush1.bf16.msra.mxu0 %v10291_v42  ;;  %7751 = vmatpush1.bf16.msra.mxu1 %v10294_v47  ;;  %v10374_v42 = vld [vmem:[#allocation11 + $0xeac] ss:$52 sps:$4 sm:$0xff]  }
 0x2b8   :  { %7588 = vmatprep.subr.bf16.mxu0 %v10299_v48  ;;  %7752 = vmatprep.subr.bf16.mxu1 %v10302_v49  ;;  %v10369_v47 = vld [vmem:[#allocation11 + $0xea0] ss:$52 sps:$4 sm:$0xff]   ;;  %v10372_v48 = vld [vmem:[#allocation11 + $0xea8] ss:$52 sps:$4 sm:$0xff]  }
 0x2b9   :  { %v10377_v49 = vld [vmem:[#allocation11 + $0xf0c] ss:$52 sps:$4 sm:$0xff]  }
 0x2bb   :  { %7589 = vmatpush1.bf16.msra.mxu0 %v10297_v50  ;;  %7753 = vmatpush1.bf16.msra.mxu1 %v10300_v51  ;;  %v10380_v50 = vld [vmem:[#allocation11 + $0xf14] ss:$52 sps:$4 sm:$0xff]  }
 0x2bc   :  { %7590 = vmatprep.subr.bf16.mxu0 %v10305_v52  ;;  %7754 = vmatprep.subr.bf16.mxu1 %v10308_v62  ;;  %v10375_v51 = vld [vmem:[#allocation11 + $0xf08] ss:$52 sps:$4 sm:$0xff]   ;;  %v10378_v52 = vld [vmem:[#allocation11 + $0xf10] ss:$52 sps:$4 sm:$0xff]  }
 0x2bd   :  { %v10383_v62 = vld [vmem:[#allocation11 + $0xf74] ss:$52 sps:$4 sm:$0xff]  }
 0x2bf   :  { %7591 = vmatpush1.bf16.msra.mxu0 %v10303_v54  ;;  %7755 = vmatpush1.bf16.msra.mxu1 %v10306_v55  ;;  %v10386_v54 = vld [vmem:[#allocation11 + $0xf7c] ss:$52 sps:$4 sm:$0xff]  }
 0x2c0   :  { %7592 = vmatprep.subr.bf16.mxu0 %v10311_v57  ;;  %7756 = vmatprep.subr.bf16.mxu1 %v10314_v58  ;;  %v10381_v55 = vld [vmem:[#allocation11 + $0xf70] ss:$52 sps:$4 sm:$0xff]   ;;  %v10384_v57 = vld [vmem:[#allocation11 + $0xf78] ss:$52 sps:$4 sm:$0xff]  }
 0x2c1   :  { %v10389_v58 = vld [vmem:[#allocation11 + $0xfdc] ss:$52 sps:$4 sm:$0xff]  }
 0x2c3   :  { %7593 = vmatpush1.bf16.msra.mxu0 %v10309_v59  ;;  %7757 = vmatpush1.bf16.msra.mxu1 %v10312_v60  ;;  %v10392_v59 = vld [vmem:[#allocation11 + $0xfe4] ss:$52 sps:$4 sm:$0xff]  }
 0x2c4   :  { %7594 = vmatprep.subr.bf16.mxu0 %v10317_v1  ;;  %7758 = vmatprep.subr.bf16.mxu1 %v10320_v2  ;;  %v10387_v60 = vld [vmem:[#allocation11 + $0xfd8] ss:$52 sps:$4 sm:$0xff]   ;;  %v10390_v1 = vld [vmem:[#allocation11 + $0xfe0] ss:$52 sps:$4 sm:$0xff]  }
 0x2c5   :  { %v10395_v2 = vld [vmem:[#allocation11 + $0x1044] ss:$52 sps:$4 sm:$0xff]  }
 0x2c7   :  { %7595 = vmatpush1.bf16.msra.mxu0 %v10315_v28  ;;  %7759 = vmatpush1.bf16.msra.mxu1 %v10318_v3  ;;  %v10398_v28 = vld [vmem:[#allocation11 + $0x104c] ss:$52 sps:$4 sm:$0xff]  }
 0x2c8   :  { %7596 = vmatprep.subr.bf16.mxu0 %v10323_v63  ;;  %7760 = vmatprep.subr.bf16.mxu1 %v10326_v4  ;;  %v10393_v3 = vld [vmem:[#allocation11 + $0x1040] ss:$52 sps:$4 sm:$0xff]   ;;  %v10396_v63 = vld [vmem:[#allocation11 + $0x1048] ss:$52 sps:$4 sm:$0xff]  }
 0x2c9   :  { %v10401_v4 = vld [vmem:[#allocation11 + $0x10ac] ss:$52 sps:$4 sm:$0xff]  }
 0x2cb   :  { %7597 = vmatpush1.bf16.msra.mxu0 %v10321_v5  ;;  %7761 = vmatpush1.bf16.msra.mxu1 %v10324_v6  ;;  %v10404_v5 = vld [vmem:[#allocation11 + $0x10b4] ss:$52 sps:$4 sm:$0xff]  }
 0x2cc   :  { %7598 = vmatprep.subr.bf16.mxu0 %v10329_v7  ;;  %7762 = vmatprep.subr.bf16.mxu1 %v10332_v8  ;;  %v10399_v6 = vld [vmem:[#allocation11 + $0x10a8] ss:$52 sps:$4 sm:$0xff]   ;;  %v10402_v7 = vld [vmem:[#allocation11 + $0x10b0] ss:$52 sps:$4 sm:$0xff]  }
 0x2cd   :  { %v10407_v8 = vld [vmem:[#allocation11 + $0x1114] ss:$52 sps:$4 sm:$0xff]  }
 0x2cf   :  { %7599 = vmatpush1.bf16.msra.mxu0 %v10327_v9  ;;  %7763 = vmatpush1.bf16.msra.mxu1 %v10330_v10  ;;  %v10410_v9 = vld [vmem:[#allocation11 + $0x111c] ss:$52 sps:$4 sm:$0xff]  }
 0x2d0   :  { %7600 = vmatprep.subr.bf16.mxu0 %v10335_v13  ;;  %7764 = vmatprep.subr.bf16.mxu1 %v10338_v44  ;;  %v10405_v10 = vld [vmem:[#allocation11 + $0x1110] ss:$52 sps:$4 sm:$0xff]  }
 0x2d1   :  { %v10413_v13 = vld [vmem:[#allocation11 + $0x117c] ss:$52 sps:$4 sm:$0xff]   ;;  %v10416_v44 = vld [vmem:[#allocation11 + $0x1184] ss:$52 sps:$4 sm:$0xff]  }
 0x2d3   :  { %7601 = vmatpush1.bf16.msra.mxu0 %v10333_v15  ;;  %7765 = vmatpush1.bf16.msra.mxu1 %v10336_v17  ;;  %v10411_v15 = vld [vmem:[#allocation11 + $0x1178] ss:$52 sps:$4 sm:$0xff]   ;;  %v10414_v17 = vld [vmem:[#allocation11 + $0x1180] ss:$52 sps:$4 sm:$0xff]  }
 0x2d4   :  { %7602 = vmatprep.subr.bf16.mxu0 %v10341_v19  ;;  %7766 = vmatprep.subr.bf16.mxu1 %v10344_v20  ;;  %v10422_v19 = vld [vmem:[#allocation11 + $0x11ec] ss:$52 sps:$4 sm:$0xff]  }
 0x2d5   :  { %v10417_v20 = vld [vmem:[#allocation11 + $0x11e0] ss:$52 sps:$4 sm:$0xff]  }
 0x2d7   :  { %7603 = vmatpush1.bf16.msra.mxu0 %v10339_v21  ;;  %7767 = vmatpush1.bf16.msra.mxu1 %v10342_v22  ;;  %v10420_v21 = vld [vmem:[#allocation11 + $0x11e8] ss:$52 sps:$4 sm:$0xff]   ;;  %v10425_v22 = vld [vmem:[#allocation11 + $0x124c] ss:$52 sps:$4 sm:$0xff]  }
 0x2d8   :  { %7613 = vmatprep.subr.bf16.mxu0 %v10347_v12  ;;  %7777 = vmatprep.subr.bf16.mxu1 %v10350_v24  ;;  %v11777_v12 = vsub.s32 4, %v11696_v43  ;;  %v10423_v24 = vld [vmem:[#allocation11 + $0x1248] ss:$52 sps:$4 sm:$0xff]  }
 0x2da   :  { %7605 = vmatmul.mubr.bf16.vlgmr.msra.gmra.mrb[12].mxu0 %v11772_v27  ;;  %7769 = vmatmul.mubr.bf16.vlgmr.msra.gmra.mrb[12].mxu1 %v11772_v27 }
 0x2db   :  { %7614 = vmatpush1.bf16.msra.mxu0 %v10345_v25  ;;  %7778 = vmatpush1.bf16.msra.mxu1 %v10348_v26  ;;  %v10426_v25 = vld [vmem:[#allocation11 + $0x1250] ss:$52 sps:$4 sm:$0xff]   ;;  %v700_v26 = vsub.s32 5, %v11696_v43 }
 0x2dc   :  { %7615 = vmatprep.subr.bf16.mxu0 %v10353_v0  ;;  %7779 = vmatprep.subr.bf16.mxu1 %v10356_v30  ;;  %v10431_v0 = vld [vmem:[#allocation11 + $0x12b4] ss:$52 sps:$4 sm:$0xff]   ;;  %v10434_v30 = vld [vmem:[#allocation11 + $0x12bc] ss:$52 sps:$4 sm:$0xff]  }
 0x2df   :  { %7616 = vmatpush1.bf16.msra.mxu0 %v10351_v31  ;;  %7780 = vmatpush1.bf16.msra.mxu1 %v10354_v32  ;;  %v708_v31 = vsub.s32 7, %v11696_v43  ;;  %v697_v32 = vrot.slane %v11747_v56, %v11777_v12 }
 0x2e0   :  { %7617 = vmatprep.subr.bf16.mxu0 %v10359_v33  ;;  %7781 = vmatprep.subr.bf16.mxu1 %v10362_v34  ;;  %v10429_v33 = vld [vmem:[#allocation11 + $0x12b0] ss:$52 sps:$4 sm:$0xff]   ;;  %v10432_v34 = vld [vmem:[#allocation11 + $0x12b8] ss:$52 sps:$4 sm:$0xff]  }
 0x2e3   :  { %7618 = vmatpush1.bf16.msra.mxu0 %v10357_v35  ;;  %7782 = vmatpush1.bf16.msra.mxu1 %v10360_v36  ;;  %v701_v35 = vrot.slane %v11747_v56, %v700_v26  ;;  %v709_v36 = vrot.slane %v11747_v56, %v708_v31 }
 0x2e4   :  { %7619 = vmatprep.subr.bf16.mxu0 %v10365_v37  ;;  %7783 = vmatprep.subr.bf16.mxu1 %v10368_v38  ;;  %v10437_v37 = vld [vmem:[#allocation11 + $0x131c] ss:$52 sps:$4 sm:$0xff]   ;;  %v10440_v38 = vld [vmem:[#allocation11 + $0x1324] ss:$52 sps:$4 sm:$0xff]  }
 0x2e7   :  { %7620 = vmatpush1.bf16.msra.mxu0 %v10363_v39  ;;  %7784 = vmatpush1.bf16.msra.mxu1 %v10366_v40 }
 0x2e8   :  { %7621 = vmatprep.subr.bf16.mxu0 %v10371_v41  ;;  %7785 = vmatprep.subr.bf16.mxu1 %v10374_v42 }
 0x2eb   :  { %7622 = vmatpush1.bf16.msra.mxu0 %v10369_v47  ;;  %7786 = vmatpush1.bf16.msra.mxu1 %v10372_v48  ;;  %v10435_v47 = vld [vmem:[#allocation11 + $0x1318] ss:$52 sps:$4 sm:$0xff]  }
 0x2ec   :  { %7623 = vmatprep.subr.bf16.mxu0 %v10377_v49  ;;  %7787 = vmatprep.subr.bf16.mxu1 %v10380_v50 }
 0x2ef   :  { %7624 = vmatpush1.bf16.msra.mxu0 %v10375_v51  ;;  %7788 = vmatpush1.bf16.msra.mxu1 %v10378_v52  ;;  %v10438_v51 = vld [vmem:[#allocation11 + $0x1320] ss:$52 sps:$4 sm:$0xff]   ;;  %v10443_v52 = vld [vmem:[#allocation11 + $0x1384] ss:$52 sps:$4 sm:$0xff]  }
 0x2f0   :  { %7625 = vmatprep.subr.bf16.mxu0 %v10383_v62  ;;  %7789 = vmatprep.subr.bf16.mxu1 %v10386_v54 }
 0x2f3   :  { %7626 = vmatpush1.bf16.msra.mxu0 %v10381_v55  ;;  %7790 = vmatpush1.bf16.msra.mxu1 %v10384_v57 }
 0x2f4   :  { %7627 = vmatprep.subr.bf16.mxu0 %v10389_v58  ;;  %7791 = vmatprep.subr.bf16.mxu1 %v10392_v59  ;;  %v10446_v58 = vld [vmem:[#allocation11 + $0x138c] ss:$52 sps:$4 sm:$0xff]  }
 0x2f7   :  { %7628 = vmatpush1.bf16.msra.mxu0 %v10387_v60  ;;  %7792 = vmatpush1.bf16.msra.mxu1 %v10390_v1 }
 0x2f8   :  { %7629 = vmatprep.subr.bf16.mxu0 %v10395_v2  ;;  %7793 = vmatprep.subr.bf16.mxu1 %v10398_v28  ;;  %v10441_v28 = vld [vmem:[#allocation11 + $0x1380] ss:$52 sps:$4 sm:$0xff]  }
 0x2fb   :  { %7630 = vmatpush1.bf16.msra.mxu0 %v10393_v3  ;;  %7794 = vmatpush1.bf16.msra.mxu1 %v10396_v63  ;;  %v10444_v3 = vld [vmem:[#allocation11 + $0x1388] ss:$52 sps:$4 sm:$0xff]  }
 0x2fc   :  { %7631 = vmatprep.subr.bf16.mxu0 %v10401_v4  ;;  %7795 = vmatprep.subr.bf16.mxu1 %v10404_v5  ;;  %v10449_v4 = vld [vmem:[#allocation11 + $0x13ec] ss:$52 sps:$4 sm:$0xff]   ;;  %v10452_v5 = vld [vmem:[#allocation11 + $0x13f4] ss:$52 sps:$4 sm:$0xff]  }
 0x2ff   :  { %7632 = vmatpush1.bf16.msra.mxu0 %v10399_v6  ;;  %7796 = vmatpush1.bf16.msra.mxu1 %v10402_v7  ;;  %v10447_v7 = vld [vmem:[#allocation11 + $0x13e8] ss:$52 sps:$4 sm:$0xff]  }
 0x300   :  { %7633 = vmatprep.subr.bf16.mxu0 %v10407_v8  ;;  %7797 = vmatprep.subr.bf16.mxu1 %v10410_v9  ;;  %v10450_v8 = vld [vmem:[#allocation11 + $0x13f0] ss:$52 sps:$4 sm:$0xff]   ;;  %v10455_v9 = vld [vmem:[#allocation11 + $0x1454] ss:$52 sps:$4 sm:$0xff]  }
 0x303   :  { %7634 = vmatpush1.bf16.msra.mxu0 %v10405_v10  ;;  %7798 = vmatpush1.bf16.msra.mxu1 %v10408_v29  ;;  %v10458_v10 = vld [vmem:[#allocation11 + $0x145c] ss:$52 sps:$4 sm:$0xff]  }
 0x304   :  { %7635 = vmatprep.subr.bf16.mxu0 %v10413_v13  ;;  %7799 = vmatprep.subr.bf16.mxu1 %v10416_v44  ;;  %v10453_v29 = vld [vmem:[#allocation11 + $0x1450] ss:$52 sps:$4 sm:$0xff]   ;;  %v10456_v13 = vld [vmem:[#allocation11 + $0x1458] ss:$52 sps:$4 sm:$0xff]  }
 0x305   :  { %v10461_v44 = vld [vmem:[#allocation11 + $0x14bc] ss:$52 sps:$4 sm:$0xff]  }
 0x307   :  { %7636 = vmatpush1.bf16.msra.mxu0 %v10411_v15  ;;  %7800 = vmatpush1.bf16.msra.mxu1 %v10414_v17  ;;  %v10464_v15 = vld [vmem:[#allocation11 + $0x14c4] ss:$52 sps:$4 sm:$0xff]  }
 0x308   :  { %7637 = vmatprep.subr.bf16.mxu0 %v10419_v18  ;;  %7801 = vmatprep.subr.bf16.mxu1 %v10422_v19  ;;  %v10459_v17 = vld [vmem:[#allocation11 + $0x14b8] ss:$52 sps:$4 sm:$0xff]   ;;  %v10462_v18 = vld [vmem:[#allocation11 + $0x14c0] ss:$52 sps:$4 sm:$0xff]  }
 0x309   :  { %v10467_v19 = vld [vmem:[#allocation11 + $0x1524] ss:$52 sps:$4 sm:$0xff]  }
 0x30b   :  { %7638 = vmatpush1.bf16.msra.mxu0 %v10417_v20  ;;  %7802 = vmatpush1.bf16.msra.mxu1 %v10420_v21  ;;  %v10470_v20 = vld [vmem:[#allocation11 + $0x152c] ss:$52 sps:$4 sm:$0xff]  }
 0x30c   :  { %7639 = vmatprep.subr.bf16.mxu0 %v10425_v22  ;;  %7803 = vmatprep.subr.bf16.mxu1 %v10428_v23  ;;  %v10465_v21 = vld [vmem:[#allocation11 + $0x1520] ss:$52 sps:$4 sm:$0xff]   ;;  %v10468_v22 = vld [vmem:[#allocation11 + $0x1528] ss:$52 sps:$4 sm:$0xff]  }
 0x30d   :  { %v10473_v23 = vld [vmem:[#allocation11 + $0x158c] ss:$52 sps:$4 sm:$0xff]  }
 0x30f   :  { %7640 = vmatpush1.bf16.msra.mxu0 %v10423_v24  ;;  %7804 = vmatpush1.bf16.msra.mxu1 %v10426_v25  ;;  %v10476_v24 = vld [vmem:[#allocation11 + $0x1594] ss:$52 sps:$4 sm:$0xff]  }
 0x310   :  { %7641 = vmatprep.subr.bf16.mxu0 %v10431_v0  ;;  %7805 = vmatprep.subr.bf16.mxu1 %v10434_v30  ;;  %v10471_v25 = vld [vmem:[#allocation11 + $0x1588] ss:$52 sps:$4 sm:$0xff]   ;;  %v10474_v0 = vld [vmem:[#allocation11 + $0x1590] ss:$52 sps:$4 sm:$0xff]  }
 0x311   :  { %v2237_v39 = vpop.f32.mrb[8].mxu0  ;;  %v10479_v30 = vld [vmem:[#allocation11 + $0x15f4] ss:$52 sps:$4 sm:$0xff]  }
 0x312   :  { %v9985_v40 = vadd.f32 %v2237_v39, %v697_v32  ;;  %v11789_v41 = vpop.f32.mrb[8].mxu1  ;;  %v2239_v42 = vpop.f32.mrb[9].mxu0  ;;  %v10482_v32 = vld [vmem:[#allocation11 + $0x15fc] ss:$52 sps:$4 sm:$0xff]   ;;  %v10491_v39 = vld [vmem:[#allocation11 + $0x16c4] ss:$52 sps:$4 sm:$0xff]  }
 0x313   :  { %v9986_v48 = vadd.f32 %v2239_v42, %v701_v35  ;;  %v2321_v49 = vpop.f32.mrb[9].mxu1  ;;  %7642 = vmatpush1.bf16.msra.mxu0 %v10429_v33  ;;  %7806 = vmatpush1.bf16.msra.mxu1 %v10432_v34  ;;  %v2241_v50 = vpop.f32.mrb[10].mxu0  ;;  %v10477_v33 = vld [vmem:[#allocation11 + $0x15f0] ss:$52 sps:$4 sm:$0xff]   ;;  %v10480_v34 = vld [vmem:[#allocation11 + $0x15f8] ss:$52 sps:$4 sm:$0xff]  }
 0x314   :  { %v2330_v62 = vmax.f32 %v9985_v40, 0.0  ;;  %v9988_v54 = vadd.f32 %v2321_v49, %v709_v36  ;;  %v2323_v55 = vpop.f32.mrb[10].mxu1  ;;  %v2242_v57 = vpop.f32.mrb[11].mxu0  ;;  %7643 = vmatprep.subr.bf16.mxu0 %v10437_v37  ;;  %7807 = vmatprep.subr.bf16.mxu1 %v10440_v38  ;;  %v10485_v35 = vld [vmem:[#allocation11 + $0x165c] ss:$52 sps:$4 sm:$0xff]  }
 0x315   :  { %v2331_v59 = vmax.f32 %v9986_v48, 0.0  ;;  %v2324_v60 = vpop.f32.mrb[11].mxu1  ;;  %v10488_v36 = vld [vmem:[#allocation11 + $0x1664] ss:$52 sps:$4 sm:$0xff]   ;;  %v10486_v38 = vld [vmem:[#allocation11 + $0x1660] ss:$52 sps:$4 sm:$0xff]  }
 0x316   :  { %v2333_v1 = vmax.f32 %v9988_v54, 0.0  ;;  %v11793_v63 = vpack.c.bf16 %v2330_v62, %v2330_v62  ;;  %v10483_v37 = vld [vmem:[#allocation11 + $0x1658] ss:$52 sps:$4 sm:$0xff]   ;;  %v10489_v42 = vld [vmem:[#allocation11 + $0x16c0] ss:$52 sps:$4 sm:$0xff]  }
 0x317   :  { %v11791_v2 = vpack.c.bf16 %v2331_v59, %v2331_v59  ;;  %7644 = vmatpush1.bf16.msra.mxu0 %v10435_v47  ;;  %7808 = vmatpush1.bf16.msra.mxu1 %v10438_v51  ;;  %v10494_v40 = vld [vmem:[#allocation11 + $0x16cc] ss:$52 sps:$4 sm:$0xff]   ;;  %v10492_v47 = vld [vmem:[#allocation11 + $0x16c8] ss:$52 sps:$4 sm:$0xff]   ;;  %v10498_v51 = vld [vmem:[#allocation11 + $0x1730] ss:$52 sps:$4 sm:$0xff]  }
 0x318   :  { %7654 = vmatprep.subr.bf16.mxu0 %v10443_v52  ;;  %7818 = vmatprep.subr.bf16.mxu1 %v10446_v58  ;;  %v11797_v6 = vpack.c.bf16 %v2333_v1, %v2333_v1  ;;  %v10497_v48 = vld [vmem:[#allocation11 + $0x172c] ss:$52 sps:$4 sm:$0xff]   ;;  %v10500_v49 = vld [vmem:[#allocation11 + $0x1734] ss:$52 sps:$4 sm:$0xff]   ;;  %v10506_v62 = vld [vmem:[#allocation11 + $0x179c] ss:$52 sps:$4 sm:$0xff]  }
 0x319   :  { %7645 = vmatprep.mubr.bf16.mxu0 %v11791_v2  ;;  %7809 = vmatprep.mubr.bf16.mxu1 %v11791_v2  ;;  %v10495_v50 = vld [vmem:[#allocation11 + $0x1728] ss:$52 sps:$4 sm:$0xff]   ;;  %v10501_v54 = vld [vmem:[#allocation11 + $0x1790] ss:$52 sps:$4 sm:$0xff]   ;;  %v10504_v55 = vld [vmem:[#allocation11 + $0x1798] ss:$52 sps:$4 sm:$0xff]  }
 0x31a   :  { %7646 = vmatmul.mubr.bf16.vlgmr.msra.gmra.mrb[12].mxu0 %v11793_v63  ;;  %7810 = vmatmul.mubr.bf16.vlgmr.msra.gmra.mrb[12].mxu1 %v11793_v63  ;;  %v10503_v52 = vld [vmem:[#allocation11 + $0x1794] ss:$52 sps:$4 sm:$0xff]   ;;  %v10509_v57 = vld [vmem:[#allocation11 + $0x17fc] ss:$52 sps:$4 sm:$0xff]   ;;  %v10512_v58 = vld [vmem:[#allocation11 + $0x1804] ss:$52 sps:$4 sm:$0xff]  }
 0x31b   :  { %7655 = vmatpush1.bf16.msra.mxu0 %v10441_v28  ;;  %7819 = vmatpush1.bf16.msra.mxu1 %v10444_v3  ;;  %v10507_v59 = vld [vmem:[#allocation11 + $0x17f8] ss:$52 sps:$4 sm:$0xff]   ;;  %v10510_v60 = vld [vmem:[#allocation11 + $0x1800] ss:$52 sps:$4 sm:$0xff]  }
 0x31c   :  { %7686 = vmatprep.mubr.bf16.mxu0 %v11797_v6  ;;  %7850 = vmatprep.mubr.bf16.mxu1 %v11797_v6  ;;  %v10515_v1 = vld [vmem:[#allocation11 + $0x1864] ss:$52 sps:$4 sm:$0xff]   ;;  %v10518_v28 = vld [vmem:[#allocation11 + $0x186c] ss:$52 sps:$4 sm:$0xff]  }
 0x31d   :  { %7656 = vmatprep.subr.bf16.mxu0 %v10449_v4  ;;  %7820 = vmatprep.subr.bf16.mxu1 %v10452_v5  ;;  %v10513_v3 = vld [vmem:[#allocation11 + $0x1860] ss:$52 sps:$4 sm:$0xff]   ;;  %v10516_v4 = vld [vmem:[#allocation11 + $0x1868] ss:$52 sps:$4 sm:$0xff]   ;;  %v704_v5 = vsub.s32 6, %v11696_v43 }
 0x31f   :  { %7657 = vmatpush1.bf16.msra.mxu0 %v10447_v7  ;;  %7821 = vmatpush1.bf16.msra.mxu1 %v10450_v8  ;;  %v10521_v7 = vld [vmem:[#allocation11 + $0x18cc] ss:$52 sps:$4 sm:$0xff]   ;;  %v10524_v8 = vld [vmem:[#allocation11 + $0x18d4] ss:$52 sps:$4 sm:$0xff]  }
 0x320   :  { %7658 = vmatprep.subr.bf16.mxu0 %v10455_v9  ;;  %7822 = vmatprep.subr.bf16.mxu1 %v10458_v10  ;;  %v10519_v9 = vld [vmem:[#allocation11 + $0x18c8] ss:$52 sps:$4 sm:$0xff]   ;;  %v10522_v10 = vld [vmem:[#allocation11 + $0x18d0] ss:$52 sps:$4 sm:$0xff]  }
 0x323   :  { %7659 = vmatpush1.bf16.msra.mxu0 %v10453_v29  ;;  %7823 = vmatpush1.bf16.msra.mxu1 %v10456_v13  ;;  %v705_v29 = vrot.slane %v11747_v56, %v704_v5  ;;  %v10527_v13 = vld [vmem:[#allocation11 + $0x1934] ss:$52 sps:$4 sm:$0xff]  }
 0x324   :  { %7660 = vmatprep.subr.bf16.mxu0 %v10461_v44  ;;  %7824 = vmatprep.subr.bf16.mxu1 %v10464_v15  ;;  %v10530_v44 = vld [vmem:[#allocation11 + $0x193c] ss:$52 sps:$4 sm:$0xff]   ;;  %v10539_v56 = vld [vmem:[#allocation11 + $0x14] ss:$52 sps:$4 sm:$0xff]  }
 0x325   :  { %v10525_v15 = vld [vmem:[#allocation11 + $0x1930] ss:$52 sps:$4 sm:$0xff]  }
 0x327   :  { %7661 = vmatpush1.bf16.msra.mxu0 %v10459_v17  ;;  %7825 = vmatpush1.bf16.msra.mxu1 %v10462_v18  ;;  %v10528_v17 = vld [vmem:[#allocation11 + $0x1938] ss:$52 sps:$4 sm:$0xff]   ;;  %v9987_v18 = vadd.f32 %v11789_v41, %v705_v29  ;;  %v10593_v29 = vld [vmem:[#allocation11 + $0x3bc] ss:$52 sps:$4 sm:$0xff]  }
 0x328   :  { %7662 = vmatprep.subr.bf16.mxu0 %v10467_v19  ;;  %7826 = vmatprep.subr.bf16.mxu1 %v10470_v20  ;;  %v10533_v19 = vld [vmem:[#allocation11 + $0x199c] ss:$52 sps:$4 sm:$0xff]   ;;  %v10536_v20 = vld [vmem:[#allocation11 + $0x19a4] ss:$52 sps:$4 sm:$0xff]  }
 0x329   :  { %v10540_v41 = vld [vmem:[#allocation11 + $0x18] ss:$52 sps:$4 sm:$0xff]  }
 0x32b   :  { %7663 = vmatpush1.bf16.msra.mxu0 %v10465_v21  ;;  %7827 = vmatpush1.bf16.msra.mxu1 %v10468_v22  ;;  %v10531_v21 = vld [vmem:[#allocation11 + $0x1998] ss:$52 sps:$4 sm:$0xff]   ;;  %v10534_v22 = vld [vmem:[#allocation11 + $0x19a0] ss:$52 sps:$4 sm:$0xff]  }
 0x32c   :  { %7664 = vmatprep.subr.bf16.mxu0 %v10473_v23  ;;  %7828 = vmatprep.subr.bf16.mxu1 %v10476_v24  ;;  %v2332_v23 = vmax.f32 %v9987_v18, 0.0  ;;  %v10542_v24 = vld [vmem:[#allocation11 + $0x1c] ss:$52 sps:$4 sm:$0xff]   ;;  %v10602_v18 = vld [vmem:[#allocation11 + $0x42c] ss:$52 sps:$4 sm:$0xff]  }
 0x32f   :  { %7665 = vmatpush1.bf16.msra.mxu0 %v10471_v25  ;;  %7829 = vmatpush1.bf16.msra.mxu1 %v10474_v0  ;;  %v10537_v25 = vld [vmem:[#allocation11 + $0x10] ss:$52 sps:$4 sm:$0xff]   ;;  %v11808_v0 = vpack.c.bf16 %v2332_v23, %v2332_v23  ;;  %v10603_v23 = vld [vmem:[#allocation11 + $0x488] ss:$52 sps:$4 sm:$0xff]  }
 0x330   :  { %7666 = vmatprep.subr.bf16.mxu0 %v10479_v30  ;;  %7830 = vmatprep.subr.bf16.mxu1 %v10482_v32  ;;  %v10545_v30 = vld [vmem:[#allocation11 + $0x7c] ss:$52 sps:$4 sm:$0xff]   ;;  %v10548_v32 = vld [vmem:[#allocation11 + $0x84] ss:$52 sps:$4 sm:$0xff]  }
 0x333   :  { %7667 = vmatpush1.bf16.msra.mxu0 %v10477_v33  ;;  %7831 = vmatpush1.bf16.msra.mxu1 %v10480_v34  ;;  %v10543_v33 = vld [vmem:[#allocation11 + $0x78] ss:$52 sps:$4 sm:$0xff]   ;;  %v10546_v34 = vld [vmem:[#allocation11 + $0x80] ss:$52 sps:$4 sm:$0xff]  }
 0x334   :  { %7668 = vmatprep.subr.bf16.mxu0 %v10485_v35  ;;  %7832 = vmatprep.subr.bf16.mxu1 %v10488_v36  ;;  %v10551_v35 = vld [vmem:[#allocation11 + $0xe4] ss:$52 sps:$4 sm:$0xff]   ;;  %v10554_v36 = vld [vmem:[#allocation11 + $0xec] ss:$52 sps:$4 sm:$0xff]  }
 0x337   :  { %7669 = vmatpush1.bf16.msra.mxu0 %v10483_v37  ;;  %7833 = vmatpush1.bf16.msra.mxu1 %v10486_v38  ;;  %v10549_v37 = vld [vmem:[#allocation11 + $0xe0] ss:$52 sps:$4 sm:$0xff]   ;;  %v10552_v38 = vld [vmem:[#allocation11 + $0xe8] ss:$52 sps:$4 sm:$0xff]  }
 0x338   :  { %7670 = vmatprep.subr.bf16.mxu0 %v10491_v39  ;;  %7834 = vmatprep.subr.bf16.mxu1 %v10494_v40  ;;  %v10557_v39 = vld [vmem:[#allocation11 + $0x14c] ss:$52 sps:$4 sm:$0xff]   ;;  %v10560_v40 = vld [vmem:[#allocation11 + $0x154] ss:$52 sps:$4 sm:$0xff]  }
 0x33b   :  { %7671 = vmatpush1.bf16.msra.mxu0 %v10489_v42  ;;  %7835 = vmatpush1.bf16.msra.mxu1 %v10492_v47  ;;  %v10555_v42 = vld [vmem:[#allocation11 + $0x148] ss:$52 sps:$4 sm:$0xff]   ;;  %v10558_v47 = vld [vmem:[#allocation11 + $0x150] ss:$52 sps:$4 sm:$0xff]  }
 0x33c   :  { %7672 = vmatprep.subr.bf16.mxu0 %v10497_v48  ;;  %7836 = vmatprep.subr.bf16.mxu1 %v10500_v49  ;;  %v10563_v48 = vld [vmem:[#allocation11 + $0x1b4] ss:$52 sps:$4 sm:$0xff]   ;;  %v10566_v49 = vld [vmem:[#allocation11 + $0x1bc] ss:$52 sps:$4 sm:$0xff]  }
 0x33f   :  { %7673 = vmatpush1.bf16.msra.mxu0 %v10495_v50  ;;  %7837 = vmatpush1.bf16.msra.mxu1 %v10498_v51  ;;  %v10561_v50 = vld [vmem:[#allocation11 + $0x1b0] ss:$52 sps:$4 sm:$0xff]   ;;  %v10564_v51 = vld [vmem:[#allocation11 + $0x1b8] ss:$52 sps:$4 sm:$0xff]  }
 0x340   :  { %7674 = vmatprep.subr.bf16.mxu0 %v10503_v52  ;;  %7838 = vmatprep.subr.bf16.mxu1 %v10506_v62  ;;  %v10569_v52 = vld [vmem:[#allocation11 + $0x21c] ss:$52 sps:$4 sm:$0xff]   ;;  %v10572_v62 = vld [vmem:[#allocation11 + $0x224] ss:$52 sps:$4 sm:$0xff]  }
 0x343   :  { %7675 = vmatpush1.bf16.msra.mxu0 %v10501_v54  ;;  %7839 = vmatpush1.bf16.msra.mxu1 %v10504_v55  ;;  %v10567_v54 = vld [vmem:[#allocation11 + $0x218] ss:$52 sps:$4 sm:$0xff]   ;;  %v10570_v55 = vld [vmem:[#allocation11 + $0x220] ss:$52 sps:$4 sm:$0xff]  }
 0x344   :  { %7676 = vmatprep.subr.bf16.mxu0 %v10509_v57  ;;  %7840 = vmatprep.subr.bf16.mxu1 %v10512_v58  ;;  %v10575_v57 = vld [vmem:[#allocation11 + $0x284] ss:$52 sps:$4 sm:$0xff]   ;;  %v10578_v58 = vld [vmem:[#allocation11 + $0x28c] ss:$52 sps:$4 sm:$0xff]  }
 0x347   :  { %7677 = vmatpush1.bf16.msra.mxu0 %v10507_v59  ;;  %7841 = vmatpush1.bf16.msra.mxu1 %v10510_v60  ;;  %v10573_v59 = vld [vmem:[#allocation11 + $0x280] ss:$52 sps:$4 sm:$0xff]   ;;  %v10576_v60 = vld [vmem:[#allocation11 + $0x288] ss:$52 sps:$4 sm:$0xff]  }
 0x348   :  { %7678 = vmatprep.subr.bf16.mxu0 %v10515_v1  ;;  %7842 = vmatprep.subr.bf16.mxu1 %v10518_v28  ;;  %v10581_v1 = vld [vmem:[#allocation11 + $0x2ec] ss:$52 sps:$4 sm:$0xff]   ;;  %v10584_v28 = vld [vmem:[#allocation11 + $0x2f4] ss:$52 sps:$4 sm:$0xff]  }
 0x34b   :  { %7679 = vmatpush1.bf16.msra.mxu0 %v10513_v3  ;;  %7843 = vmatpush1.bf16.msra.mxu1 %v10516_v4  ;;  %v10579_v3 = vld [vmem:[#allocation11 + $0x2e8] ss:$52 sps:$4 sm:$0xff]   ;;  %v10582_v4 = vld [vmem:[#allocation11 + $0x2f0] ss:$52 sps:$4 sm:$0xff]  }
 0x34c   :  { %7680 = vmatprep.subr.bf16.mxu0 %v10521_v7  ;;  %7844 = vmatprep.subr.bf16.mxu1 %v10524_v8  ;;  %v10587_v7 = vld [vmem:[#allocation11 + $0x354] ss:$52 sps:$4 sm:$0xff]   ;;  %v10590_v8 = vld [vmem:[#allocation11 + $0x35c] ss:$52 sps:$4 sm:$0xff]  }
 0x34f   :  { %7681 = vmatpush1.bf16.msra.mxu0 %v10519_v9  ;;  %7845 = vmatpush1.bf16.msra.mxu1 %v10522_v10  ;;  %v10585_v9 = vld [vmem:[#allocation11 + $0x350] ss:$52 sps:$4 sm:$0xff]   ;;  %v10588_v10 = vld [vmem:[#allocation11 + $0x358] ss:$52 sps:$4 sm:$0xff]  }
 0x350   :  { %7682 = vmatprep.subr.bf16.mxu0 %v10527_v13  ;;  %7846 = vmatprep.subr.bf16.mxu1 %v10530_v44  ;;  %v10596_v13 = vld [vmem:[#allocation11 + $0x3c4] ss:$52 sps:$4 sm:$0xff]  }
 0x351   :  { %v10591_v44 = vld [vmem:[#allocation11 + $0x3b8] ss:$52 sps:$4 sm:$0xff]  }
 0x353   :  { %7683 = vmatpush1.bf16.msra.mxu0 %v10525_v15  ;;  %7847 = vmatpush1.bf16.msra.mxu1 %v10528_v17  ;;  %v10594_v15 = vld [vmem:[#allocation11 + $0x3c0] ss:$52 sps:$4 sm:$0xff]   ;;  %v10599_v17 = vld [vmem:[#allocation11 + $0x424] ss:$52 sps:$4 sm:$0xff]  }
 0x354   :  { %7684 = vmatprep.subr.bf16.mxu0 %v10533_v19  ;;  %7848 = vmatprep.subr.bf16.mxu1 %v10536_v20  ;;  %v10597_v19 = vld [vmem:[#allocation11 + $0x420] ss:$52 sps:$4 sm:$0xff]   ;;  %v10600_v20 = vld [vmem:[#allocation11 + $0x428] ss:$52 sps:$4 sm:$0xff]  }
 0x357   :  { %7685 = vmatpush1.bf16.msra.mxu0 %v10531_v21  ;;  %7849 = vmatpush1.bf16.msra.mxu1 %v10534_v22  ;;  %v10605_v21 = vld [vmem:[#allocation11 + $0x48c] ss:$52 sps:$4 sm:$0xff]   ;;  %v10608_v22 = vld [vmem:[#allocation11 + $0x494] ss:$52 sps:$4 sm:$0xff]  }
 0x358   :  { %7859 = vmatprep.subr.bf16.mxu0 %v10539_v56  ;;  %8023 = vmatprep.subr.bf16.mxu1 %v10542_v24  ;;  %v10606_v56 = vld [vmem:[#allocation11 + $0x490] ss:$52 sps:$4 sm:$0xff]   ;;  %v10611_v24 = vld [vmem:[#allocation11 + $0x4f4] ss:$52 sps:$4 sm:$0xff]  }
 0x35a   :  { %7687 = vmatmul.mubr.bf16.vlgmr.msra.gmra.mrb[12].mxu0 %v11808_v0  ;;  %7851 = vmatmul.mubr.bf16.vlgmr.msra.gmra.mrb[12].mxu1 %v11808_v0 }
 0x35b   :  { %7860 = vmatpush1.bf16.msra.mxu0 %v10537_v25  ;;  %7891 = vmatprep.mubr.bf16.mxu0 %v11757_v11  ;;  %v10614_v25 = vld [vmem:[#allocation11 + $0x4fc] ss:$52 sps:$4 sm:$0xff]  }
 0x35c   :  { %8024 = vmatpush1.bf16.msra.mxu1 %v10540_v41  ;;  %8055 = vmatprep.mubr.bf16.mxu1 %v11757_v11  ;;  %v10609_v41 = vld [vmem:[#allocation11 + $0x4f0] ss:$52 sps:$4 sm:$0xff]  }
 0x35d   :  { %7861 = vmatprep.subr.bf16.mxu0 %v10545_v30  ;;  %8025 = vmatprep.subr.bf16.mxu1 %v10548_v32  ;;  %v10612_v30 = vld [vmem:[#allocation11 + $0x4f8] ss:$52 sps:$4 sm:$0xff]   ;;  %v10617_v32 = vld [vmem:[#allocation11 + $0x55c] ss:$52 sps:$4 sm:$0xff]  }
 0x35f   :  { %7862 = vmatpush1.bf16.msra.mxu0 %v10543_v33  ;;  %v10620_v33 = vld [vmem:[#allocation11 + $0x564] ss:$52 sps:$4 sm:$0xff]  }
 0x360   :  { %8026 = vmatpush1.bf16.msra.mxu1 %v10546_v34  ;;  %7863 = vmatprep.subr.bf16.mxu0 %v10551_v35  ;;  %v10615_v34 = vld [vmem:[#allocation11 + $0x558] ss:$52 sps:$4 sm:$0xff]   ;;  %v10618_v35 = vld [vmem:[#allocation11 + $0x560] ss:$52 sps:$4 sm:$0xff]  }
 0x361   :  { %8027 = vmatprep.subr.bf16.mxu1 %v10554_v36  ;;  %v10623_v36 = vld [vmem:[#allocation11 + $0x5c4] ss:$52 sps:$4 sm:$0xff]  }
 0x363   :  { %7864 = vmatpush1.bf16.msra.mxu0 %v10549_v37  ;;  %v10626_v37 = vld [vmem:[#allocation11 + $0x5cc] ss:$52 sps:$4 sm:$0xff]  }
 0x364   :  { %8028 = vmatpush1.bf16.msra.mxu1 %v10552_v38  ;;  %7865 = vmatprep.subr.bf16.mxu0 %v10557_v39  ;;  %v10621_v38 = vld [vmem:[#allocation11 + $0x5c0] ss:$52 sps:$4 sm:$0xff]   ;;  %v10624_v39 = vld [vmem:[#allocation11 + $0x5c8] ss:$52 sps:$4 sm:$0xff]  }
 0x365   :  { %8029 = vmatprep.subr.bf16.mxu1 %v10560_v40  ;;  %v10629_v40 = vld [vmem:[#allocation11 + $0x62c] ss:$52 sps:$4 sm:$0xff]  }
 0x367   :  { %7866 = vmatpush1.bf16.msra.mxu0 %v10555_v42  ;;  %v10632_v42 = vld [vmem:[#allocation11 + $0x634] ss:$52 sps:$4 sm:$0xff]  }
 0x368   :  { %8030 = vmatpush1.bf16.msra.mxu1 %v10558_v47  ;;  %7867 = vmatprep.subr.bf16.mxu0 %v10563_v48  ;;  %v10627_v47 = vld [vmem:[#allocation11 + $0x628] ss:$52 sps:$4 sm:$0xff]   ;;  %v10630_v48 = vld [vmem:[#allocation11 + $0x630] ss:$52 sps:$4 sm:$0xff]  }
 0x369   :  { %8031 = vmatprep.subr.bf16.mxu1 %v10566_v49  ;;  %v10635_v49 = vld [vmem:[#allocation11 + $0x694] ss:$52 sps:$4 sm:$0xff]  }
 0x36b   :  { %7868 = vmatpush1.bf16.msra.mxu0 %v10561_v50  ;;  %v10638_v50 = vld [vmem:[#allocation11 + $0x69c] ss:$52 sps:$4 sm:$0xff]  }
 0x36c   :  { %8032 = vmatpush1.bf16.msra.mxu1 %v10564_v51  ;;  %7869 = vmatprep.subr.bf16.mxu0 %v10569_v52  ;;  %v10633_v51 = vld [vmem:[#allocation11 + $0x690] ss:$52 sps:$4 sm:$0xff]   ;;  %v10636_v52 = vld [vmem:[#allocation11 + $0x698] ss:$52 sps:$4 sm:$0xff]  }
 0x36d   :  { %8033 = vmatprep.subr.bf16.mxu1 %v10572_v62  ;;  %v10641_v62 = vld [vmem:[#allocation11 + $0x6fc] ss:$52 sps:$4 sm:$0xff]  }
 0x36f   :  { %7870 = vmatpush1.bf16.msra.mxu0 %v10567_v54  ;;  %v10644_v54 = vld [vmem:[#allocation11 + $0x704] ss:$52 sps:$4 sm:$0xff]  }
 0x370   :  { %8034 = vmatpush1.bf16.msra.mxu1 %v10570_v55  ;;  %7871 = vmatprep.subr.bf16.mxu0 %v10575_v57  ;;  %v10639_v55 = vld [vmem:[#allocation11 + $0x6f8] ss:$52 sps:$4 sm:$0xff]   ;;  %v10642_v57 = vld [vmem:[#allocation11 + $0x700] ss:$52 sps:$4 sm:$0xff]  }
 0x371   :  { %8035 = vmatprep.subr.bf16.mxu1 %v10578_v58  ;;  %v10647_v58 = vld [vmem:[#allocation11 + $0x764] ss:$52 sps:$4 sm:$0xff]  }
 0x373   :  { %7872 = vmatpush1.bf16.msra.mxu0 %v10573_v59  ;;  %v10650_v59 = vld [vmem:[#allocation11 + $0x76c] ss:$52 sps:$4 sm:$0xff]  }
 0x374   :  { %8036 = vmatpush1.bf16.msra.mxu1 %v10576_v60  ;;  %7873 = vmatprep.subr.bf16.mxu0 %v10581_v1  ;;  %v10645_v60 = vld [vmem:[#allocation11 + $0x760] ss:$52 sps:$4 sm:$0xff]   ;;  %v10648_v1 = vld [vmem:[#allocation11 + $0x768] ss:$52 sps:$4 sm:$0xff]  }
 0x375   :  { %8037 = vmatprep.subr.bf16.mxu1 %v10584_v28  ;;  %v10653_v28 = vld [vmem:[#allocation11 + $0x7cc] ss:$52 sps:$4 sm:$0xff]  }
 0x377   :  { %7874 = vmatpush1.bf16.msra.mxu0 %v10579_v3  ;;  %v10656_v3 = vld [vmem:[#allocation11 + $0x7d4] ss:$52 sps:$4 sm:$0xff]  }
 0x378   :  { %8038 = vmatpush1.bf16.msra.mxu1 %v10582_v4  ;;  %7875 = vmatprep.subr.bf16.mxu0 %v10587_v7  ;;  %v10651_v4 = vld [vmem:[#allocation11 + $0x7c8] ss:$52 sps:$4 sm:$0xff]   ;;  %v10654_v7 = vld [vmem:[#allocation11 + $0x7d0] ss:$52 sps:$4 sm:$0xff]  }
 0x379   :  { %8039 = vmatprep.subr.bf16.mxu1 %v10590_v8  ;;  %v10659_v8 = vld [vmem:[#allocation11 + $0x834] ss:$52 sps:$4 sm:$0xff]  }
 0x37b   :  { %7876 = vmatpush1.bf16.msra.mxu0 %v10585_v9  ;;  %v10662_v9 = vld [vmem:[#allocation11 + $0x83c] ss:$52 sps:$4 sm:$0xff]  }
 0x37c   :  { %8040 = vmatpush1.bf16.msra.mxu1 %v10588_v10  ;;  %7877 = vmatprep.subr.bf16.mxu0 %v10593_v29  ;;  %v10657_v10 = vld [vmem:[#allocation11 + $0x830] ss:$52 sps:$4 sm:$0xff]   ;;  %v10660_v29 = vld [vmem:[#allocation11 + $0x838] ss:$52 sps:$4 sm:$0xff]  }
 0x37d   :  { %8041 = vmatprep.subr.bf16.mxu1 %v10596_v13  ;;  %v10665_v13 = vld [vmem:[#allocation11 + $0x89c] ss:$52 sps:$4 sm:$0xff]  }
 0x37f   :  { %7878 = vmatpush1.bf16.msra.mxu0 %v10591_v44  ;;  %v10668_v44 = vld [vmem:[#allocation11 + $0x8a4] ss:$52 sps:$4 sm:$0xff]  }
 0x380   :  { %8042 = vmatpush1.bf16.msra.mxu1 %v10594_v15  ;;  %7879 = vmatprep.subr.bf16.mxu0 %v10599_v17  ;;  %v10663_v15 = vld [vmem:[#allocation11 + $0x898] ss:$52 sps:$4 sm:$0xff]   ;;  %v10666_v17 = vld [vmem:[#allocation11 + $0x8a0] ss:$52 sps:$4 sm:$0xff]  }
 0x381   :  { %8043 = vmatprep.subr.bf16.mxu1 %v10602_v18  ;;  %v10671_v18 = vld [vmem:[#allocation11 + $0x904] ss:$52 sps:$4 sm:$0xff]  }
 0x383   :  { %7880 = vmatpush1.bf16.msra.mxu0 %v10597_v19  ;;  %v10674_v19 = vld [vmem:[#allocation11 + $0x90c] ss:$52 sps:$4 sm:$0xff]  }
 0x384   :  { %8044 = vmatpush1.bf16.msra.mxu1 %v10600_v20  ;;  %7881 = vmatprep.subr.bf16.mxu0 %v10605_v21  ;;  %v10669_v20 = vld [vmem:[#allocation11 + $0x900] ss:$52 sps:$4 sm:$0xff]   ;;  %v10672_v21 = vld [vmem:[#allocation11 + $0x908] ss:$52 sps:$4 sm:$0xff]  }
 0x385   :  { %8045 = vmatprep.subr.bf16.mxu1 %v10608_v22  ;;  %v10677_v22 = vld [vmem:[#allocation11 + $0x96c] ss:$52 sps:$4 sm:$0xff]  }
 0x387   :  { %7882 = vmatpush1.bf16.msra.mxu0 %v10603_v23  ;;  %v10680_v23 = vld [vmem:[#allocation11 + $0x974] ss:$52 sps:$4 sm:$0xff]  }
 0x388   :  { %8046 = vmatpush1.bf16.msra.mxu1 %v10606_v56  ;;  %7883 = vmatprep.subr.bf16.mxu0 %v10611_v24  ;;  %v10675_v56 = vld [vmem:[#allocation11 + $0x968] ss:$52 sps:$4 sm:$0xff]   ;;  %v10678_v24 = vld [vmem:[#allocation11 + $0x970] ss:$52 sps:$4 sm:$0xff]  }
 0x389   :  { %8047 = vmatprep.subr.bf16.mxu1 %v10614_v25  ;;  %v10683_v25 = vld [vmem:[#allocation11 + $0x9d4] ss:$52 sps:$4 sm:$0xff]  }
 0x38b   :  { %7884 = vmatpush1.bf16.msra.mxu0 %v10609_v41  ;;  %v10686_v41 = vld [vmem:[#allocation11 + $0x9dc] ss:$52 sps:$4 sm:$0xff]  }
 0x38c   :  { %8048 = vmatpush1.bf16.msra.mxu1 %v10612_v30  ;;  %7885 = vmatprep.subr.bf16.mxu0 %v10617_v32  ;;  %v10681_v30 = vld [vmem:[#allocation11 + $0x9d0] ss:$52 sps:$4 sm:$0xff]   ;;  %v10684_v32 = vld [vmem:[#allocation11 + $0x9d8] ss:$52 sps:$4 sm:$0xff]  }
 0x38d   :  { %8049 = vmatprep.subr.bf16.mxu1 %v10620_v33  ;;  %v10689_v33 = vld [vmem:[#allocation11 + $0xa3c] ss:$52 sps:$4 sm:$0xff]  }
 0x38f   :  { %7886 = vmatpush1.bf16.msra.mxu0 %v10615_v34  ;;  %v10692_v34 = vld [vmem:[#allocation11 + $0xa44] ss:$52 sps:$4 sm:$0xff]  }
 0x390   :  { %8050 = vmatpush1.bf16.msra.mxu1 %v10618_v35  ;;  %7887 = vmatprep.subr.bf16.mxu0 %v10623_v36  ;;  %v10687_v35 = vld [vmem:[#allocation11 + $0xa38] ss:$52 sps:$4 sm:$0xff]   ;;  %v10690_v36 = vld [vmem:[#allocation11 + $0xa40] ss:$52 sps:$4 sm:$0xff]  }
 0x391   :  { %8051 = vmatprep.subr.bf16.mxu1 %v10626_v37  ;;  %v10695_v37 = vld [vmem:[#allocation11 + $0xaa4] ss:$52 sps:$4 sm:$0xff]  }
 0x393   :  { %7888 = vmatpush1.bf16.msra.mxu0 %v10621_v38  ;;  %v10698_v38 = vld [vmem:[#allocation11 + $0xaac] ss:$52 sps:$4 sm:$0xff]  }
 0x394   :  { %8052 = vmatpush1.bf16.msra.mxu1 %v10624_v39  ;;  %7889 = vmatprep.subr.bf16.mxu0 %v10629_v40  ;;  %v10693_v39 = vld [vmem:[#allocation11 + $0xaa0] ss:$52 sps:$4 sm:$0xff]   ;;  %v10696_v40 = vld [vmem:[#allocation11 + $0xaa8] ss:$52 sps:$4 sm:$0xff]  }
 0x395   :  { %8053 = vmatprep.subr.bf16.mxu1 %v10632_v42  ;;  %v10701_v42 = vld [vmem:[#allocation11 + $0xb0c] ss:$52 sps:$4 sm:$0xff]  }
 0x397   :  { %7890 = vmatpush1.bf16.msra.mxu0 %v10627_v47  ;;  %v10704_v47 = vld [vmem:[#allocation11 + $0xb14] ss:$52 sps:$4 sm:$0xff]  }
 0x398   :  { %8054 = vmatpush1.bf16.msra.mxu1 %v10630_v48  ;;  %7900 = vmatprep.subr.bf16.mxu0 %v10635_v49  ;;  %v10699_v48 = vld [vmem:[#allocation11 + $0xb08] ss:$52 sps:$4 sm:$0xff]   ;;  %v10702_v49 = vld [vmem:[#allocation11 + $0xb10] ss:$52 sps:$4 sm:$0xff]  }
 0x399   :  { %8064 = vmatprep.subr.bf16.mxu1 %v10638_v50  ;;  %v10707_v50 = vld [vmem:[#allocation11 + $0xb74] ss:$52 sps:$4 sm:$0xff]  }
 0x39a   :  { %7892 = vmatmul.mubr.bf16.vlgmr.msra.gmra.mrb[16].mxu0 %v11759_v14 }
 0x39b   :  { %8056 = vmatmul.mubr.bf16.vlgmr.msra.gmra.mrb[16].mxu1 %v11759_v14  ;;  %7901 = vmatpush1.bf16.msra.mxu0 %v10633_v51  ;;  %v10710_v51 = vld [vmem:[#allocation11 + $0xb7c] ss:$52 sps:$4 sm:$0xff]  }
 0x39c   :  { %7932 = vmatprep.mubr.bf16.mxu0 %v11763_v16  ;;  %8065 = vmatpush1.bf16.msra.mxu1 %v10636_v52  ;;  %v10705_v52 = vld [vmem:[#allocation11 + $0xb70] ss:$52 sps:$4 sm:$0xff]  }
 0x39d   :  { %8096 = vmatprep.mubr.bf16.mxu1 %v11763_v16  ;;  %7902 = vmatprep.subr.bf16.mxu0 %v10641_v62  ;;  %v10708_v62 = vld [vmem:[#allocation11 + $0xb78] ss:$52 sps:$4 sm:$0xff]  }
 0x39e   :  { %8066 = vmatprep.subr.bf16.mxu1 %v10644_v54  ;;  %v10713_v54 = vld [vmem:[#allocation11 + $0xbdc] ss:$52 sps:$4 sm:$0xff]  }
 0x39f   :  { %7903 = vmatpush1.bf16.msra.mxu0 %v10639_v55  ;;  %v10716_v55 = vld [vmem:[#allocation11 + $0xbe4] ss:$52 sps:$4 sm:$0xff]  }
 0x3a0   :  { %8067 = vmatpush1.bf16.msra.mxu1 %v10642_v57  ;;  %7904 = vmatprep.subr.bf16.mxu0 %v10647_v58  ;;  %v10711_v57 = vld [vmem:[#allocation11 + $0xbd8] ss:$52 sps:$4 sm:$0xff]   ;;  %v10714_v58 = vld [vmem:[#allocation11 + $0xbe0] ss:$52 sps:$4 sm:$0xff]  }
 0x3a1   :  { %8068 = vmatprep.subr.bf16.mxu1 %v10650_v59  ;;  %v10719_v59 = vld [vmem:[#allocation11 + $0xc44] ss:$52 sps:$4 sm:$0xff]  }
 0x3a3   :  { %7905 = vmatpush1.bf16.msra.mxu0 %v10645_v60  ;;  %v10722_v60 = vld [vmem:[#allocation11 + $0xc4c] ss:$52 sps:$4 sm:$0xff]  }
 0x3a4   :  { %8069 = vmatpush1.bf16.msra.mxu1 %v10648_v1  ;;  %7906 = vmatprep.subr.bf16.mxu0 %v10653_v28  ;;  %v10717_v1 = vld [vmem:[#allocation11 + $0xc40] ss:$52 sps:$4 sm:$0xff]   ;;  %v10720_v28 = vld [vmem:[#allocation11 + $0xc48] ss:$52 sps:$4 sm:$0xff]  }
 0x3a5   :  { %8070 = vmatprep.subr.bf16.mxu1 %v10656_v3  ;;  %v10725_v3 = vld [vmem:[#allocation11 + $0xcac] ss:$52 sps:$4 sm:$0xff]  }
 0x3a7   :  { %7907 = vmatpush1.bf16.msra.mxu0 %v10651_v4  ;;  %v10728_v4 = vld [vmem:[#allocation11 + $0xcb4] ss:$52 sps:$4 sm:$0xff]  }
 0x3a8   :  { %8071 = vmatpush1.bf16.msra.mxu1 %v10654_v7  ;;  %7908 = vmatprep.subr.bf16.mxu0 %v10659_v8  ;;  %v10723_v7 = vld [vmem:[#allocation11 + $0xca8] ss:$52 sps:$4 sm:$0xff]   ;;  %v10726_v8 = vld [vmem:[#allocation11 + $0xcb0] ss:$52 sps:$4 sm:$0xff]  }
 0x3a9   :  { %8072 = vmatprep.subr.bf16.mxu1 %v10662_v9  ;;  %v10731_v9 = vld [vmem:[#allocation11 + $0xd14] ss:$52 sps:$4 sm:$0xff]  }
 0x3ab   :  { %7909 = vmatpush1.bf16.msra.mxu0 %v10657_v10  ;;  %v10734_v10 = vld [vmem:[#allocation11 + $0xd1c] ss:$52 sps:$4 sm:$0xff]  }
 0x3ac   :  { %8073 = vmatpush1.bf16.msra.mxu1 %v10660_v29  ;;  %7910 = vmatprep.subr.bf16.mxu0 %v10665_v13  ;;  %v10729_v29 = vld [vmem:[#allocation11 + $0xd10] ss:$52 sps:$4 sm:$0xff]   ;;  %v10732_v13 = vld [vmem:[#allocation11 + $0xd18] ss:$52 sps:$4 sm:$0xff]  }
 0x3ad   :  { %8074 = vmatprep.subr.bf16.mxu1 %v10668_v44  ;;  %v10737_v44 = vld [vmem:[#allocation11 + $0xd7c] ss:$52 sps:$4 sm:$0xff]  }
 0x3af   :  { %7911 = vmatpush1.bf16.msra.mxu0 %v10663_v15  ;;  %v10740_v15 = vld [vmem:[#allocation11 + $0xd84] ss:$52 sps:$4 sm:$0xff]  }
 0x3b0   :  { %8075 = vmatpush1.bf16.msra.mxu1 %v10666_v17  ;;  %7912 = vmatprep.subr.bf16.mxu0 %v10671_v18  ;;  %v10735_v17 = vld [vmem:[#allocation11 + $0xd78] ss:$52 sps:$4 sm:$0xff]   ;;  %v10738_v18 = vld [vmem:[#allocation11 + $0xd80] ss:$52 sps:$4 sm:$0xff]  }
 0x3b1   :  { %8076 = vmatprep.subr.bf16.mxu1 %v10674_v19  ;;  %v10743_v19 = vld [vmem:[#allocation11 + $0xde4] ss:$52 sps:$4 sm:$0xff]  }
 0x3b3   :  { %7913 = vmatpush1.bf16.msra.mxu0 %v10669_v20  ;;  %v10746_v20 = vld [vmem:[#allocation11 + $0xdec] ss:$52 sps:$4 sm:$0xff]  }
 0x3b4   :  { %8077 = vmatpush1.bf16.msra.mxu1 %v10672_v21  ;;  %7914 = vmatprep.subr.bf16.mxu0 %v10677_v22  ;;  %v10741_v21 = vld [vmem:[#allocation11 + $0xde0] ss:$52 sps:$4 sm:$0xff]   ;;  %v10744_v22 = vld [vmem:[#allocation11 + $0xde8] ss:$52 sps:$4 sm:$0xff]  }
 0x3b5   :  { %8078 = vmatprep.subr.bf16.mxu1 %v10680_v23  ;;  %v10749_v23 = vld [vmem:[#allocation11 + $0xe4c] ss:$52 sps:$4 sm:$0xff]  }
 0x3b7   :  { %7915 = vmatpush1.bf16.msra.mxu0 %v10675_v56  ;;  %v10752_v56 = vld [vmem:[#allocation11 + $0xe54] ss:$52 sps:$4 sm:$0xff]  }
 0x3b8   :  { %8079 = vmatpush1.bf16.msra.mxu1 %v10678_v24  ;;  %7916 = vmatprep.subr.bf16.mxu0 %v10683_v25  ;;  %v10747_v24 = vld [vmem:[#allocation11 + $0xe48] ss:$52 sps:$4 sm:$0xff]   ;;  %v10750_v25 = vld [vmem:[#allocation11 + $0xe50] ss:$52 sps:$4 sm:$0xff]  }
 0x3b9   :  { %8080 = vmatprep.subr.bf16.mxu1 %v10686_v41  ;;  %v10755_v41 = vld [vmem:[#allocation11 + $0xeb4] ss:$52 sps:$4 sm:$0xff]  }
 0x3bb   :  { %7917 = vmatpush1.bf16.msra.mxu0 %v10681_v30  ;;  %v10758_v30 = vld [vmem:[#allocation11 + $0xebc] ss:$52 sps:$4 sm:$0xff]  }
 0x3bc   :  { %8081 = vmatpush1.bf16.msra.mxu1 %v10684_v32  ;;  %7918 = vmatprep.subr.bf16.mxu0 %v10689_v33  ;;  %v10753_v32 = vld [vmem:[#allocation11 + $0xeb0] ss:$52 sps:$4 sm:$0xff]   ;;  %v10756_v33 = vld [vmem:[#allocation11 + $0xeb8] ss:$52 sps:$4 sm:$0xff]  }
 0x3bd   :  { %8082 = vmatprep.subr.bf16.mxu1 %v10692_v34  ;;  %v10761_v34 = vld [vmem:[#allocation11 + $0xf1c] ss:$52 sps:$4 sm:$0xff]  }
 0x3bf   :  { %7919 = vmatpush1.bf16.msra.mxu0 %v10687_v35  ;;  %v10764_v35 = vld [vmem:[#allocation11 + $0xf24] ss:$52 sps:$4 sm:$0xff]  }
 0x3c0   :  { %8083 = vmatpush1.bf16.msra.mxu1 %v10690_v36  ;;  %7920 = vmatprep.subr.bf16.mxu0 %v10695_v37  ;;  %v10759_v36 = vld [vmem:[#allocation11 + $0xf18] ss:$52 sps:$4 sm:$0xff]   ;;  %v10762_v37 = vld [vmem:[#allocation11 + $0xf20] ss:$52 sps:$4 sm:$0xff]  }
 0x3c1   :  { %8084 = vmatprep.subr.bf16.mxu1 %v10698_v38  ;;  %v10767_v38 = vld [vmem:[#allocation11 + $0xf84] ss:$52 sps:$4 sm:$0xff]  }
 0x3c3   :  { %7921 = vmatpush1.bf16.msra.mxu0 %v10693_v39  ;;  %v10770_v39 = vld [vmem:[#allocation11 + $0xf8c] ss:$52 sps:$4 sm:$0xff]  }
 0x3c4   :  { %8085 = vmatpush1.bf16.msra.mxu1 %v10696_v40  ;;  %7922 = vmatprep.subr.bf16.mxu0 %v10701_v42  ;;  %v10765_v40 = vld [vmem:[#allocation11 + $0xf80] ss:$52 sps:$4 sm:$0xff]   ;;  %v10768_v42 = vld [vmem:[#allocation11 + $0xf88] ss:$52 sps:$4 sm:$0xff]  }
 0x3c5   :  { %8086 = vmatprep.subr.bf16.mxu1 %v10704_v47  ;;  %v10773_v47 = vld [vmem:[#allocation11 + $0xfec] ss:$52 sps:$4 sm:$0xff]  }
 0x3c7   :  { %7923 = vmatpush1.bf16.msra.mxu0 %v10699_v48  ;;  %v10776_v48 = vld [vmem:[#allocation11 + $0xff4] ss:$52 sps:$4 sm:$0xff]  }
 0x3c8   :  { %8087 = vmatpush1.bf16.msra.mxu1 %v10702_v49  ;;  %7924 = vmatprep.subr.bf16.mxu0 %v10707_v50  ;;  %v10771_v49 = vld [vmem:[#allocation11 + $0xfe8] ss:$52 sps:$4 sm:$0xff]   ;;  %v10774_v50 = vld [vmem:[#allocation11 + $0xff0] ss:$52 sps:$4 sm:$0xff]  }
 0x3c9   :  { %8088 = vmatprep.subr.bf16.mxu1 %v10710_v51  ;;  %v10779_v51 = vld [vmem:[#allocation11 + $0x1054] ss:$52 sps:$4 sm:$0xff]  }
 0x3cb   :  { %7925 = vmatpush1.bf16.msra.mxu0 %v10705_v52  ;;  %v10782_v52 = vld [vmem:[#allocation11 + $0x105c] ss:$52 sps:$4 sm:$0xff]  }
 0x3cc   :  { %8089 = vmatpush1.bf16.msra.mxu1 %v10708_v62  ;;  %7926 = vmatprep.subr.bf16.mxu0 %v10713_v54  ;;  %v10777_v62 = vld [vmem:[#allocation11 + $0x1050] ss:$52 sps:$4 sm:$0xff]   ;;  %v10780_v54 = vld [vmem:[#allocation11 + $0x1058] ss:$52 sps:$4 sm:$0xff]  }
 0x3cd   :  { %8090 = vmatprep.subr.bf16.mxu1 %v10716_v55  ;;  %v10785_v55 = vld [vmem:[#allocation11 + $0x10bc] ss:$52 sps:$4 sm:$0xff]  }
 0x3cf   :  { %7927 = vmatpush1.bf16.msra.mxu0 %v10711_v57  ;;  %v10788_v57 = vld [vmem:[#allocation11 + $0x10c4] ss:$52 sps:$4 sm:$0xff]  }
 0x3d0   :  { %8091 = vmatpush1.bf16.msra.mxu1 %v10714_v58  ;;  %7928 = vmatprep.subr.bf16.mxu0 %v10719_v59  ;;  %v10783_v58 = vld [vmem:[#allocation11 + $0x10b8] ss:$52 sps:$4 sm:$0xff]   ;;  %v10786_v59 = vld [vmem:[#allocation11 + $0x10c0] ss:$52 sps:$4 sm:$0xff]  }
 0x3d1   :  { %8092 = vmatprep.subr.bf16.mxu1 %v10722_v60  ;;  %v10791_v60 = vld [vmem:[#allocation11 + $0x1124] ss:$52 sps:$4 sm:$0xff]  }
 0x3d3   :  { %7929 = vmatpush1.bf16.msra.mxu0 %v10717_v1  ;;  %v10794_v1 = vld [vmem:[#allocation11 + $0x112c] ss:$52 sps:$4 sm:$0xff]  }
 0x3d4   :  { %8093 = vmatpush1.bf16.msra.mxu1 %v10720_v28  ;;  %7930 = vmatprep.subr.bf16.mxu0 %v10725_v3  ;;  %v10789_v28 = vld [vmem:[#allocation11 + $0x1120] ss:$52 sps:$4 sm:$0xff]   ;;  %v10792_v3 = vld [vmem:[#allocation11 + $0x1128] ss:$52 sps:$4 sm:$0xff]  }
 0x3d5   :  { %8094 = vmatprep.subr.bf16.mxu1 %v10728_v4  ;;  %v10797_v4 = vld [vmem:[#allocation11 + $0x118c] ss:$52 sps:$4 sm:$0xff]  }
 0x3d7   :  { %7931 = vmatpush1.bf16.msra.mxu0 %v10723_v7  ;;  %v10800_v7 = vld [vmem:[#allocation11 + $0x1194] ss:$52 sps:$4 sm:$0xff]  }
 0x3d8   :  { %8095 = vmatpush1.bf16.msra.mxu1 %v10726_v8  ;;  %7941 = vmatprep.subr.bf16.mxu0 %v10731_v9  ;;  %v10795_v8 = vld [vmem:[#allocation11 + $0x1188] ss:$52 sps:$4 sm:$0xff]   ;;  %v10798_v9 = vld [vmem:[#allocation11 + $0x1190] ss:$52 sps:$4 sm:$0xff]  }
 0x3d9   :  { %8105 = vmatprep.subr.bf16.mxu1 %v10734_v10  ;;  %v10803_v10 = vld [vmem:[#allocation11 + $0x11f4] ss:$52 sps:$4 sm:$0xff]  }
 0x3da   :  { %7933 = vmatmul.mubr.bf16.vlgmr.msra.gmra.mrb[16].mxu0 %v11772_v27 }
 0x3db   :  { %8097 = vmatmul.mubr.bf16.vlgmr.msra.gmra.mrb[16].mxu1 %v11772_v27  ;;  %7942 = vmatpush1.bf16.msra.mxu0 %v10729_v29  ;;  %v10806_v29 = vld [vmem:[#allocation11 + $0x11fc] ss:$52 sps:$4 sm:$0xff]  }
 0x3dc   :  { %7973 = vmatprep.mubr.bf16.mxu0 %v11791_v2  ;;  %8106 = vmatpush1.bf16.msra.mxu1 %v10732_v13  ;;  %v10801_v13 = vld [vmem:[#allocation11 + $0x11f0] ss:$52 sps:$4 sm:$0xff]  }
 0x3dd   :  { %8137 = vmatprep.mubr.bf16.mxu1 %v11791_v2  ;;  %7943 = vmatprep.subr.bf16.mxu0 %v10737_v44  ;;  %v10804_v44 = vld [vmem:[#allocation11 + $0x11f8] ss:$52 sps:$4 sm:$0xff]  }
 0x3de   :  { %8107 = vmatprep.subr.bf16.mxu1 %v10740_v15  ;;  %v10809_v15 = vld [vmem:[#allocation11 + $0x125c] ss:$52 sps:$4 sm:$0xff]  }
 0x3df   :  { %7944 = vmatpush1.bf16.msra.mxu0 %v10735_v17  ;;  %v10812_v17 = vld [vmem:[#allocation11 + $0x1264] ss:$52 sps:$4 sm:$0xff]  }
 0x3e0   :  { %8108 = vmatpush1.bf16.msra.mxu1 %v10738_v18  ;;  %7945 = vmatprep.subr.bf16.mxu0 %v10743_v19  ;;  %v10807_v18 = vld [vmem:[#allocation11 + $0x1258] ss:$52 sps:$4 sm:$0xff]   ;;  %v10810_v19 = vld [vmem:[#allocation11 + $0x1260] ss:$52 sps:$4 sm:$0xff]  }
 0x3e1   :  { %8109 = vmatprep.subr.bf16.mxu1 %v10746_v20  ;;  %v10815_v20 = vld [vmem:[#allocation11 + $0x12c4] ss:$52 sps:$4 sm:$0xff]  }
 0x3e3   :  { %7946 = vmatpush1.bf16.msra.mxu0 %v10741_v21  ;;  %v10818_v21 = vld [vmem:[#allocation11 + $0x12cc] ss:$52 sps:$4 sm:$0xff]  }
 0x3e4   :  { %8110 = vmatpush1.bf16.msra.mxu1 %v10744_v22  ;;  %7947 = vmatprep.subr.bf16.mxu0 %v10749_v23  ;;  %v10813_v22 = vld [vmem:[#allocation11 + $0x12c0] ss:$52 sps:$4 sm:$0xff]   ;;  %v10816_v23 = vld [vmem:[#allocation11 + $0x12c8] ss:$52 sps:$4 sm:$0xff]  }
 0x3e5   :  { %8111 = vmatprep.subr.bf16.mxu1 %v10752_v56  ;;  %v10821_v56 = vld [vmem:[#allocation11 + $0x132c] ss:$52 sps:$4 sm:$0xff]  }
 0x3e7   :  { %7948 = vmatpush1.bf16.msra.mxu0 %v10747_v24  ;;  %v10824_v24 = vld [vmem:[#allocation11 + $0x1334] ss:$52 sps:$4 sm:$0xff]  }
 0x3e8   :  { %8112 = vmatpush1.bf16.msra.mxu1 %v10750_v25  ;;  %7949 = vmatprep.subr.bf16.mxu0 %v10755_v41  ;;  %v10819_v25 = vld [vmem:[#allocation11 + $0x1328] ss:$52 sps:$4 sm:$0xff]   ;;  %v10822_v41 = vld [vmem:[#allocation11 + $0x1330] ss:$52 sps:$4 sm:$0xff]  }
 0x3e9   :  { %8113 = vmatprep.subr.bf16.mxu1 %v10758_v30  ;;  %v10827_v30 = vld [vmem:[#allocation11 + $0x1394] ss:$52 sps:$4 sm:$0xff]  }
 0x3eb   :  { %7950 = vmatpush1.bf16.msra.mxu0 %v10753_v32  ;;  %v10830_v32 = vld [vmem:[#allocation11 + $0x139c] ss:$52 sps:$4 sm:$0xff]  }
 0x3ec   :  { %8114 = vmatpush1.bf16.msra.mxu1 %v10756_v33  ;;  %7951 = vmatprep.subr.bf16.mxu0 %v10761_v34  ;;  %v10825_v33 = vld [vmem:[#allocation11 + $0x1390] ss:$52 sps:$4 sm:$0xff]   ;;  %v10828_v34 = vld [vmem:[#allocation11 + $0x1398] ss:$52 sps:$4 sm:$0xff]  }
 0x3ed   :  { %8115 = vmatprep.subr.bf16.mxu1 %v10764_v35  ;;  %v10833_v35 = vld [vmem:[#allocation11 + $0x13fc] ss:$52 sps:$4 sm:$0xff]  }
 0x3ef   :  { %7952 = vmatpush1.bf16.msra.mxu0 %v10759_v36  ;;  %v10836_v36 = vld [vmem:[#allocation11 + $0x1404] ss:$52 sps:$4 sm:$0xff]  }
 0x3f0   :  { %8116 = vmatpush1.bf16.msra.mxu1 %v10762_v37  ;;  %7953 = vmatprep.subr.bf16.mxu0 %v10767_v38  ;;  %v10831_v37 = vld [vmem:[#allocation11 + $0x13f8] ss:$52 sps:$4 sm:$0xff]   ;;  %v10834_v38 = vld [vmem:[#allocation11 + $0x1400] ss:$52 sps:$4 sm:$0xff]  }
 0x3f1   :  { %8117 = vmatprep.subr.bf16.mxu1 %v10770_v39  ;;  %v10839_v39 = vld [vmem:[#allocation11 + $0x1464] ss:$52 sps:$4 sm:$0xff]  }
 0x3f3   :  { %7954 = vmatpush1.bf16.msra.mxu0 %v10765_v40  ;;  %v10842_v40 = vld [vmem:[#allocation11 + $0x146c] ss:$52 sps:$4 sm:$0xff]  }
 0x3f4   :  { %8118 = vmatpush1.bf16.msra.mxu1 %v10768_v42  ;;  %7955 = vmatprep.subr.bf16.mxu0 %v10773_v47  ;;  %v10837_v42 = vld [vmem:[#allocation11 + $0x1460] ss:$52 sps:$4 sm:$0xff]   ;;  %v10840_v47 = vld [vmem:[#allocation11 + $0x1468] ss:$52 sps:$4 sm:$0xff]  }
 0x3f5   :  { %8119 = vmatprep.subr.bf16.mxu1 %v10776_v48  ;;  %v10845_v48 = vld [vmem:[#allocation11 + $0x14cc] ss:$52 sps:$4 sm:$0xff]  }
 0x3f7   :  { %7956 = vmatpush1.bf16.msra.mxu0 %v10771_v49  ;;  %v10848_v49 = vld [vmem:[#allocation11 + $0x14d4] ss:$52 sps:$4 sm:$0xff]  }
 0x3f8   :  { %8120 = vmatpush1.bf16.msra.mxu1 %v10774_v50  ;;  %7957 = vmatprep.subr.bf16.mxu0 %v10779_v51  ;;  %v10843_v50 = vld [vmem:[#allocation11 + $0x14c8] ss:$52 sps:$4 sm:$0xff]   ;;  %v10846_v51 = vld [vmem:[#allocation11 + $0x14d0] ss:$52 sps:$4 sm:$0xff]  }
 0x3f9   :  { %8121 = vmatprep.subr.bf16.mxu1 %v10782_v52  ;;  %v10851_v52 = vld [vmem:[#allocation11 + $0x1534] ss:$52 sps:$4 sm:$0xff]  }
 0x3fb   :  { %7958 = vmatpush1.bf16.msra.mxu0 %v10777_v62  ;;  %v10854_v62 = vld [vmem:[#allocation11 + $0x153c] ss:$52 sps:$4 sm:$0xff]  }
 0x3fc   :  { %8122 = vmatpush1.bf16.msra.mxu1 %v10780_v54  ;;  %7959 = vmatprep.subr.bf16.mxu0 %v10785_v55  ;;  %v10849_v54 = vld [vmem:[#allocation11 + $0x1530] ss:$52 sps:$4 sm:$0xff]  }
 0x3fd   :  { %8123 = vmatprep.subr.bf16.mxu1 %v10788_v57  ;;  %v3238_v55 = vld [vmem:[#allocation13] sm:$0xff]  ;;  %v11570_v57 = vmov 1983009808  }
 0x3ff   :  { %7960 = vmatpush1.bf16.msra.mxu0 %v10783_v58  ;;  %v8691_v58 = vunpack.c.l.s4 %v11570_v57  ;;  %v10890_v57 = vld [vmem:[#allocation11 + $0x17ac] ss:$52 sps:$4 sm:$0xff]  }
 0x400   :  { %8124 = vmatpush1.bf16.msra.mxu1 %v10786_v59  ;;  %7961 = vmatprep.subr.bf16.mxu0 %v10791_v60  ;;  %v10852_v59 = vld [vmem:[#allocation11 + $0x1538] ss:$52 sps:$4 sm:$0xff]   ;;  %v10857_v60 = vld [vmem:[#allocation11 + $0x159c] ss:$52 sps:$4 sm:$0xff]  }
 0x401   :  { %8125 = vmatprep.subr.bf16.mxu1 %v10794_v1  ;;  %v10860_v1 = vld [vmem:[#allocation11 + $0x15a4] ss:$52 sps:$4 sm:$0xff]  }
 0x403   :  { %7962 = vmatpush1.bf16.msra.mxu0 %v10789_v28  ;;  %v3245_v28 = vrot.slane %v3238_v55, %v11701_v45 }
 0x404   :  { %8126 = vmatpush1.bf16.msra.mxu1 %v10792_v3  ;;  %7963 = vmatprep.subr.bf16.mxu0 %v10797_v4  ;;  %v3253_v3 = vrot.slane %v3238_v55, %v11730_v53  ;;  %v3249_v4 = vrot.slane %v3238_v55, %v11704_v46 }
 0x405   :  { %8127 = vmatprep.subr.bf16.mxu1 %v10800_v7  ;;  %v8692_v7 = vunpack.c.0.s8 %v8691_v58  ;;  %v10885_v58 = vld [vmem:[#allocation11 + $0x17a0] ss:$52 sps:$4 sm:$0xff]  }
 0x407   :  { %7964 = vmatpush1.bf16.msra.mxu0 %v10795_v8  ;;  %v3257_v8 = vrot.slane %v3238_v55, %v11711_v61  ;;  %v10887_v55 = vld [vmem:[#allocation11 + $0x17a4] ss:$52 sps:$4 sm:$0xff]  }
 0x408   :  { %8128 = vmatpush1.bf16.msra.mxu1 %v10798_v9  ;;  %7965 = vmatprep.subr.bf16.mxu0 %v10803_v10  ;;  %v10855_v9 = vld [vmem:[#allocation11 + $0x1598] ss:$52 sps:$4 sm:$0xff]   ;;  %v10858_v10 = vld [vmem:[#allocation11 + $0x15a0] ss:$52 sps:$4 sm:$0xff]  }
 0x409   :  { %8129 = vmatprep.subr.bf16.mxu1 %v10806_v29  ;;  %v10863_v29 = vld [vmem:[#allocation11 + $0x1604] ss:$52 sps:$4 sm:$0xff]  }
 0x40b   :  { %7966 = vmatpush1.bf16.msra.mxu0 %v10801_v13 }
 0x40c   :  { %8130 = vmatpush1.bf16.msra.mxu1 %v10804_v44  ;;  %7967 = vmatprep.subr.bf16.mxu0 %v10809_v15  ;;  %v10866_v15 = vld [vmem:[#allocation11 + $0x160c] ss:$52 sps:$4 sm:$0xff]  }
 0x40d   :  { %8131 = vmatprep.subr.bf16.mxu1 %v10812_v17 }
 0x40f   :  { %7968 = vmatpush1.bf16.msra.mxu0 %v10807_v18 }
 0x410   :  { %8132 = vmatpush1.bf16.msra.mxu1 %v10810_v19  ;;  %7969 = vmatprep.subr.bf16.mxu0 %v10815_v20 }
 0x411   :  { %8133 = vmatprep.subr.bf16.mxu1 %v10818_v21 }
 0x413   :  { %7970 = vmatpush1.bf16.msra.mxu0 %v10813_v22  ;;  %v11831_v22 = vsub.s32 %v8692_v7, %v11696_v43  ;;  %v10902_v7 = vld [vmem:[#allocation11 + $0x187c] ss:$52 sps:$4 sm:$0xff]  }
 0x414   :  { %8134 = vmatpush1.bf16.msra.mxu1 %v10816_v23  ;;  %7971 = vmatprep.subr.bf16.mxu0 %v10821_v56 }
 0x415   :  { %8135 = vmatprep.subr.bf16.mxu1 %v10824_v24 }
 0x417   :  { %7972 = vmatpush1.bf16.msra.mxu0 %v10819_v25  ;;  %v10861_v25 = vld [vmem:[#allocation11 + $0x1600] ss:$52 sps:$4 sm:$0xff]  }
 0x418   :  { %8136 = vmatpush1.bf16.msra.mxu1 %v10822_v41  ;;  %7982 = vmatprep.subr.bf16.mxu0 %v10827_v30 }
 0x419   :  { %8146 = vmatprep.subr.bf16.mxu1 %v10830_v32  ;;  %v10864_v32 = vld [vmem:[#allocation11 + $0x1608] ss:$52 sps:$4 sm:$0xff]  }
 0x41a   :  { %7974 = vmatmul.mubr.bf16.vlgmr.msra.gmra.mrb[16].mxu0 %v11793_v63 }
 0x41b   :  { %8138 = vmatmul.mubr.bf16.vlgmr.msra.gmra.mrb[16].mxu1 %v11793_v63  ;;  %7983 = vmatpush1.bf16.msra.mxu0 %v10825_v33  ;;  %v10869_v33 = vld [vmem:[#allocation11 + $0x166c] ss:$52 sps:$4 sm:$0xff]  }
 0x41c   :  { %8014 = vmatprep.mubr.bf16.mxu0 %v11797_v6  ;;  %8147 = vmatpush1.bf16.msra.mxu1 %v10828_v34 }
 0x41d   :  { %8178 = vmatprep.mubr.bf16.mxu1 %v11797_v6  ;;  %7984 = vmatprep.subr.bf16.mxu0 %v10833_v35 }
 0x41e   :  { %8148 = vmatprep.subr.bf16.mxu1 %v10836_v36  ;;  %v10872_v36 = vld [vmem:[#allocation11 + $0x1674] ss:$52 sps:$4 sm:$0xff]  }
 0x41f   :  { %7985 = vmatpush1.bf16.msra.mxu0 %v10831_v37 }
 0x420   :  { %8149 = vmatpush1.bf16.msra.mxu1 %v10834_v38  ;;  %7986 = vmatprep.subr.bf16.mxu0 %v10839_v39  ;;  %v10867_v39 = vld [vmem:[#allocation11 + $0x1668] ss:$52 sps:$4 sm:$0xff]  }
 0x421   :  { %8150 = vmatprep.subr.bf16.mxu1 %v10842_v40  ;;  %v10870_v40 = vld [vmem:[#allocation11 + $0x1670] ss:$52 sps:$4 sm:$0xff]  }
 0x423   :  { %7987 = vmatpush1.bf16.msra.mxu0 %v10837_v42  ;;  %v10875_v42 = vld [vmem:[#allocation11 + $0x16d4] ss:$52 sps:$4 sm:$0xff]  }
 0x424   :  { %8151 = vmatpush1.bf16.msra.mxu1 %v10840_v47  ;;  %7988 = vmatprep.subr.bf16.mxu0 %v10845_v48  ;;  %v10878_v48 = vld [vmem:[#allocation11 + $0x16dc] ss:$52 sps:$4 sm:$0xff]  }
 0x425   :  { %8152 = vmatprep.subr.bf16.mxu1 %v10848_v49  ;;  %v10873_v49 = vld [vmem:[#allocation11 + $0x16d0] ss:$52 sps:$4 sm:$0xff]  }
 0x427   :  { %7989 = vmatpush1.bf16.msra.mxu0 %v10843_v50  ;;  %v10876_v50 = vld [vmem:[#allocation11 + $0x16d8] ss:$52 sps:$4 sm:$0xff]  }
 0x428   :  { %8153 = vmatpush1.bf16.msra.mxu1 %v10846_v51  ;;  %7990 = vmatprep.subr.bf16.mxu0 %v10851_v52  ;;  %v10881_v51 = vld [vmem:[#allocation11 + $0x173c] ss:$52 sps:$4 sm:$0xff]   ;;  %v10884_v52 = vld [vmem:[#allocation11 + $0x1744] ss:$52 sps:$4 sm:$0xff]  }
 0x429   :  { %8154 = vmatprep.subr.bf16.mxu1 %v10854_v62  ;;  %v10879_v62 = vld [vmem:[#allocation11 + $0x1738] ss:$52 sps:$4 sm:$0xff]  }
 0x42b   :  { %7991 = vmatpush1.bf16.msra.mxu0 %v10849_v54  ;;  %v10882_v54 = vld [vmem:[#allocation11 + $0x1740] ss:$52 sps:$4 sm:$0xff]  }
 0x42c   :  { %8155 = vmatpush1.bf16.msra.mxu1 %v10852_v59  ;;  %7992 = vmatprep.subr.bf16.mxu0 %v10857_v60  ;;  %v10888_v59 = vld [vmem:[#allocation11 + $0x17a8] ss:$52 sps:$4 sm:$0xff]   ;;  %v10893_v60 = vld [vmem:[#allocation11 + $0x180c] ss:$52 sps:$4 sm:$0xff]  }
 0x42d   :  { %v7688_v13 = vpop.f32.mrb[12].mxu0  ;;  %v7852_v44 = vpop.f32.mrb[12].mxu1  ;;  %8156 = vmatprep.subr.bf16.mxu1 %v10860_v1  ;;  %v10896_v1 = vld [vmem:[#allocation11 + $0x1814] ss:$52 sps:$4 sm:$0xff]  }
 0x42e   :  { %v9989_v17 = vadd.f32 %v7688_v13, %v3245_v28  ;;  %v9991_v18 = vadd.f32 %v7852_v44, %v3253_v3  ;;  %v7690_v19 = vpop.f32.mrb[13].mxu0  ;;  %v7854_v20 = vpop.f32.mrb[13].mxu1  ;;  %v10891_v28 = vld [vmem:[#allocation11 + $0x1808] ss:$52 sps:$4 sm:$0xff]   ;;  %v10894_v3 = vld [vmem:[#allocation11 + $0x1810] ss:$52 sps:$4 sm:$0xff]  }
 0x42f   :  { %v9990_v21 = vadd.f32 %v7690_v19, %v3249_v4  ;;  %v9992_v23 = vadd.f32 %v7854_v20, %v3257_v8  ;;  %v7692_v56 = vpop.f32.mrb[14].mxu0  ;;  %v7856_v24 = vpop.f32.mrb[14].mxu1  ;;  %7993 = vmatpush1.bf16.msra.mxu0 %v10855_v9  ;;  %v10899_v4 = vld [vmem:[#allocation11 + $0x1874] ss:$52 sps:$4 sm:$0xff]   ;;  %v10897_v8 = vld [vmem:[#allocation11 + $0x1870] ss:$52 sps:$4 sm:$0xff]  }
 0x430   :  { %8157 = vmatpush1.bf16.msra.mxu1 %v10858_v10  ;;  %v7693_v41 = vpop.f32.mrb[15].mxu0  ;;  %v7857_v30 = vpop.f32.mrb[15].mxu1  ;;  %7994 = vmatprep.subr.bf16.mxu0 %v10863_v29  ;;  %v10900_v9 = vld [vmem:[#allocation11 + $0x1878] ss:$52 sps:$4 sm:$0xff]   ;;  %v10905_v10 = vld [vmem:[#allocation11 + $0x18dc] ss:$52 sps:$4 sm:$0xff]  }
 0x431   :  { %v8688_v34 = vcombine.low %v9989_v17, %v9990_v21  ;;  %v8689_v35 = vcombine.low %v9991_v18, %v9992_v23  ;;  %8158 = vmatprep.subr.bf16.mxu1 %v10866_v15  ;;  %v10908_v29 = vld [vmem:[#allocation11 + $0x18e4] ss:$52 sps:$4 sm:$0xff]   ;;  %v10906_v44 = vld [vmem:[#allocation11 + $0x18e0] ss:$52 sps:$4 sm:$0xff]   ;;  %v10912_v19 = vld [vmem:[#allocation11 + $0x1948] ss:$52 sps:$4 sm:$0xff]  }
 0x432   :  { %v10903_v13 = vld [vmem:[#allocation11 + $0x18d8] ss:$52 sps:$4 sm:$0xff]   ;;  %v10909_v18 = vld [vmem:[#allocation11 + $0x1940] ss:$52 sps:$4 sm:$0xff]   ;;  %v10915_v23 = vld [vmem:[#allocation11 + $0x19a8] ss:$52 sps:$4 sm:$0xff]  }
 0x433   :  { %v8696_v37 = vrot.slane %v8688_v34, %v11831_v22  ;;  %v8703_v38 = vrot.slane %v8689_v35, %v11831_v22  ;;  %7995 = vmatpush1.bf16.msra.mxu0 %v10861_v25  ;;  %v10911_v15 = vld [vmem:[#allocation11 + $0x1944] ss:$52 sps:$4 sm:$0xff]   ;;  %v10914_v17 = vld [vmem:[#allocation11 + $0x194c] ss:$52 sps:$4 sm:$0xff]   ;;  %v10920_v21 = vld [vmem:[#allocation11 + $0x19b4] ss:$52 sps:$4 sm:$0xff]  }
 0x434   :  { %8159 = vmatpush1.bf16.msra.mxu1 %v10864_v32  ;;  %7996 = vmatprep.subr.bf16.mxu0 %v10869_v33  ;;  %v10917_v20 = vld [vmem:[#allocation11 + $0x19ac] ss:$52 sps:$4 sm:$0xff]   ;;  %v10918_v56 = vld [vmem:[#allocation11 + $0x19b0] ss:$52 sps:$4 sm:$0xff]   ;;  %v10924_v30 = vld [vmem:[#allocation11 + $0x28] ss:$52 sps:$4 sm:$0xff]  }
 0x435   :  { %v8704_v47 = vcombine.low %v8696_v37, %v8703_v38  ;;  %8160 = vmatprep.subr.bf16.mxu1 %v10872_v36  ;;  %v10923_v24 = vld [vmem:[#allocation11 + $0x24] ss:$52 sps:$4 sm:$0xff]   ;;  %v10926_v25 = vld [vmem:[#allocation11 + $0x2c] ss:$52 sps:$4 sm:$0xff]   ;;  %v10932_v33 = vld [vmem:[#allocation11 + $0x94] ss:$52 sps:$4 sm:$0xff]  }
 0x436   :  { %v10921_v41 = vld [vmem:[#allocation11 + $0x20] ss:$52 sps:$4 sm:$0xff]   ;;  %v10927_v34 = vld [vmem:[#allocation11 + $0x88] ss:$52 sps:$4 sm:$0xff]   ;;  %v10930_v35 = vld [vmem:[#allocation11 + $0x90] ss:$52 sps:$4 sm:$0xff]  }
 0x437   :  { %8750 = vst [vmem:[#allocation14] sm:$0xff] %v8704_v47  ;;  %7997 = vmatpush1.bf16.msra.mxu0 %v10867_v39  ;;  %v10929_v32 = vld [vmem:[#allocation11 + $0x8c] ss:$52 sps:$4 sm:$0xff]   ;;  %v10935_v36 = vld [vmem:[#allocation11 + $0xf4] ss:$52 sps:$4 sm:$0xff]  }
 0x438   :  { %8161 = vmatpush1.bf16.msra.mxu1 %v10870_v40  ;;  %7998 = vmatprep.subr.bf16.mxu0 %v10875_v42  ;;  %v10938_v37 = vld [vmem:[#allocation11 + $0xfc] ss:$52 sps:$4 sm:$0xff]   ;;  %v10936_v39 = vld [vmem:[#allocation11 + $0xf8] ss:$52 sps:$4 sm:$0xff]  }
 0x439   :  { %8162 = vmatprep.subr.bf16.mxu1 %v10878_v48  ;;  %v10933_v38 = vld [vmem:[#allocation11 + $0xf0] ss:$52 sps:$4 sm:$0xff]   ;;  %v10939_v47 = vld [vmem:[#allocation11 + $0x158] ss:$52 sps:$4 sm:$0xff]   ;;  %v10942_v48 = vld [vmem:[#allocation11 + $0x160] ss:$52 sps:$4 sm:$0xff]  }
 0x43a   :  { %v10941_v40 = vld [vmem:[#allocation11 + $0x15c] ss:$52 sps:$4 sm:$0xff]   ;;  %v10944_v42 = vld [vmem:[#allocation11 + $0x164] ss:$52 sps:$4 sm:$0xff]  }
 0x43b   :  { %7999 = vmatpush1.bf16.msra.mxu0 %v10873_v49  ;;  %v10947_v49 = vld [vmem:[#allocation11 + $0x1c4] ss:$52 sps:$4 sm:$0xff]  }
 0x43c   :  { %8163 = vmatpush1.bf16.msra.mxu1 %v10876_v50  ;;  %8000 = vmatprep.subr.bf16.mxu0 %v10881_v51  ;;  %v10950_v50 = vld [vmem:[#allocation11 + $0x1cc] ss:$52 sps:$4 sm:$0xff]  }
 0x43d   :  { %8164 = vmatprep.subr.bf16.mxu1 %v10884_v52  ;;  %v10945_v51 = vld [vmem:[#allocation11 + $0x1c0] ss:$52 sps:$4 sm:$0xff]   ;;  %v10948_v52 = vld [vmem:[#allocation11 + $0x1c8] ss:$52 sps:$4 sm:$0xff]  }
 0x43f   :  { %8001 = vmatpush1.bf16.msra.mxu0 %v10879_v62  ;;  %v10953_v62 = vld [vmem:[#allocation11 + $0x22c] ss:$52 sps:$4 sm:$0xff]  }
 0x440   :  { %8165 = vmatpush1.bf16.msra.mxu1 %v10882_v54  ;;  %8002 = vmatprep.subr.bf16.mxu0 %v10887_v55  ;;  %v10956_v54 = vld [vmem:[#allocation11 + $0x234] ss:$52 sps:$4 sm:$0xff]  }
 0x441   :  { %8166 = vmatprep.subr.bf16.mxu1 %v10890_v57  ;;  %v10951_v55 = vld [vmem:[#allocation11 + $0x228] ss:$52 sps:$4 sm:$0xff]   ;;  %v10954_v57 = vld [vmem:[#allocation11 + $0x230] ss:$52 sps:$4 sm:$0xff]  }
 0x443   :  { %8003 = vmatpush1.bf16.msra.mxu0 %v10885_v58  ;;  %v10959_v58 = vld [vmem:[#allocation11 + $0x294] ss:$52 sps:$4 sm:$0xff]  }
 0x444   :  { %8167 = vmatpush1.bf16.msra.mxu1 %v10888_v59  ;;  %8004 = vmatprep.subr.bf16.mxu0 %v10893_v60  ;;  %v10962_v59 = vld [vmem:[#allocation11 + $0x29c] ss:$52 sps:$4 sm:$0xff]  }
 0x445   :  { %8168 = vmatprep.subr.bf16.mxu1 %v10896_v1  ;;  %v10957_v60 = vld [vmem:[#allocation11 + $0x290] ss:$52 sps:$4 sm:$0xff]   ;;  %v10960_v1 = vld [vmem:[#allocation11 + $0x298] ss:$52 sps:$4 sm:$0xff]  }
 0x447   :  { %8005 = vmatpush1.bf16.msra.mxu0 %v10891_v28  ;;  %v10965_v28 = vld [vmem:[#allocation11 + $0x2fc] ss:$52 sps:$4 sm:$0xff]  }
 0x448   :  { %8169 = vmatpush1.bf16.msra.mxu1 %v10894_v3  ;;  %8006 = vmatprep.subr.bf16.mxu0 %v10899_v4  ;;  %v10968_v3 = vld [vmem:[#allocation11 + $0x304] ss:$52 sps:$4 sm:$0xff]  }
 0x449   :  { %8170 = vmatprep.subr.bf16.mxu1 %v10902_v7  ;;  %v10963_v4 = vld [vmem:[#allocation11 + $0x2f8] ss:$52 sps:$4 sm:$0xff]   ;;  %v10966_v7 = vld [vmem:[#allocation11 + $0x300] ss:$52 sps:$4 sm:$0xff]  }
 0x44b   :  { %8007 = vmatpush1.bf16.msra.mxu0 %v10897_v8  ;;  %v10971_v8 = vld [vmem:[#allocation11 + $0x364] ss:$52 sps:$4 sm:$0xff]  }
 0x44c   :  { %8171 = vmatpush1.bf16.msra.mxu1 %v10900_v9  ;;  %8008 = vmatprep.subr.bf16.mxu0 %v10905_v10  ;;  %v10974_v9 = vld [vmem:[#allocation11 + $0x36c] ss:$52 sps:$4 sm:$0xff]  }
 0x44d   :  { %8172 = vmatprep.subr.bf16.mxu1 %v10908_v29  ;;  %v10969_v10 = vld [vmem:[#allocation11 + $0x360] ss:$52 sps:$4 sm:$0xff]   ;;  %v10972_v29 = vld [vmem:[#allocation11 + $0x368] ss:$52 sps:$4 sm:$0xff]  }
 0x44f   :  { %8009 = vmatpush1.bf16.msra.mxu0 %v10903_v13  ;;  %v10977_v13 = vld [vmem:[#allocation11 + $0x3cc] ss:$52 sps:$4 sm:$0xff]  }
 0x450   :  { %8173 = vmatpush1.bf16.msra.mxu1 %v10906_v44  ;;  %8010 = vmatprep.subr.bf16.mxu0 %v10911_v15  ;;  %v10980_v44 = vld [vmem:[#allocation11 + $0x3d4] ss:$52 sps:$4 sm:$0xff]  }
 0x451   :  { %8174 = vmatprep.subr.bf16.mxu1 %v10914_v17  ;;  %v10975_v15 = vld [vmem:[#allocation11 + $0x3c8] ss:$52 sps:$4 sm:$0xff]   ;;  %v10978_v17 = vld [vmem:[#allocation11 + $0x3d0] ss:$52 sps:$4 sm:$0xff]  }
 0x453   :  { %8011 = vmatpush1.bf16.msra.mxu0 %v10909_v18  ;;  %v10983_v18 = vld [vmem:[#allocation11 + $0x434] ss:$52 sps:$4 sm:$0xff]  }
 0x454   :  { %8175 = vmatpush1.bf16.msra.mxu1 %v10912_v19  ;;  %8012 = vmatprep.subr.bf16.mxu0 %v10917_v20  ;;  %v10986_v19 = vld [vmem:[#allocation11 + $0x43c] ss:$52 sps:$4 sm:$0xff]  }
 0x455   :  { %8176 = vmatprep.subr.bf16.mxu1 %v10920_v21  ;;  %v10981_v20 = vld [vmem:[#allocation11 + $0x430] ss:$52 sps:$4 sm:$0xff]   ;;  %v10984_v21 = vld [vmem:[#allocation11 + $0x438] ss:$52 sps:$4 sm:$0xff]  }
 0x457   :  { %8013 = vmatpush1.bf16.msra.mxu0 %v10915_v23  ;;  %v10989_v23 = vld [vmem:[#allocation11 + $0x49c] ss:$52 sps:$4 sm:$0xff]  }
 0x458   :  { %8177 = vmatpush1.bf16.msra.mxu1 %v10918_v56  ;;  %8187 = vmatprep.subr.bf16.mxu0 %v10923_v24  ;;  %v10992_v56 = vld [vmem:[#allocation11 + $0x4a4] ss:$52 sps:$4 sm:$0xff]  }
 0x459   :  { %8351 = vmatprep.subr.bf16.mxu1 %v10926_v25  ;;  %v10987_v24 = vld [vmem:[#allocation11 + $0x498] ss:$52 sps:$4 sm:$0xff]   ;;  %v10990_v25 = vld [vmem:[#allocation11 + $0x4a0] ss:$52 sps:$4 sm:$0xff]  }
 0x45a   :  { %8015 = vmatmul.mubr.bf16.vlgmr.msra.gmra.mrb[16].mxu0 %v11808_v0 }
 0x45b   :  { %8179 = vmatmul.mubr.bf16.vlgmr.msra.gmra.mrb[16].mxu1 %v11808_v0  ;;  %8188 = vmatpush1.bf16.msra.mxu0 %v10921_v41  ;;  %v10995_v41 = vld [vmem:[#allocation11 + $0x504] ss:$52 sps:$4 sm:$0xff]  }
 0x45c   :  { %8219 = vmatprep.mubr.bf16.mxu0 %v11757_v11  ;;  %8352 = vmatpush1.bf16.msra.mxu1 %v10924_v30  ;;  %v10998_v30 = vld [vmem:[#allocation11 + $0x50c] ss:$52 sps:$4 sm:$0xff]  }
 0x45d   :  { %8383 = vmatprep.mubr.bf16.mxu1 %v11757_v11  ;;  %8189 = vmatprep.subr.bf16.mxu0 %v10929_v32  ;;  %v10993_v32 = vld [vmem:[#allocation11 + $0x500] ss:$52 sps:$4 sm:$0xff]  }
 0x45e   :  { %8353 = vmatprep.subr.bf16.mxu1 %v10932_v33  ;;  %v10996_v33 = vld [vmem:[#allocation11 + $0x508] ss:$52 sps:$4 sm:$0xff]  }
 0x45f   :  { %8190 = vmatpush1.bf16.msra.mxu0 %v10927_v34  ;;  %v11001_v34 = vld [vmem:[#allocation11 + $0x56c] ss:$52 sps:$4 sm:$0xff]  }
 0x460   :  { %8354 = vmatpush1.bf16.msra.mxu1 %v10930_v35  ;;  %8191 = vmatprep.subr.bf16.mxu0 %v10935_v36  ;;  %v11004_v35 = vld [vmem:[#allocation11 + $0x574] ss:$52 sps:$4 sm:$0xff]  }
 0x461   :  { %8355 = vmatprep.subr.bf16.mxu1 %v10938_v37  ;;  %v10999_v36 = vld [vmem:[#allocation11 + $0x568] ss:$52 sps:$4 sm:$0xff]   ;;  %v11002_v37 = vld [vmem:[#allocation11 + $0x570] ss:$52 sps:$4 sm:$0xff]  }
 0x463   :  { %8192 = vmatpush1.bf16.msra.mxu0 %v10933_v38  ;;  %v11007_v38 = vld [vmem:[#allocation11 + $0x5d4] ss:$52 sps:$4 sm:$0xff]  }
 0x464   :  { %8356 = vmatpush1.bf16.msra.mxu1 %v10936_v39  ;;  %8193 = vmatprep.subr.bf16.mxu0 %v10941_v40  ;;  %v11010_v39 = vld [vmem:[#allocation11 + $0x5dc] ss:$52 sps:$4 sm:$0xff]  }
 0x465   :  { %8357 = vmatprep.subr.bf16.mxu1 %v10944_v42  ;;  %v11005_v40 = vld [vmem:[#allocation11 + $0x5d0] ss:$52 sps:$4 sm:$0xff]   ;;  %v11008_v42 = vld [vmem:[#allocation11 + $0x5d8] ss:$52 sps:$4 sm:$0xff]  }
 0x467   :  { %8194 = vmatpush1.bf16.msra.mxu0 %v10939_v47  ;;  %v11013_v47 = vld [vmem:[#allocation11 + $0x63c] ss:$52 sps:$4 sm:$0xff]  }
 0x468   :  { %8358 = vmatpush1.bf16.msra.mxu1 %v10942_v48  ;;  %8195 = vmatprep.subr.bf16.mxu0 %v10947_v49  ;;  %v11016_v48 = vld [vmem:[#allocation11 + $0x644] ss:$52 sps:$4 sm:$0xff]  }
 0x469   :  { %8359 = vmatprep.subr.bf16.mxu1 %v10950_v50  ;;  %v11011_v49 = vld [vmem:[#allocation11 + $0x638] ss:$52 sps:$4 sm:$0xff]   ;;  %v11014_v50 = vld [vmem:[#allocation11 + $0x640] ss:$52 sps:$4 sm:$0xff]  }
 0x46b   :  { %8196 = vmatpush1.bf16.msra.mxu0 %v10945_v51  ;;  %v11019_v51 = vld [vmem:[#allocation11 + $0x6a4] ss:$52 sps:$4 sm:$0xff]  }
 0x46c   :  { %8360 = vmatpush1.bf16.msra.mxu1 %v10948_v52  ;;  %8197 = vmatprep.subr.bf16.mxu0 %v10953_v62  ;;  %v11022_v52 = vld [vmem:[#allocation11 + $0x6ac] ss:$52 sps:$4 sm:$0xff]  }
 0x46d   :  { %8361 = vmatprep.subr.bf16.mxu1 %v10956_v54  ;;  %v11017_v62 = vld [vmem:[#allocation11 + $0x6a0] ss:$52 sps:$4 sm:$0xff]   ;;  %v11020_v54 = vld [vmem:[#allocation11 + $0x6a8] ss:$52 sps:$4 sm:$0xff]  }
 0x46f   :  { %8198 = vmatpush1.bf16.msra.mxu0 %v10951_v55  ;;  %v11025_v55 = vld [vmem:[#allocation11 + $0x70c] ss:$52 sps:$4 sm:$0xff]  }
 0x470   :  { %8362 = vmatpush1.bf16.msra.mxu1 %v10954_v57  ;;  %8199 = vmatprep.subr.bf16.mxu0 %v10959_v58  ;;  %v11028_v57 = vld [vmem:[#allocation11 + $0x714] ss:$52 sps:$4 sm:$0xff]  }
 0x471   :  { %8363 = vmatprep.subr.bf16.mxu1 %v10962_v59  ;;  %v11023_v58 = vld [vmem:[#allocation11 + $0x708] ss:$52 sps:$4 sm:$0xff]   ;;  %v11026_v59 = vld [vmem:[#allocation11 + $0x710] ss:$52 sps:$4 sm:$0xff]  }
 0x473   :  { %8200 = vmatpush1.bf16.msra.mxu0 %v10957_v60  ;;  %v11031_v60 = vld [vmem:[#allocation11 + $0x774] ss:$52 sps:$4 sm:$0xff]  }
 0x474   :  { %8364 = vmatpush1.bf16.msra.mxu1 %v10960_v1  ;;  %8201 = vmatprep.subr.bf16.mxu0 %v10965_v28  ;;  %v11034_v1 = vld [vmem:[#allocation11 + $0x77c] ss:$52 sps:$4 sm:$0xff]  }
 0x475   :  { %8365 = vmatprep.subr.bf16.mxu1 %v10968_v3  ;;  %v11029_v28 = vld [vmem:[#allocation11 + $0x770] ss:$52 sps:$4 sm:$0xff]   ;;  %v11032_v3 = vld [vmem:[#allocation11 + $0x778] ss:$52 sps:$4 sm:$0xff]  }
 0x477   :  { %8202 = vmatpush1.bf16.msra.mxu0 %v10963_v4  ;;  %v11037_v4 = vld [vmem:[#allocation11 + $0x7dc] ss:$52 sps:$4 sm:$0xff]  }
 0x478   :  { %8366 = vmatpush1.bf16.msra.mxu1 %v10966_v7  ;;  %8203 = vmatprep.subr.bf16.mxu0 %v10971_v8  ;;  %v11040_v7 = vld [vmem:[#allocation11 + $0x7e4] ss:$52 sps:$4 sm:$0xff]  }
 0x479   :  { %8367 = vmatprep.subr.bf16.mxu1 %v10974_v9  ;;  %v11035_v8 = vld [vmem:[#allocation11 + $0x7d8] ss:$52 sps:$4 sm:$0xff]   ;;  %v11038_v9 = vld [vmem:[#allocation11 + $0x7e0] ss:$52 sps:$4 sm:$0xff]  }
 0x47b   :  { %8204 = vmatpush1.bf16.msra.mxu0 %v10969_v10  ;;  %v11043_v10 = vld [vmem:[#allocation11 + $0x844] ss:$52 sps:$4 sm:$0xff]  }
 0x47c   :  { %8368 = vmatpush1.bf16.msra.mxu1 %v10972_v29  ;;  %8205 = vmatprep.subr.bf16.mxu0 %v10977_v13  ;;  %v11046_v29 = vld [vmem:[#allocation11 + $0x84c] ss:$52 sps:$4 sm:$0xff]  }
 0x47d   :  { %8369 = vmatprep.subr.bf16.mxu1 %v10980_v44  ;;  %v11041_v13 = vld [vmem:[#allocation11 + $0x840] ss:$52 sps:$4 sm:$0xff]   ;;  %v11044_v44 = vld [vmem:[#allocation11 + $0x848] ss:$52 sps:$4 sm:$0xff]  }
 0x47f   :  { %8206 = vmatpush1.bf16.msra.mxu0 %v10975_v15  ;;  %v11049_v15 = vld [vmem:[#allocation11 + $0x8ac] ss:$52 sps:$4 sm:$0xff]  }
 0x480   :  { %8370 = vmatpush1.bf16.msra.mxu1 %v10978_v17  ;;  %8207 = vmatprep.subr.bf16.mxu0 %v10983_v18  ;;  %v11052_v17 = vld [vmem:[#allocation11 + $0x8b4] ss:$52 sps:$4 sm:$0xff]  }
 0x481   :  { %8371 = vmatprep.subr.bf16.mxu1 %v10986_v19  ;;  %v11047_v18 = vld [vmem:[#allocation11 + $0x8a8] ss:$52 sps:$4 sm:$0xff]   ;;  %v11050_v19 = vld [vmem:[#allocation11 + $0x8b0] ss:$52 sps:$4 sm:$0xff]  }
 0x483   :  { %8208 = vmatpush1.bf16.msra.mxu0 %v10981_v20  ;;  %v11055_v20 = vld [vmem:[#allocation11 + $0x914] ss:$52 sps:$4 sm:$0xff]  }
 0x484   :  { %8372 = vmatpush1.bf16.msra.mxu1 %v10984_v21  ;;  %8209 = vmatprep.subr.bf16.mxu0 %v10989_v23  ;;  %v11058_v21 = vld [vmem:[#allocation11 + $0x91c] ss:$52 sps:$4 sm:$0xff]  }
 0x485   :  { %8373 = vmatprep.subr.bf16.mxu1 %v10992_v56  ;;  %v11053_v23 = vld [vmem:[#allocation11 + $0x910] ss:$52 sps:$4 sm:$0xff]   ;;  %v11056_v56 = vld [vmem:[#allocation11 + $0x918] ss:$52 sps:$4 sm:$0xff]  }
 0x487   :  { %8210 = vmatpush1.bf16.msra.mxu0 %v10987_v24  ;;  %v11061_v24 = vld [vmem:[#allocation11 + $0x97c] ss:$52 sps:$4 sm:$0xff]  }
 0x488   :  { %8374 = vmatpush1.bf16.msra.mxu1 %v10990_v25  ;;  %8211 = vmatprep.subr.bf16.mxu0 %v10995_v41  ;;  %v11064_v25 = vld [vmem:[#allocation11 + $0x984] ss:$52 sps:$4 sm:$0xff]  }
 0x489   :  { %8375 = vmatprep.subr.bf16.mxu1 %v10998_v30  ;;  %v11059_v41 = vld [vmem:[#allocation11 + $0x978] ss:$52 sps:$4 sm:$0xff]   ;;  %v11062_v30 = vld [vmem:[#allocation11 + $0x980] ss:$52 sps:$4 sm:$0xff]  }
 0x48b   :  { %8212 = vmatpush1.bf16.msra.mxu0 %v10993_v32  ;;  %v11067_v32 = vld [vmem:[#allocation11 + $0x9e4] ss:$52 sps:$4 sm:$0xff]  }
 0x48c   :  { %8376 = vmatpush1.bf16.msra.mxu1 %v10996_v33  ;;  %8213 = vmatprep.subr.bf16.mxu0 %v11001_v34  ;;  %v11070_v33 = vld [vmem:[#allocation11 + $0x9ec] ss:$52 sps:$4 sm:$0xff]  }
 0x48d   :  { %8377 = vmatprep.subr.bf16.mxu1 %v11004_v35  ;;  %v11065_v34 = vld [vmem:[#allocation11 + $0x9e0] ss:$52 sps:$4 sm:$0xff]   ;;  %v11068_v35 = vld [vmem:[#allocation11 + $0x9e8] ss:$52 sps:$4 sm:$0xff]  }
 0x48f   :  { %8214 = vmatpush1.bf16.msra.mxu0 %v10999_v36  ;;  %v11073_v36 = vld [vmem:[#allocation11 + $0xa4c] ss:$52 sps:$4 sm:$0xff]  }
 0x490   :  { %8378 = vmatpush1.bf16.msra.mxu1 %v11002_v37  ;;  %8215 = vmatprep.subr.bf16.mxu0 %v11007_v38  ;;  %v11076_v37 = vld [vmem:[#allocation11 + $0xa54] ss:$52 sps:$4 sm:$0xff]  }
 0x491   :  { %8379 = vmatprep.subr.bf16.mxu1 %v11010_v39  ;;  %v11071_v38 = vld [vmem:[#allocation11 + $0xa48] ss:$52 sps:$4 sm:$0xff]   ;;  %v11074_v39 = vld [vmem:[#allocation11 + $0xa50] ss:$52 sps:$4 sm:$0xff]  }
 0x493   :  { %8216 = vmatpush1.bf16.msra.mxu0 %v11005_v40  ;;  %v11079_v40 = vld [vmem:[#allocation11 + $0xab4] ss:$52 sps:$4 sm:$0xff]  }
 0x494   :  { %8380 = vmatpush1.bf16.msra.mxu1 %v11008_v42  ;;  %8217 = vmatprep.subr.bf16.mxu0 %v11013_v47  ;;  %v11082_v42 = vld [vmem:[#allocation11 + $0xabc] ss:$52 sps:$4 sm:$0xff]  }
 0x495   :  { %8381 = vmatprep.subr.bf16.mxu1 %v11016_v48  ;;  %v11077_v47 = vld [vmem:[#allocation11 + $0xab0] ss:$52 sps:$4 sm:$0xff]   ;;  %v11080_v48 = vld [vmem:[#allocation11 + $0xab8] ss:$52 sps:$4 sm:$0xff]  }
 0x497   :  { %8218 = vmatpush1.bf16.msra.mxu0 %v11011_v49  ;;  %v11085_v49 = vld [vmem:[#allocation11 + $0xb1c] ss:$52 sps:$4 sm:$0xff]  }
 0x498   :  { %8382 = vmatpush1.bf16.msra.mxu1 %v11014_v50  ;;  %8228 = vmatprep.subr.bf16.mxu0 %v11019_v51  ;;  %v11088_v50 = vld [vmem:[#allocation11 + $0xb24] ss:$52 sps:$4 sm:$0xff]  }
 0x499   :  { %8392 = vmatprep.subr.bf16.mxu1 %v11022_v52  ;;  %v11083_v51 = vld [vmem:[#allocation11 + $0xb18] ss:$52 sps:$4 sm:$0xff]   ;;  %v11086_v52 = vld [vmem:[#allocation11 + $0xb20] ss:$52 sps:$4 sm:$0xff]  }
 0x49a   :  { %8220 = vmatmul.mubr.bf16.vlgmr.msra.gmra.mrb[20].mxu0 %v11759_v14 }
 0x49b   :  { %8384 = vmatmul.mubr.bf16.vlgmr.msra.gmra.mrb[20].mxu1 %v11759_v14  ;;  %8229 = vmatpush1.bf16.msra.mxu0 %v11017_v62  ;;  %v11091_v62 = vld [vmem:[#allocation11 + $0xb84] ss:$52 sps:$4 sm:$0xff]  }
 0x49c   :  { %8260 = vmatprep.mubr.bf16.mxu0 %v11763_v16  ;;  %8393 = vmatpush1.bf16.msra.mxu1 %v11020_v54  ;;  %v11094_v54 = vld [vmem:[#allocation11 + $0xb8c] ss:$52 sps:$4 sm:$0xff]  }
 0x49d   :  { %8424 = vmatprep.mubr.bf16.mxu1 %v11763_v16  ;;  %8230 = vmatprep.subr.bf16.mxu0 %v11025_v55  ;;  %v11089_v55 = vld [vmem:[#allocation11 + $0xb80] ss:$52 sps:$4 sm:$0xff]  }
 0x49e   :  { %8394 = vmatprep.subr.bf16.mxu1 %v11028_v57  ;;  %v11092_v57 = vld [vmem:[#allocation11 + $0xb88] ss:$52 sps:$4 sm:$0xff]  }
 0x49f   :  { %8231 = vmatpush1.bf16.msra.mxu0 %v11023_v58  ;;  %v11097_v58 = vld [vmem:[#allocation11 + $0xbec] ss:$52 sps:$4 sm:$0xff]  }
 0x4a0   :  { %8395 = vmatpush1.bf16.msra.mxu1 %v11026_v59  ;;  %8232 = vmatprep.subr.bf16.mxu0 %v11031_v60  ;;  %v11100_v59 = vld [vmem:[#allocation11 + $0xbf4] ss:$52 sps:$4 sm:$0xff]  }
 0x4a1   :  { %8396 = vmatprep.subr.bf16.mxu1 %v11034_v1  ;;  %v11095_v60 = vld [vmem:[#allocation11 + $0xbe8] ss:$52 sps:$4 sm:$0xff]   ;;  %v11098_v1 = vld [vmem:[#allocation11 + $0xbf0] ss:$52 sps:$4 sm:$0xff]  }
 0x4a3   :  { %8233 = vmatpush1.bf16.msra.mxu0 %v11029_v28  ;;  %v11103_v28 = vld [vmem:[#allocation11 + $0xc54] ss:$52 sps:$4 sm:$0xff]  }
 0x4a4   :  { %8397 = vmatpush1.bf16.msra.mxu1 %v11032_v3  ;;  %8234 = vmatprep.subr.bf16.mxu0 %v11037_v4  ;;  %v11106_v3 = vld [vmem:[#allocation11 + $0xc5c] ss:$52 sps:$4 sm:$0xff]  }
 0x4a5   :  { %8398 = vmatprep.subr.bf16.mxu1 %v11040_v7  ;;  %v11101_v4 = vld [vmem:[#allocation11 + $0xc50] ss:$52 sps:$4 sm:$0xff]   ;;  %v11104_v7 = vld [vmem:[#allocation11 + $0xc58] ss:$52 sps:$4 sm:$0xff]  }
 0x4a7   :  { %8235 = vmatpush1.bf16.msra.mxu0 %v11035_v8  ;;  %v11109_v8 = vld [vmem:[#allocation11 + $0xcbc] ss:$52 sps:$4 sm:$0xff]  }
 0x4a8   :  { %8399 = vmatpush1.bf16.msra.mxu1 %v11038_v9  ;;  %8236 = vmatprep.subr.bf16.mxu0 %v11043_v10  ;;  %v11112_v9 = vld [vmem:[#allocation11 + $0xcc4] ss:$52 sps:$4 sm:$0xff]  }
 0x4a9   :  { %8400 = vmatprep.subr.bf16.mxu1 %v11046_v29  ;;  %v11107_v10 = vld [vmem:[#allocation11 + $0xcb8] ss:$52 sps:$4 sm:$0xff]   ;;  %v11110_v29 = vld [vmem:[#allocation11 + $0xcc0] ss:$52 sps:$4 sm:$0xff]  }
 0x4ab   :  { %8237 = vmatpush1.bf16.msra.mxu0 %v11041_v13  ;;  %v11115_v13 = vld [vmem:[#allocation11 + $0xd24] ss:$52 sps:$4 sm:$0xff]  }
 0x4ac   :  { %8401 = vmatpush1.bf16.msra.mxu1 %v11044_v44  ;;  %8238 = vmatprep.subr.bf16.mxu0 %v11049_v15  ;;  %v11118_v44 = vld [vmem:[#allocation11 + $0xd2c] ss:$52 sps:$4 sm:$0xff]  }
 0x4ad   :  { %8402 = vmatprep.subr.bf16.mxu1 %v11052_v17  ;;  %v11113_v15 = vld [vmem:[#allocation11 + $0xd20] ss:$52 sps:$4 sm:$0xff]   ;;  %v11116_v17 = vld [vmem:[#allocation11 + $0xd28] ss:$52 sps:$4 sm:$0xff]  }
 0x4af   :  { %8239 = vmatpush1.bf16.msra.mxu0 %v11047_v18  ;;  %v11121_v18 = vld [vmem:[#allocation11 + $0xd8c] ss:$52 sps:$4 sm:$0xff]  }
 0x4b0   :  { %8403 = vmatpush1.bf16.msra.mxu1 %v11050_v19  ;;  %8240 = vmatprep.subr.bf16.mxu0 %v11055_v20  ;;  %v11124_v19 = vld [vmem:[#allocation11 + $0xd94] ss:$52 sps:$4 sm:$0xff]  }
 0x4b1   :  { %8404 = vmatprep.subr.bf16.mxu1 %v11058_v21  ;;  %v11119_v20 = vld [vmem:[#allocation11 + $0xd88] ss:$52 sps:$4 sm:$0xff]   ;;  %v11122_v21 = vld [vmem:[#allocation11 + $0xd90] ss:$52 sps:$4 sm:$0xff]  }
 0x4b3   :  { %8241 = vmatpush1.bf16.msra.mxu0 %v11053_v23  ;;  %v11127_v23 = vld [vmem:[#allocation11 + $0xdf4] ss:$52 sps:$4 sm:$0xff]  }
 0x4b4   :  { %8405 = vmatpush1.bf16.msra.mxu1 %v11056_v56  ;;  %8242 = vmatprep.subr.bf16.mxu0 %v11061_v24  ;;  %v11130_v56 = vld [vmem:[#allocation11 + $0xdfc] ss:$52 sps:$4 sm:$0xff]  }
 0x4b5   :  { %8406 = vmatprep.subr.bf16.mxu1 %v11064_v25  ;;  %v11125_v24 = vld [vmem:[#allocation11 + $0xdf0] ss:$52 sps:$4 sm:$0xff]   ;;  %v11128_v25 = vld [vmem:[#allocation11 + $0xdf8] ss:$52 sps:$4 sm:$0xff]  }
 0x4b7   :  { %8243 = vmatpush1.bf16.msra.mxu0 %v11059_v41  ;;  %v11133_v41 = vld [vmem:[#allocation11 + $0xe5c] ss:$52 sps:$4 sm:$0xff]  }
 0x4b8   :  { %8407 = vmatpush1.bf16.msra.mxu1 %v11062_v30  ;;  %8244 = vmatprep.subr.bf16.mxu0 %v11067_v32  ;;  %v11136_v30 = vld [vmem:[#allocation11 + $0xe64] ss:$52 sps:$4 sm:$0xff]  }
 0x4b9   :  { %8408 = vmatprep.subr.bf16.mxu1 %v11070_v33  ;;  %v11131_v32 = vld [vmem:[#allocation11 + $0xe58] ss:$52 sps:$4 sm:$0xff]   ;;  %v11134_v33 = vld [vmem:[#allocation11 + $0xe60] ss:$52 sps:$4 sm:$0xff]  }
 0x4bb   :  { %8245 = vmatpush1.bf16.msra.mxu0 %v11065_v34  ;;  %v11139_v34 = vld [vmem:[#allocation11 + $0xec4] ss:$52 sps:$4 sm:$0xff]  }
 0x4bc   :  { %8409 = vmatpush1.bf16.msra.mxu1 %v11068_v35  ;;  %8246 = vmatprep.subr.bf16.mxu0 %v11073_v36  ;;  %v11142_v35 = vld [vmem:[#allocation11 + $0xecc] ss:$52 sps:$4 sm:$0xff]  }
 0x4bd   :  { %8410 = vmatprep.subr.bf16.mxu1 %v11076_v37  ;;  %v11137_v36 = vld [vmem:[#allocation11 + $0xec0] ss:$52 sps:$4 sm:$0xff]   ;;  %v11140_v37 = vld [vmem:[#allocation11 + $0xec8] ss:$52 sps:$4 sm:$0xff]  }
 0x4bf   :  { %8247 = vmatpush1.bf16.msra.mxu0 %v11071_v38  ;;  %v11145_v38 = vld [vmem:[#allocation11 + $0xf2c] ss:$52 sps:$4 sm:$0xff]  }
 0x4c0   :  { %8411 = vmatpush1.bf16.msra.mxu1 %v11074_v39  ;;  %8248 = vmatprep.subr.bf16.mxu0 %v11079_v40  ;;  %v11148_v39 = vld [vmem:[#allocation11 + $0xf34] ss:$52 sps:$4 sm:$0xff]  }
 0x4c1   :  { %8412 = vmatprep.subr.bf16.mxu1 %v11082_v42  ;;  %v11143_v40 = vld [vmem:[#allocation11 + $0xf28] ss:$52 sps:$4 sm:$0xff]   ;;  %v11146_v42 = vld [vmem:[#allocation11 + $0xf30] ss:$52 sps:$4 sm:$0xff]  }
 0x4c3   :  { %8249 = vmatpush1.bf16.msra.mxu0 %v11077_v47  ;;  %v11151_v47 = vld [vmem:[#allocation11 + $0xf94] ss:$52 sps:$4 sm:$0xff]  }
 0x4c4   :  { %8413 = vmatpush1.bf16.msra.mxu1 %v11080_v48  ;;  %8250 = vmatprep.subr.bf16.mxu0 %v11085_v49  ;;  %v11154_v48 = vld [vmem:[#allocation11 + $0xf9c] ss:$52 sps:$4 sm:$0xff]  }
 0x4c5   :  { %8414 = vmatprep.subr.bf16.mxu1 %v11088_v50  ;;  %v11149_v49 = vld [vmem:[#allocation11 + $0xf90] ss:$52 sps:$4 sm:$0xff]   ;;  %v11152_v50 = vld [vmem:[#allocation11 + $0xf98] ss:$52 sps:$4 sm:$0xff]  }
 0x4c7   :  { %8251 = vmatpush1.bf16.msra.mxu0 %v11083_v51  ;;  %v11157_v51 = vld [vmem:[#allocation11 + $0xffc] ss:$52 sps:$4 sm:$0xff]  }
 0x4c8   :  { %8415 = vmatpush1.bf16.msra.mxu1 %v11086_v52  ;;  %8252 = vmatprep.subr.bf16.mxu0 %v11091_v62  ;;  %v11160_v52 = vld [vmem:[#allocation11 + $0x1004] ss:$52 sps:$4 sm:$0xff]  }
 0x4c9   :  { %8416 = vmatprep.subr.bf16.mxu1 %v11094_v54  ;;  %v11155_v62 = vld [vmem:[#allocation11 + $0xff8] ss:$52 sps:$4 sm:$0xff]   ;;  %v11158_v54 = vld [vmem:[#allocation11 + $0x1000] ss:$52 sps:$4 sm:$0xff]  }
 0x4cb   :  { %8253 = vmatpush1.bf16.msra.mxu0 %v11089_v55  ;;  %v11163_v55 = vld [vmem:[#allocation11 + $0x1064] ss:$52 sps:$4 sm:$0xff]  }
 0x4cc   :  { %8417 = vmatpush1.bf16.msra.mxu1 %v11092_v57  ;;  %8254 = vmatprep.subr.bf16.mxu0 %v11097_v58  ;;  %v11166_v57 = vld [vmem:[#allocation11 + $0x106c] ss:$52 sps:$4 sm:$0xff]  }
 0x4cd   :  { %8418 = vmatprep.subr.bf16.mxu1 %v11100_v59  ;;  %v11161_v58 = vld [vmem:[#allocation11 + $0x1060] ss:$52 sps:$4 sm:$0xff]   ;;  %v11164_v59 = vld [vmem:[#allocation11 + $0x1068] ss:$52 sps:$4 sm:$0xff]  }
 0x4cf   :  { %8255 = vmatpush1.bf16.msra.mxu0 %v11095_v60  ;;  %v11169_v60 = vld [vmem:[#allocation11 + $0x10cc] ss:$52 sps:$4 sm:$0xff]  }
 0x4d0   :  { %8419 = vmatpush1.bf16.msra.mxu1 %v11098_v1  ;;  %8256 = vmatprep.subr.bf16.mxu0 %v11103_v28  ;;  %v11172_v1 = vld [vmem:[#allocation11 + $0x10d4] ss:$52 sps:$4 sm:$0xff]  }
 0x4d1   :  { %8420 = vmatprep.subr.bf16.mxu1 %v11106_v3  ;;  %v11167_v28 = vld [vmem:[#allocation11 + $0x10c8] ss:$52 sps:$4 sm:$0xff]   ;;  %v11170_v3 = vld [vmem:[#allocation11 + $0x10d0] ss:$52 sps:$4 sm:$0xff]  }
 0x4d3   :  { %8257 = vmatpush1.bf16.msra.mxu0 %v11101_v4  ;;  %v11175_v4 = vld [vmem:[#allocation11 + $0x1134] ss:$52 sps:$4 sm:$0xff]  }
 0x4d4   :  { %8421 = vmatpush1.bf16.msra.mxu1 %v11104_v7  ;;  %8258 = vmatprep.subr.bf16.mxu0 %v11109_v8  ;;  %v11178_v7 = vld [vmem:[#allocation11 + $0x113c] ss:$52 sps:$4 sm:$0xff]  }
 0x4d5   :  { %8422 = vmatprep.subr.bf16.mxu1 %v11112_v9  ;;  %v11173_v8 = vld [vmem:[#allocation11 + $0x1130] ss:$52 sps:$4 sm:$0xff]   ;;  %v11176_v9 = vld [vmem:[#allocation11 + $0x1138] ss:$52 sps:$4 sm:$0xff]  }
 0x4d7   :  { %8259 = vmatpush1.bf16.msra.mxu0 %v11107_v10  ;;  %v11181_v10 = vld [vmem:[#allocation11 + $0x119c] ss:$52 sps:$4 sm:$0xff]  }
 0x4d8   :  { %8423 = vmatpush1.bf16.msra.mxu1 %v11110_v29  ;;  %8269 = vmatprep.subr.bf16.mxu0 %v11115_v13  ;;  %v11184_v29 = vld [vmem:[#allocation11 + $0x11a4] ss:$52 sps:$4 sm:$0xff]  }
 0x4d9   :  { %8433 = vmatprep.subr.bf16.mxu1 %v11118_v44  ;;  %v11179_v13 = vld [vmem:[#allocation11 + $0x1198] ss:$52 sps:$4 sm:$0xff]   ;;  %v11182_v44 = vld [vmem:[#allocation11 + $0x11a0] ss:$52 sps:$4 sm:$0xff]  }
 0x4da   :  { %8261 = vmatmul.mubr.bf16.vlgmr.msra.gmra.mrb[20].mxu0 %v11772_v27 }
 0x4db   :  { %8425 = vmatmul.mubr.bf16.vlgmr.msra.gmra.mrb[20].mxu1 %v11772_v27  ;;  %8270 = vmatpush1.bf16.msra.mxu0 %v11113_v15  ;;  %v11187_v15 = vld [vmem:[#allocation11 + $0x1204] ss:$52 sps:$4 sm:$0xff]  }
 0x4dc   :  { %8301 = vmatprep.mubr.bf16.mxu0 %v11791_v2  ;;  %8434 = vmatpush1.bf16.msra.mxu1 %v11116_v17  ;;  %v11190_v17 = vld [vmem:[#allocation11 + $0x120c] ss:$52 sps:$4 sm:$0xff]  }
 0x4dd   :  { %8465 = vmatprep.mubr.bf16.mxu1 %v11791_v2  ;;  %8271 = vmatprep.subr.bf16.mxu0 %v11121_v18  ;;  %v11185_v18 = vld [vmem:[#allocation11 + $0x1200] ss:$52 sps:$4 sm:$0xff]  }
 0x4de   :  { %8435 = vmatprep.subr.bf16.mxu1 %v11124_v19  ;;  %v11188_v19 = vld [vmem:[#allocation11 + $0x1208] ss:$52 sps:$4 sm:$0xff]  }
 0x4df   :  { %8272 = vmatpush1.bf16.msra.mxu0 %v11119_v20  ;;  %v11193_v20 = vld [vmem:[#allocation11 + $0x126c] ss:$52 sps:$4 sm:$0xff]  }
 0x4e0   :  { %8436 = vmatpush1.bf16.msra.mxu1 %v11122_v21  ;;  %8273 = vmatprep.subr.bf16.mxu0 %v11127_v23  ;;  %v11196_v21 = vld [vmem:[#allocation11 + $0x1274] ss:$52 sps:$4 sm:$0xff]  }
 0x4e1   :  { %8437 = vmatprep.subr.bf16.mxu1 %v11130_v56  ;;  %v11191_v23 = vld [vmem:[#allocation11 + $0x1268] ss:$52 sps:$4 sm:$0xff]   ;;  %v11194_v56 = vld [vmem:[#allocation11 + $0x1270] ss:$52 sps:$4 sm:$0xff]  }
 0x4e3   :  { %8274 = vmatpush1.bf16.msra.mxu0 %v11125_v24  ;;  %v11199_v24 = vld [vmem:[#allocation11 + $0x12d4] ss:$52 sps:$4 sm:$0xff]  }
 0x4e4   :  { %8438 = vmatpush1.bf16.msra.mxu1 %v11128_v25  ;;  %8275 = vmatprep.subr.bf16.mxu0 %v11133_v41  ;;  %v11202_v25 = vld [vmem:[#allocation11 + $0x12dc] ss:$52 sps:$4 sm:$0xff]  }
 0x4e5   :  { %8439 = vmatprep.subr.bf16.mxu1 %v11136_v30  ;;  %v11197_v41 = vld [vmem:[#allocation11 + $0x12d0] ss:$52 sps:$4 sm:$0xff]   ;;  %v11200_v30 = vld [vmem:[#allocation11 + $0x12d8] ss:$52 sps:$4 sm:$0xff]  }
 0x4e7   :  { %8276 = vmatpush1.bf16.msra.mxu0 %v11131_v32  ;;  %v11205_v32 = vld [vmem:[#allocation11 + $0x133c] ss:$52 sps:$4 sm:$0xff]  }
 0x4e8   :  { %8440 = vmatpush1.bf16.msra.mxu1 %v11134_v33  ;;  %8277 = vmatprep.subr.bf16.mxu0 %v11139_v34  ;;  %v11208_v33 = vld [vmem:[#allocation11 + $0x1344] ss:$52 sps:$4 sm:$0xff]  }
 0x4e9   :  { %8441 = vmatprep.subr.bf16.mxu1 %v11142_v35  ;;  %v11203_v34 = vld [vmem:[#allocation11 + $0x1338] ss:$52 sps:$4 sm:$0xff]   ;;  %v11206_v35 = vld [vmem:[#allocation11 + $0x1340] ss:$52 sps:$4 sm:$0xff]  }
 0x4eb   :  { %8278 = vmatpush1.bf16.msra.mxu0 %v11137_v36  ;;  %v11211_v36 = vld [vmem:[#allocation11 + $0x13a4] ss:$52 sps:$4 sm:$0xff]  }
 0x4ec   :  { %8442 = vmatpush1.bf16.msra.mxu1 %v11140_v37  ;;  %8279 = vmatprep.subr.bf16.mxu0 %v11145_v38  ;;  %v11214_v37 = vld [vmem:[#allocation11 + $0x13ac] ss:$52 sps:$4 sm:$0xff]  }
 0x4ed   :  { %8443 = vmatprep.subr.bf16.mxu1 %v11148_v39  ;;  %v11209_v38 = vld [vmem:[#allocation11 + $0x13a0] ss:$52 sps:$4 sm:$0xff]   ;;  %v11212_v39 = vld [vmem:[#allocation11 + $0x13a8] ss:$52 sps:$4 sm:$0xff]  }
 0x4ef   :  { %8280 = vmatpush1.bf16.msra.mxu0 %v11143_v40  ;;  %v11217_v40 = vld [vmem:[#allocation11 + $0x140c] ss:$52 sps:$4 sm:$0xff]  }
 0x4f0   :  { %8444 = vmatpush1.bf16.msra.mxu1 %v11146_v42  ;;  %8281 = vmatprep.subr.bf16.mxu0 %v11151_v47  ;;  %v11220_v42 = vld [vmem:[#allocation11 + $0x1414] ss:$52 sps:$4 sm:$0xff]  }
 0x4f1   :  { %8445 = vmatprep.subr.bf16.mxu1 %v11154_v48  ;;  %v11215_v47 = vld [vmem:[#allocation11 + $0x1408] ss:$52 sps:$4 sm:$0xff]   ;;  %v11218_v48 = vld [vmem:[#allocation11 + $0x1410] ss:$52 sps:$4 sm:$0xff]  }
 0x4f3   :  { %8282 = vmatpush1.bf16.msra.mxu0 %v11149_v49  ;;  %v11223_v49 = vld [vmem:[#allocation11 + $0x1474] ss:$52 sps:$4 sm:$0xff]  }
 0x4f4   :  { %8446 = vmatpush1.bf16.msra.mxu1 %v11152_v50  ;;  %8283 = vmatprep.subr.bf16.mxu0 %v11157_v51  ;;  %v11226_v50 = vld [vmem:[#allocation11 + $0x147c] ss:$52 sps:$4 sm:$0xff]  }
 0x4f5   :  { %8447 = vmatprep.subr.bf16.mxu1 %v11160_v52  ;;  %v11221_v51 = vld [vmem:[#allocation11 + $0x1470] ss:$52 sps:$4 sm:$0xff]   ;;  %v11224_v52 = vld [vmem:[#allocation11 + $0x1478] ss:$52 sps:$4 sm:$0xff]  }
 0x4f7   :  { %8284 = vmatpush1.bf16.msra.mxu0 %v11155_v62  ;;  %v11229_v62 = vld [vmem:[#allocation11 + $0x14dc] ss:$52 sps:$4 sm:$0xff]  }
 0x4f8   :  { %8448 = vmatpush1.bf16.msra.mxu1 %v11158_v54  ;;  %8285 = vmatprep.subr.bf16.mxu0 %v11163_v55  ;;  %v11232_v54 = vld [vmem:[#allocation11 + $0x14e4] ss:$52 sps:$4 sm:$0xff]  }
 0x4f9   :  { %8449 = vmatprep.subr.bf16.mxu1 %v11166_v57  ;;  %v11227_v55 = vld [vmem:[#allocation11 + $0x14d8] ss:$52 sps:$4 sm:$0xff]   ;;  %v11230_v57 = vld [vmem:[#allocation11 + $0x14e0] ss:$52 sps:$4 sm:$0xff]  }
 0x4fb   :  { %8286 = vmatpush1.bf16.msra.mxu0 %v11161_v58  ;;  %v11235_v58 = vld [vmem:[#allocation11 + $0x1544] ss:$52 sps:$4 sm:$0xff]  }
 0x4fc   :  { %8450 = vmatpush1.bf16.msra.mxu1 %v11164_v59  ;;  %8287 = vmatprep.subr.bf16.mxu0 %v11169_v60  ;;  %v11238_v59 = vld [vmem:[#allocation11 + $0x154c] ss:$52 sps:$4 sm:$0xff]  }
 0x4fd   :  { %8451 = vmatprep.subr.bf16.mxu1 %v11172_v1  ;;  %v11233_v60 = vld [vmem:[#allocation11 + $0x1540] ss:$52 sps:$4 sm:$0xff]   ;;  %v11236_v1 = vld [vmem:[#allocation11 + $0x1548] ss:$52 sps:$4 sm:$0xff]  }
 0x4ff   :  { %8288 = vmatpush1.bf16.msra.mxu0 %v11167_v28  ;;  %v11241_v28 = vld [vmem:[#allocation11 + $0x15ac] ss:$52 sps:$4 sm:$0xff]  }
 0x500   :  { %8452 = vmatpush1.bf16.msra.mxu1 %v11170_v3  ;;  %8289 = vmatprep.subr.bf16.mxu0 %v11175_v4  ;;  %v11244_v3 = vld [vmem:[#allocation11 + $0x15b4] ss:$52 sps:$4 sm:$0xff]   ;;  %v11369_v4 = vld [vmem:[#allocation13] sm:$0xff] }
 0x501   :  { %8453 = vmatprep.subr.bf16.mxu1 %v11178_v7  ;;  %v3261_v7 = vrot.slane %v11369_v4, %v11777_v12 }
 0x503   :  { %8290 = vmatpush1.bf16.msra.mxu0 %v11173_v8  ;;  %v3269_v8 = vrot.slane %v11369_v4, %v704_v5 }
 0x504   :  { %8454 = vmatpush1.bf16.msra.mxu1 %v11176_v9  ;;  %8291 = vmatprep.subr.bf16.mxu0 %v11181_v10  ;;  %v3265_v9 = vrot.slane %v11369_v4, %v700_v26  ;;  %v11239_v10 = vld [vmem:[#allocation11 + $0x15a8] ss:$52 sps:$4 sm:$0xff]   ;;  %v11245_v26 = vld [vmem:[#allocation11 + $0x1610] ss:$52 sps:$4 sm:$0xff]  }
 0x505   :  { %8455 = vmatprep.subr.bf16.mxu1 %v11184_v29  ;;  %v3273_v29 = vrot.slane %v11369_v4, %v708_v31  ;;  %v11248_v31 = vld [vmem:[#allocation11 + $0x1618] ss:$52 sps:$4 sm:$0xff]   ;;  %v11281_v4 = vld [vmem:[#allocation11 + $0x1880] ss:$52 sps:$4 sm:$0xff]  }
 0x507   :  { %8292 = vmatpush1.bf16.msra.mxu0 %v11179_v13  ;;  %v11242_v13 = vld [vmem:[#allocation11 + $0x15b0] ss:$52 sps:$4 sm:$0xff]  }
 0x508   :  { %8456 = vmatpush1.bf16.msra.mxu1 %v11182_v44  ;;  %8293 = vmatprep.subr.bf16.mxu0 %v11187_v15  ;;  %v11247_v44 = vld [vmem:[#allocation11 + $0x1614] ss:$52 sps:$4 sm:$0xff]  }
 0x509   :  { %8457 = vmatprep.subr.bf16.mxu1 %v11190_v17  ;;  %v11250_v17 = vld [vmem:[#allocation11 + $0x161c] ss:$52 sps:$4 sm:$0xff]  }
 0x50b   :  { %8294 = vmatpush1.bf16.msra.mxu0 %v11185_v18 }
 0x50c   :  { %8458 = vmatpush1.bf16.msra.mxu1 %v11188_v19  ;;  %8295 = vmatprep.subr.bf16.mxu0 %v11193_v20 }
 0x50d   :  { %8459 = vmatprep.subr.bf16.mxu1 %v11196_v21 }
 0x50f   :  { %8296 = vmatpush1.bf16.msra.mxu0 %v11191_v23 }
 0x510   :  { %8460 = vmatpush1.bf16.msra.mxu1 %v11194_v56  ;;  %8297 = vmatprep.subr.bf16.mxu0 %v11199_v24 }
 0x511   :  { %8461 = vmatprep.subr.bf16.mxu1 %v11202_v25 }
 0x513   :  { %8298 = vmatpush1.bf16.msra.mxu0 %v11197_v41  ;;  %v11253_v41 = vld [vmem:[#allocation11 + $0x167c] ss:$52 sps:$4 sm:$0xff]  }
 0x514   :  { %8462 = vmatpush1.bf16.msra.mxu1 %v11200_v30  ;;  %8299 = vmatprep.subr.bf16.mxu0 %v11205_v32 }
 0x515   :  { %8463 = vmatprep.subr.bf16.mxu1 %v11208_v33  ;;  %v11256_v33 = vld [vmem:[#allocation11 + $0x1684] ss:$52 sps:$4 sm:$0xff]  }
 0x517   :  { %8300 = vmatpush1.bf16.msra.mxu0 %v11203_v34 }
 0x518   :  { %8464 = vmatpush1.bf16.msra.mxu1 %v11206_v35  ;;  %8310 = vmatprep.subr.bf16.mxu0 %v11211_v36  ;;  %v11251_v36 = vld [vmem:[#allocation11 + $0x1678] ss:$52 sps:$4 sm:$0xff]  }
 0x519   :  { %8474 = vmatprep.subr.bf16.mxu1 %v11214_v37 }
 0x51a   :  { %8302 = vmatmul.mubr.bf16.vlgmr.msra.gmra.mrb[20].mxu0 %v11793_v63 }
 0x51b   :  { %8466 = vmatmul.mubr.bf16.vlgmr.msra.gmra.mrb[20].mxu1 %v11793_v63  ;;  %8311 = vmatpush1.bf16.msra.mxu0 %v11209_v38  ;;  %v11254_v38 = vld [vmem:[#allocation11 + $0x1680] ss:$52 sps:$4 sm:$0xff]  }
 0x51c   :  { %8342 = vmatprep.mubr.bf16.mxu0 %v11797_v6  ;;  %8475 = vmatpush1.bf16.msra.mxu1 %v11212_v39  ;;  %v11259_v39 = vld [vmem:[#allocation11 + $0x16e4] ss:$52 sps:$4 sm:$0xff]  }
 0x51d   :  { %8506 = vmatprep.mubr.bf16.mxu1 %v11797_v6  ;;  %8312 = vmatprep.subr.bf16.mxu0 %v11217_v40  ;;  %v11262_v40 = vld [vmem:[#allocation11 + $0x16ec] ss:$52 sps:$4 sm:$0xff]  }
 0x51e   :  { %8476 = vmatprep.subr.bf16.mxu1 %v11220_v42 }
 0x51f   :  { %8313 = vmatpush1.bf16.msra.mxu0 %v11215_v47  ;;  %v11257_v47 = vld [vmem:[#allocation11 + $0x16e0] ss:$52 sps:$4 sm:$0xff]  }
 0x520   :  { %8477 = vmatpush1.bf16.msra.mxu1 %v11218_v48  ;;  %8314 = vmatprep.subr.bf16.mxu0 %v11223_v49  ;;  %v11260_v48 = vld [vmem:[#allocation11 + $0x16e8] ss:$52 sps:$4 sm:$0xff]   ;;  %v11265_v49 = vld [vmem:[#allocation11 + $0x174c] ss:$52 sps:$4 sm:$0xff]  }
 0x521   :  { %8478 = vmatprep.subr.bf16.mxu1 %v11226_v50  ;;  %v11268_v50 = vld [vmem:[#allocation11 + $0x1754] ss:$52 sps:$4 sm:$0xff]  }
 0x523   :  { %8315 = vmatpush1.bf16.msra.mxu0 %v11221_v51  ;;  %v11263_v51 = vld [vmem:[#allocation11 + $0x1748] ss:$52 sps:$4 sm:$0xff]  }
 0x524   :  { %8479 = vmatpush1.bf16.msra.mxu1 %v11224_v52  ;;  %8316 = vmatprep.subr.bf16.mxu0 %v11229_v62  ;;  %v11266_v52 = vld [vmem:[#allocation11 + $0x1750] ss:$52 sps:$4 sm:$0xff]   ;;  %v11271_v62 = vld [vmem:[#allocation11 + $0x17b4] ss:$52 sps:$4 sm:$0xff]  }
 0x525   :  { %8480 = vmatprep.subr.bf16.mxu1 %v11232_v54  ;;  %v11274_v54 = vld [vmem:[#allocation11 + $0x17bc] ss:$52 sps:$4 sm:$0xff]  }
 0x527   :  { %8317 = vmatpush1.bf16.msra.mxu0 %v11227_v55  ;;  %v11269_v55 = vld [vmem:[#allocation11 + $0x17b0] ss:$52 sps:$4 sm:$0xff]  }
 0x528   :  { %8481 = vmatpush1.bf16.msra.mxu1 %v11230_v57  ;;  %8318 = vmatprep.subr.bf16.mxu0 %v11235_v58  ;;  %v11272_v57 = vld [vmem:[#allocation11 + $0x17b8] ss:$52 sps:$4 sm:$0xff]   ;;  %v11277_v58 = vld [vmem:[#allocation11 + $0x181c] ss:$52 sps:$4 sm:$0xff]  }
 0x529   :  { %8482 = vmatprep.subr.bf16.mxu1 %v11238_v59  ;;  %v11280_v59 = vld [vmem:[#allocation11 + $0x1824] ss:$52 sps:$4 sm:$0xff]  }
 0x52b   :  { %8319 = vmatpush1.bf16.msra.mxu0 %v11233_v60  ;;  %v11275_v60 = vld [vmem:[#allocation11 + $0x1818] ss:$52 sps:$4 sm:$0xff]  }
 0x52c   :  { %8483 = vmatpush1.bf16.msra.mxu1 %v11236_v1  ;;  %8320 = vmatprep.subr.bf16.mxu0 %v11241_v28  ;;  %v11278_v1 = vld [vmem:[#allocation11 + $0x1820] ss:$52 sps:$4 sm:$0xff]   ;;  %v11283_v28 = vld [vmem:[#allocation11 + $0x1884] ss:$52 sps:$4 sm:$0xff]  }
 0x52d   :  { %v8016_v15 = vpop.f32.mrb[16].mxu0  ;;  %8484 = vmatprep.subr.bf16.mxu1 %v11244_v3  ;;  %v11286_v3 = vld [vmem:[#allocation11 + $0x188c] ss:$52 sps:$4 sm:$0xff]  }
 0x52e   :  { %v9993_v18 = vadd.f32 %v8016_v15, %v3261_v7  ;;  %v8180_v19 = vpop.f32.mrb[16].mxu1  ;;  %v8018_v20 = vpop.f32.mrb[17].mxu0  ;;  %v11284_v7 = vld [vmem:[#allocation11 + $0x1888] ss:$52 sps:$4 sm:$0xff]   ;;  %v11293_v15 = vld [vmem:[#allocation11 + $0x1950] ss:$52 sps:$4 sm:$0xff]  }
 0x52f   :  { %v9995_v21 = vadd.f32 %v8180_v19, %v3269_v8  ;;  %v9994_v23 = vadd.f32 %v8018_v20, %v3265_v9  ;;  %v8182_v5 = vpop.f32.mrb[17].mxu1  ;;  %v8020_v56 = vpop.f32.mrb[18].mxu0  ;;  %8321 = vmatpush1.bf16.msra.mxu0 %v11239_v10  ;;  %v11289_v8 = vld [vmem:[#allocation11 + $0x18ec] ss:$52 sps:$4 sm:$0xff]   ;;  %v11292_v9 = vld [vmem:[#allocation11 + $0x18f4] ss:$52 sps:$4 sm:$0xff]  }
 0x530   :  { %v9996_v24 = vadd.f32 %v8182_v5, %v3273_v29  ;;  %v8184_v25 = vpop.f32.mrb[18].mxu1  ;;  %8485 = vmatpush1.bf16.msra.mxu1 %v11242_v13  ;;  %v8021_v43 = vpop.f32.mrb[19].mxu0  ;;  %8322 = vmatprep.subr.bf16.mxu0 %v11247_v44  ;;  %v11287_v10 = vld [vmem:[#allocation11 + $0x18e8] ss:$52 sps:$4 sm:$0xff]   ;;  %v11290_v29 = vld [vmem:[#allocation11 + $0x18f0] ss:$52 sps:$4 sm:$0xff]  }
 0x531   :  { %v8705_v30 = vcombine.low %v9993_v18, %v9994_v23  ;;  %v8185_v32 = vpop.f32.mrb[19].mxu1  ;;  %8486 = vmatprep.subr.bf16.mxu1 %v11250_v17  ;;  %v11295_v13 = vld [vmem:[#allocation11 + $0x1954] ss:$52 sps:$4 sm:$0xff]   ;;  %v11298_v44 = vld [vmem:[#allocation11 + $0x195c] ss:$52 sps:$4 sm:$0xff]  }
 0x532   :  { %v8706_v34 = vcombine.low %v9995_v21, %v9996_v24  ;;  %v11296_v17 = vld [vmem:[#allocation11 + $0x1958] ss:$52 sps:$4 sm:$0xff]   ;;  %v11301_v18 = vld [vmem:[#allocation11 + $0x19bc] ss:$52 sps:$4 sm:$0xff]   ;;  %v11302_v21 = vld [vmem:[#allocation11 + $0x19c0] ss:$52 sps:$4 sm:$0xff]  }
 0x533   :  { %v8713_v35 = vrot.slane %v8705_v30, %v11831_v22  ;;  %8323 = vmatpush1.bf16.msra.mxu0 %v11245_v26  ;;  %v11304_v19 = vld [vmem:[#allocation11 + $0x19c4] ss:$52 sps:$4 sm:$0xff]   ;;  %v11314_v30 = vld [vmem:[#allocation11 + $0xac0] ss:$52 sps:$4 sm:$0xff]  }
 0x534   :  { %v8720_v37 = vrot.slane %v8706_v34, %v11831_v22  ;;  %8487 = vmatpush1.bf16.msra.mxu1 %v11248_v31  ;;  %8324 = vmatprep.subr.bf16.mxu0 %v11253_v41  ;;  %v11299_v20 = vld [vmem:[#allocation11 + $0x19b8] ss:$52 sps:$4 sm:$0xff]   ;;  %v11305_v23 = vld [vmem:[#allocation11 + $0x370] ss:$52 sps:$4 sm:$0xff]   ;;  %v11313_v41 = vld [vmem:[#allocation11 + $0x440] ss:$52 sps:$4 sm:$0xff]  }
 0x535   :  { %8488 = vmatprep.subr.bf16.mxu1 %v11256_v33  ;;  %v11306_v5 = vld [vmem:[#allocation11 + $0x9f0] ss:$52 sps:$4 sm:$0xff]   ;;  %v11309_v24 = vld [vmem:[#allocation11 + $0x3d8] ss:$52 sps:$4 sm:$0xff]   ;;  %v11315_v32 = vld [vmem:[#allocation11 + $0x100] ss:$52 sps:$4 sm:$0xff]  }
 0x536   :  { %v8721_v42 = vcombine.low %v8713_v35, %v8720_v37  ;;  %v11307_v56 = vld [vmem:[#allocation11 + $0x30] ss:$52 sps:$4 sm:$0xff]   ;;  %v11310_v25 = vld [vmem:[#allocation11 + $0xa58] ss:$52 sps:$4 sm:$0xff]   ;;  %v11316_v33 = vld [vmem:[#allocation11 + $0x780] ss:$52 sps:$4 sm:$0xff]  }
 0x537   :  { %8325 = vmatpush1.bf16.msra.mxu0 %v11251_v36  ;;  %v11308_v26 = vld [vmem:[#allocation11 + $0x6b0] ss:$52 sps:$4 sm:$0xff]   ;;  %v11311_v43 = vld [vmem:[#allocation11 + $0x98] ss:$52 sps:$4 sm:$0xff]   ;;  %v11317_v34 = vld [vmem:[#allocation11 + $0x4a8] ss:$52 sps:$4 sm:$0xff]  }
 0x538   :  { %8751 = vst [vmem:[#allocation14 + $0x8] sm:$0xff] %v8721_v42  ;;  %8489 = vmatpush1.bf16.msra.mxu1 %v11254_v38  ;;  %8326 = vmatprep.subr.bf16.mxu0 %v11259_v39  ;;  %v11312_v31 = vld [vmem:[#allocation11 + $0x718] ss:$52 sps:$4 sm:$0xff]   ;;  %v11318_v35 = vld [vmem:[#allocation11 + $0xb28] ss:$52 sps:$4 sm:$0xff]  }
 0x539   :  { %8490 = vmatprep.subr.bf16.mxu1 %v11262_v40  ;;  %v11319_v36 = vld [vmem:[#allocation11 + $0x168] ss:$52 sps:$4 sm:$0xff]   ;;  %v11321_v37 = vld [vmem:[#allocation11 + $0x510] ss:$52 sps:$4 sm:$0xff]   ;;  %v11325_v40 = vld [vmem:[#allocation11 + $0x578] ss:$52 sps:$4 sm:$0xff]  }
 0x53a   :  { %v11322_v38 = vld [vmem:[#allocation11 + $0xb90] ss:$52 sps:$4 sm:$0xff]   ;;  %v11326_v42 = vld [vmem:[#allocation11 + $0xbf8] ss:$52 sps:$4 sm:$0xff]  }
 0x53b   :  { %8327 = vmatpush1.bf16.msra.mxu0 %v11257_v47  ;;  %v11324_v39 = vld [vmem:[#allocation11 + $0x850] ss:$52 sps:$4 sm:$0xff]   ;;  %v11327_v47 = vld [vmem:[#allocation11 + $0x238] ss:$52 sps:$4 sm:$0xff]  }
 0x53c   :  { %8491 = vmatpush1.bf16.msra.mxu1 %v11260_v48  ;;  %8328 = vmatprep.subr.bf16.mxu0 %v11265_v49  ;;  %v11328_v48 = vld [vmem:[#allocation11 + $0x8b8] ss:$52 sps:$4 sm:$0xff]   ;;  %v11329_v49 = vld [vmem:[#allocation11 + $0x5e0] ss:$52 sps:$4 sm:$0xff]  }
 0x53d   :  { %8492 = vmatprep.subr.bf16.mxu1 %v11268_v50  ;;  %v11330_v50 = vld [vmem:[#allocation11 + $0xc60] ss:$52 sps:$4 sm:$0xff]  }
 0x53f   :  { %8329 = vmatpush1.bf16.msra.mxu0 %v11263_v51  ;;  %v11331_v51 = vld [vmem:[#allocation11 + $0x2a0] ss:$52 sps:$4 sm:$0xff]  }
 0x540   :  { %8493 = vmatpush1.bf16.msra.mxu1 %v11266_v52  ;;  %8330 = vmatprep.subr.bf16.mxu0 %v11271_v62  ;;  %v11332_v52 = vld [vmem:[#allocation11 + $0x920] ss:$52 sps:$4 sm:$0xff]   ;;  %v11333_v62 = vld [vmem:[#allocation11 + $0x648] ss:$52 sps:$4 sm:$0xff]  }
 0x541   :  { %8494 = vmatprep.subr.bf16.mxu1 %v11274_v54  ;;  %v11334_v54 = vld [vmem:[#allocation11 + $0xcc8] ss:$52 sps:$4 sm:$0xff]  }
 0x543   :  { %8331 = vmatpush1.bf16.msra.mxu0 %v11269_v55  ;;  %v11335_v55 = vld [vmem:[#allocation11 + $0x308] ss:$52 sps:$4 sm:$0xff]  }
 0x544   :  { %8495 = vmatpush1.bf16.msra.mxu1 %v11272_v57  ;;  %8332 = vmatprep.subr.bf16.mxu0 %v11277_v58  ;;  %v11336_v57 = vld [vmem:[#allocation11 + $0x988] ss:$52 sps:$4 sm:$0xff]   ;;  %v11337_v58 = vld [vmem:[#allocation11 + $0x1070] ss:$52 sps:$4 sm:$0xff]  }
 0x545   :  { %8496 = vmatprep.subr.bf16.mxu1 %v11280_v59  ;;  %v11338_v59 = vld [vmem:[#allocation11 + $0x16f0] ss:$52 sps:$4 sm:$0xff]  }
 0x547   :  { %8333 = vmatpush1.bf16.msra.mxu0 %v11275_v60  ;;  %v11339_v60 = vld [vmem:[#allocation11 + $0xd30] ss:$52 sps:$4 sm:$0xff]  }
 0x548   :  { %8497 = vmatpush1.bf16.msra.mxu1 %v11278_v1  ;;  %8334 = vmatprep.subr.bf16.mxu0 %v11283_v28  ;;  %v11340_v1 = vld [vmem:[#allocation11 + $0x13b0] ss:$52 sps:$4 sm:$0xff]   ;;  %v11341_v28 = vld [vmem:[#allocation11 + $0x10d8] ss:$52 sps:$4 sm:$0xff]  }
 0x549   :  { %8498 = vmatprep.subr.bf16.mxu1 %v11286_v3  ;;  %v11342_v3 = vld [vmem:[#allocation11 + $0x1758] ss:$52 sps:$4 sm:$0xff]  }
 0x54b   :  { %8335 = vmatpush1.bf16.msra.mxu0 %v11281_v4  ;;  %v11343_v4 = vld [vmem:[#allocation11 + $0xd98] ss:$52 sps:$4 sm:$0xff]  }
 0x54c   :  { %8499 = vmatpush1.bf16.msra.mxu1 %v11284_v7  ;;  %8336 = vmatprep.subr.bf16.mxu0 %v11289_v8  ;;  %v11344_v7 = vld [vmem:[#allocation11 + $0x1418] ss:$52 sps:$4 sm:$0xff]   ;;  %v11345_v8 = vld [vmem:[#allocation11 + $0x1140] ss:$52 sps:$4 sm:$0xff]  }
 0x54d   :  { %8500 = vmatprep.subr.bf16.mxu1 %v11292_v9  ;;  %v11346_v9 = vld [vmem:[#allocation11 + $0x17c0] ss:$52 sps:$4 sm:$0xff]  }
 0x54f   :  { %8337 = vmatpush1.bf16.msra.mxu0 %v11287_v10  ;;  %v11347_v10 = vld [vmem:[#allocation11 + $0xe00] ss:$52 sps:$4 sm:$0xff]  }
 0x550   :  { %8501 = vmatpush1.bf16.msra.mxu1 %v11290_v29  ;;  %8338 = vmatprep.subr.bf16.mxu0 %v11295_v13  ;;  %v11349_v29 = vld [vmem:[#allocation11 + $0x11a8] ss:$52 sps:$4 sm:$0xff]  }
 0x551   :  { %8502 = vmatprep.subr.bf16.mxu1 %v11298_v44  ;;  %v11351_v13 = vld [vmem:[#allocation11 + $0xe68] ss:$52 sps:$4 sm:$0xff]   ;;  %v11353_v44 = vld [vmem:[#allocation11 + $0x1210] ss:$52 sps:$4 sm:$0xff]  }
 0x553   :  { %8339 = vmatpush1.bf16.msra.mxu0 %v11293_v15  ;;  %v11354_v15 = vld [vmem:[#allocation11 + $0x1890] ss:$52 sps:$4 sm:$0xff]  }
 0x554   :  { %8503 = vmatpush1.bf16.msra.mxu1 %v11296_v17  ;;  %8340 = vmatprep.subr.bf16.mxu0 %v11301_v18  ;;  %v11356_v17 = vld [vmem:[#allocation11 + $0x1550] ss:$52 sps:$4 sm:$0xff]   ;;  %v11357_v18 = vld [vmem:[#allocation11 + $0x1278] ss:$52 sps:$4 sm:$0xff]  }
 0x555   :  { %8504 = vmatprep.subr.bf16.mxu1 %v11304_v19  ;;  %v11358_v19 = vld [vmem:[#allocation11 + $0x18f8] ss:$52 sps:$4 sm:$0xff]  }
 0x557   :  { %8341 = vmatpush1.bf16.msra.mxu0 %v11299_v20  ;;  %v11359_v20 = vld [vmem:[#allocation11 + $0xf38] ss:$52 sps:$4 sm:$0xff]  }
 0x558   :  { %8505 = vmatpush1.bf16.msra.mxu1 %v11302_v21  ;;  %9893 = vmatprep.subr.bf16.mxu0 %v11305_v23  ;;  %v11360_v21 = vld [vmem:[#allocation11 + $0x15b8] ss:$52 sps:$4 sm:$0xff]   ;;  %v11361_v23 = vld [vmem:[#allocation11 + $0x12e0] ss:$52 sps:$4 sm:$0xff]  }
 0x559   :  { %9915 = vmatprep.subr.bf16.mxu1 %v11306_v5  ;;  %v11362_v5 = vld [vmem:[#allocation11 + $0x1960] ss:$52 sps:$4 sm:$0xff]  }
 0x55a   :  { %8343 = vmatmul.mubr.bf16.vlgmr.msra.gmra.mrb[20].mxu0 %v11808_v0 }
 0x55b   :  { %8507 = vmatmul.mubr.bf16.vlgmr.msra.gmra.mrb[20].mxu1 %v11808_v0  ;;  %9894 = vmatpush3.bf16.msra.mxu0 %v11307_v56  ;;  %v11363_v56 = vld [vmem:[#allocation11 + $0xfa0] ss:$52 sps:$4 sm:$0xff]  }
 0x55c   :  { %8547 = vmatprep.mubr.bf16.mxu0 %v11757_v11  ;;  %9916 = vmatpush3.bf16.msra.mxu1 %v11308_v26  ;;  %v11320_v11 = vld [vmem:[#allocation11 + $0x7e8] ss:$52 sps:$4 sm:$0xff]   ;;  %v11364_v26 = vld [vmem:[#allocation11 + $0x1620] ss:$52 sps:$4 sm:$0xff]  }
 0x55d   :  { %8587 = vmatprep.mubr.bf16.mxu1 %v11763_v16  ;;  %9895 = vmatprep.subr.bf16.mxu0 %v11309_v24  ;;  %v11323_v16 = vld [vmem:[#allocation11 + $0x1d0] ss:$52 sps:$4 sm:$0xff]   ;;  %v11365_v24 = vld [vmem:[#allocation11 + $0x1348] ss:$52 sps:$4 sm:$0xff]  }
 0x55e   :  { %9917 = vmatprep.subr.bf16.mxu1 %v11310_v25  ;;  %v11366_v25 = vld [vmem:[#allocation11 + $0x19c8] ss:$52 sps:$4 sm:$0xff]  }
 0x55f   :  { %9896 = vmatpush3.bf16.msra.mxu0 %v11311_v43  ;;  %v11367_v43 = vld [vmem:[#allocation11 + $0x1008] ss:$52 sps:$4 sm:$0xff]  }
 0x560   :  { %9918 = vmatpush3.bf16.msra.mxu1 %v11312_v31  ;;  %9897 = vmatprep.subr.bf16.mxu0 %v11313_v41  ;;  %v11368_v31 = vld [vmem:[#allocation11 + $0x1688] ss:$52 sps:$4 sm:$0xff]  }
 0x561   :  { %9919 = vmatprep.subr.bf16.mxu1 %v11314_v30  ;;  %v3239_v41 = vld [vmem:[#allocation13 + $0x8] sm:$0x1f] }
 0x562   :  { %v3277_v30 = vrot.slane %v3239_v41, %v11701_v45 }
 0x563   :  { %9898 = vmatpush3.bf16.msra.mxu0 %v11315_v32  ;;  %v3285_v32 = vrot.slane %v3239_v41, %v11730_v53 }
 0x564   :  { %9920 = vmatpush3.bf16.msra.mxu1 %v11316_v33  ;;  %9899 = vmatprep.subr.bf16.mxu0 %v11317_v34  ;;  %v3281_v33 = vrot.slane %v3239_v41, %v11704_v46  ;;  %v3289_v34 = vrot.slane %v3239_v41, %v11711_v61 }
 0x565   :  { %9921 = vmatprep.subr.bf16.mxu1 %v11318_v35 }
 0x567   :  { %9900 = vmatpush3.bf16.msra.mxu0 %v11319_v36 }
 0x568   :  { %9922 = vmatpush3.bf16.msra.mxu1 %v11320_v11  ;;  %9901 = vmatprep.subr.bf16.mxu0 %v11321_v37 }
 0x569   :  { %9923 = vmatprep.subr.bf16.mxu1 %v11322_v38 }
 0x56b   :  { %9902 = vmatpush3.bf16.msra.mxu0 %v11323_v16 }
 0x56c   :  { %9924 = vmatpush3.bf16.msra.mxu1 %v11324_v39  ;;  %9903 = vmatprep.subr.bf16.mxu0 %v11325_v40 }
 0x56d   :  { %9925 = vmatprep.subr.bf16.mxu1 %v11326_v42 }
 0x56f   :  { %9904 = vmatpush3.bf16.msra.mxu0 %v11327_v47 }
 0x570   :  { %9926 = vmatpush3.bf16.msra.mxu1 %v11328_v48  ;;  %9905 = vmatprep.subr.bf16.mxu0 %v11329_v49 }
 0x571   :  { %9927 = vmatprep.subr.bf16.mxu1 %v11330_v50  ;;  %v3293_v50 = vrot.slane %v3239_v41, %v11777_v12 }
 0x573   :  { %9906 = vmatpush3.bf16.msra.mxu0 %v11331_v51 }
 0x574   :  { %9928 = vmatpush3.bf16.msra.mxu1 %v11332_v52  ;;  %9907 = vmatprep.subr.bf16.mxu0 %v11333_v62 }
 0x575   :  { %9929 = vmatprep.subr.bf16.mxu1 %v11334_v54 }
 0x577   :  { %9908 = vmatpush3.bf16.msra.mxu0 %v11335_v55 }
 0x578   :  { %9930 = vmatpush3.bf16.msra.mxu1 %v11336_v57  ;;  %9937 = vmatprep.subr.bf16.mxu0 %v11337_v58 }
 0x579   :  { %9959 = vmatprep.subr.bf16.mxu1 %v11338_v59 }
 0x57a   :  { %8548 = vmatmul.mubr.bf16.vlgmr.msra.gmra.mrb[24].mxu0 %v11759_v14  ;;  %v11348_v14 = vld [vmem:[#allocation11 + $0x1480] ss:$52 sps:$4 sm:$0xff]  }
 0x57b   :  { %8588 = vmatmul.mubr.bf16.vlgmr.msra.gmra.mrb[24].mxu1 %v11772_v27  ;;  %9938 = vmatpush3.bf16.msra.mxu0 %v11339_v60  ;;  %v11350_v27 = vld [vmem:[#allocation11 + $0x1828] ss:$52 sps:$4 sm:$0xff]  }
 0x57c   :  { %8627 = vmatprep.mubr.bf16.mxu0 %v11791_v2  ;;  %9960 = vmatpush3.bf16.msra.mxu1 %v11340_v1  ;;  %v11352_v2 = vld [vmem:[#allocation11 + $0x14e8] ss:$52 sps:$4 sm:$0xff]  }
 0x57d   :  { %8667 = vmatprep.mubr.bf16.mxu1 %v11797_v6  ;;  %9939 = vmatprep.subr.bf16.mxu0 %v11341_v28  ;;  %v11355_v6 = vld [vmem:[#allocation11 + $0xed0] ss:$52 sps:$4 sm:$0xff]  }
 0x57e   :  { %9961 = vmatprep.subr.bf16.mxu1 %v11342_v3 }
 0x57f   :  { %9940 = vmatpush3.bf16.msra.mxu0 %v11343_v4 }
 0x580   :  { %9962 = vmatpush3.bf16.msra.mxu1 %v11344_v7  ;;  %9941 = vmatprep.subr.bf16.mxu0 %v11345_v8 }
 0x581   :  { %9963 = vmatprep.subr.bf16.mxu1 %v11346_v9 }
 0x583   :  { %9942 = vmatpush3.bf16.msra.mxu0 %v11347_v10 }
 0x584   :  { %9964 = vmatpush3.bf16.msra.mxu1 %v11348_v14  ;;  %9943 = vmatprep.subr.bf16.mxu0 %v11349_v29 }
 0x585   :  { %9965 = vmatprep.subr.bf16.mxu1 %v11350_v27 }
 0x587   :  { %9944 = vmatpush3.bf16.msra.mxu0 %v11351_v13 }
 0x588   :  { %9966 = vmatpush3.bf16.msra.mxu1 %v11352_v2  ;;  %9945 = vmatprep.subr.bf16.mxu0 %v11353_v44 }
 0x589   :  { %9967 = vmatprep.subr.bf16.mxu1 %v11354_v15 }
 0x58b   :  { %9946 = vmatpush3.bf16.msra.mxu0 %v11355_v6 }
 0x58c   :  { %9968 = vmatpush3.bf16.msra.mxu1 %v11356_v17  ;;  %9947 = vmatprep.subr.bf16.mxu0 %v11357_v18 }
 0x58d   :  { %9969 = vmatprep.subr.bf16.mxu1 %v11358_v19 }
 0x58f   :  { %9948 = vmatpush3.bf16.msra.mxu0 %v11359_v20 }
 0x590   :  { %9970 = vmatpush3.bf16.msra.mxu1 %v11360_v21  ;;  %9949 = vmatprep.subr.bf16.mxu0 %v11361_v23 }
 0x591   :  { %9971 = vmatprep.subr.bf16.mxu1 %v11362_v5 }
 0x593   :  { %9950 = vmatpush3.bf16.msra.mxu0 %v11363_v56 }
 0x594   :  { %9972 = vmatpush3.bf16.msra.mxu1 %v11364_v26  ;;  %9951 = vmatprep.subr.bf16.mxu0 %v11365_v24 }
 0x595   :  { %9973 = vmatprep.subr.bf16.mxu1 %v11366_v25 }
 0x597   :  { %9952 = vmatpush3.bf16.msra.mxu0 %v11367_v43 }
 0x598   :  { %9974 = vmatpush3.bf16.msra.mxu1 %v11368_v31 }
 0x59a   :  { %8628 = vmatmul.mubr.bf16.vlgmr.msra.gmra.mrb[28].mxu0 %v11793_v63 }
 0x59b   :  { %8668 = vmatmul.mubr.bf16.vlgmr.msra.gmra.mrb[28].mxu1 %v11808_v0 }
 0x62d   :  { %v8344_v35 = vpop.f32.mrb[20].mxu0 }
 0x62e   :  { %v9997_v36 = vadd.f32 %v8344_v35, %v3277_v30  ;;  %v8508_v11 = vpop.f32.mrb[20].mxu1  ;;  %v8346_v37 = vpop.f32.mrb[21].mxu0 }
 0x62f   :  { %v9999_v38 = vadd.f32 %v8508_v11, %v3285_v32  ;;  %v9998_v16 = vadd.f32 %v8346_v37, %v3281_v33  ;;  %v8510_v39 = vpop.f32.mrb[21].mxu1  ;;  %v8348_v40 = vpop.f32.mrb[22].mxu0 }
 0x630   :  { %v10000_v63 = vadd.f32 %v8510_v39, %v3289_v34  ;;  %v8512_v42 = vpop.f32.mrb[22].mxu1  ;;  %v8349_v0 = vpop.f32.mrb[23].mxu0 }
 0x631   :  { %v8722_v47 = vcombine.low %v9997_v36, %v9998_v16  ;;  %v8513_v48 = vpop.f32.mrb[23].mxu1 }
 0x632   :  { %v8723_v45 = vcombine.low %v9999_v38, %v10000_v63 }
 0x633   :  { %v8730_v53 = vrot.slane %v8722_v47, %v11831_v22 }
 0x634   :  { %v8737_v46 = vrot.slane %v8723_v45, %v11831_v22 }
 0x636   :  { %v8738_v49 = vcombine.low %v8730_v53, %v8737_v46 }
 0x638   :  { %8752 = vst [vmem:[#allocation14 + $0x10] sm:$0xff] %v8738_v49 }
 0x64d   :  { %v9909_v61 = vpop.f32.mrb[24].mxu0 }
 0x64e   :  { %v9931_v51 = vpop.f32.mrb[24].mxu1  ;;  %v9910_v52 = vpop.f32.mrb[25].mxu0 }
 0x64f   :  { %v9911_v62 = vadd.f32 %v9910_v52, %v9909_v61  ;;  %v9932_v54 = vpop.f32.mrb[25].mxu1  ;;  %v9912_v55 = vpop.f32.mrb[26].mxu0 }
 0x650   :  { %v9933_v57 = vadd.f32 %v9932_v54, %v9931_v51  ;;  %v9934_v58 = vpop.f32.mrb[26].mxu1  ;;  %v9913_v59 = vpop.f32.mrb[27].mxu0 }
 0x651   :  { %v8550_v60 = vadd.f32 %v9911_v62, %v3293_v50  ;;  %v9935_v1 = vpop.f32.mrb[27].mxu1 }
 0x653   :  { %v8590_v28 = vadd.f32 %v9933_v57, %v8550_v60 }
 0x66d   :  { %v9953_v3 = vpop.f32.mrb[28].mxu0 }
 0x66e   :  { %v9975_v4 = vpop.f32.mrb[28].mxu1  ;;  %v9954_v7 = vpop.f32.mrb[29].mxu0 }
 0x66f   :  { %v9955_v22 = vadd.f32 %v9954_v7, %v9953_v3  ;;  %v9976_v8 = vpop.f32.mrb[29].mxu1  ;;  %v9956_v9 = vpop.f32.mrb[30].mxu0 }
 0x670   :  { %v9977_v10 = vadd.f32 %v9976_v8, %v9975_v4  ;;  %v9978_v14 = vpop.f32.mrb[30].mxu1  ;;  %v9957_v12 = vpop.f32.mrb[31].mxu0 }
 0x671   :  { %v8630_v29 = vadd.f32 %v9955_v22, %v8590_v28  ;;  %v9979_v27 = vpop.f32.mrb[31].mxu1 }
 0x673   :  { %v8670_v13 = vadd.f32 %v9977_v10, %v8630_v29 }
 0x675   :  { %9892 = vst.sshfl [vmem:[#allocation14 + $0x18] sm:$0x3 pattern:$0x76325410] %v8670_v13 }
 0x676   :  { %11535 = shalt.err (!%p11532_p4)
}
 0x677   :  { %s11536_s16 = scalar_lea.hbm %s11896_s7, 416 }
 0x678   :  { %p11537_p5 = scmp.ne.s32.totalorder %s11896_s7, %s11536_s16  ;;  %p11540_p6 = scmp.lt.u32.totalorder %s11536_s16, %s11896_s7 }
 0x67a   :  { %p11542_p7 = pnand %p11540_p6, %p11537_p5 }
 0x67c   :  { %11545 = shalt.err (!%p11542_p7)
}
 0x67d   :  { %8763 = dma.vmem_to_hbm [thread:$0]  %s8761_s14, 416, %s11896_s7, [#allocation4]  }
 0x67e   :  { %11554 = dma.done.wait [#allocation4], 416  }
 0x67f   :  { %11555 = vsyncadd [#allocation4], 4294966880 }
 0x680   :  { %8767 = vsyncpa [#allocation3], 1 }
 0x681   :  { %8768 = vsyncpa [#allocation6], 1 }
 0x682   :  { %8769 = vsyncpa [#allocation9], 1 }
 0x683   :  { %8770 = vsyncpa [#allocation12], 1 }
 0x684   :  { %8771 = vsyncpa [#allocation4], 1 }

</bundles_post_ra>
